<compile_context>
chip_gen: v6e
topology: v6e:2x2x1
jax: 0.10.0
libtpu: 0.0.40
codegen_flags: <defaults>
</compile_context>

<pallas_src>
import functools

import numpy as np
import jax
import jax.numpy as jnp
from jax.experimental import pallas as pl
from jax.experimental.pallas import tpu as pltpu

# ----------------------------- model dimensions ---------------------------- #
C1 = 8          # conv1 output channels (modelA hidden)
HID = 32        # MLP hidden width (modelB)
NCLS = 10       # classifier outputs
LANE = 128      # TPU lane width: classifier matmuls / output padded to this

# offsets into the packed SMEM scalar buffer
_W1_OFF = 0                      # 72 conv1 weights  [co*9 + kh*3 + kw]
_B1_OFF = _W1_OFF + C1 * 9       # 8  conv1 biases
_W2_OFF = _B1_OFF + C1           # 72 conv2 weights  [ci*9 + kh*3 + kw]
_B2_OFF = _W2_OFF + C1 * 9       # 1  conv2 bias
_GAMMA_OFF = _B2_OFF + 1         # 1  bn gamma
_BETA_OFF = _GAMMA_OFF + 1       # 1  bn beta
_N_SCALARS = _BETA_OFF + 1       # 155


# ------------------------------ fused kernel ------------------------------- #

def _cascade_kernel(x_ref, sc_ref, mask_ref, fc1w_ref, fc2w_ref, fcb_ref, o_ref,
                    *, N, H, W, eps):
    """Whole forward pass in one kernel; activations never leave VMEM/vregs."""
    HW = H * W
    taps = [(dh, dw) for dh in (-1, 0, 1) for dw in (-1, 0, 1)]   # t = (dh+1)*3+(dw+1)

    def shift(a, t):
        # y[n, h*W + w] = a[n, (h+dh)*W + (w+dw)]   (zero outside the image)
        dh, dw = taps[t]
        s = dh * W + dw
        rolled = a if s == 0 else pltpu.roll(a, (-s) % HW, axis=1)
        return rolled * mask_ref[t]                   # (1, HW) 0/1 edge mask

    x = x_ref[...]                                    # (N, HW) f32, lane-dense

    # ---- modelA conv1: 1 -> C1 channels, 3x3, pad 1, ReLU (VPU shifted-MAC) ----
    xs = [shift(x, t) for t in range(9)]              # 9 rolls, reused by all C1 outs
    h1 = []
    for co in range(C1):
        acc = sc_ref[_W1_OFF + co * 9] * xs[0]
        for t in range(1, 9):
            acc = acc + sc_ref[_W1_OFF + co * 9 + t] * xs[t]
        h1.append(jnp.maximum(acc + sc_ref[_B1_OFF + co], 0.0))

    # ---- modelA conv2: C1 -> 1 channel, 3x3, pad 1 -----------------------------
    # shift() is linear, so fold the channel reduction before the 9 shifts:
    #   sum_ci sum_t w2[ci,t]*shift_t(h1[ci]) == sum_t shift_t( sum_ci w2[ci,t]*h1[ci] )
    acc2 = None
    for t in range(9):
        g = sc_ref[_W2_OFF + t] * h1[0]
        for ci in range(1, C1):
            g = g + sc_ref[_W2_OFF + ci * 9 + t] * h1[ci]
        term = shift(g, t)
        acc2 = term if acc2 is None else acc2 + term
    acc2 = acc2 + sc_ref[_B2_OFF]                     # (N, HW)

    # ---- BatchNorm2d(1), training-mode batch statistics (fused epilogue) -------
    count = float(N * HW)
    mean = jnp.sum(acc2) / count
    centered = acc2 - mean
    var = jnp.sum(centered * centered) / count        # biased variance, like PyTorch fwd
    bn = centered * jax.lax.rsqrt(var + eps) * sc_ref[_GAMMA_OFF] + sc_ref[_BETA_OFF]

    # ---- modelB: Linear(HW,32)+ReLU -> Linear(32,10), lane-padded to 128 -------
    z1 = jnp.dot(bn, fc1w_ref[...], preferred_element_type=jnp.float32)
    z1 = jnp.maximum(z1 + fcb_ref[0:1, :], 0.0)       # padded cols stay exactly 0
    logits = jnp.dot(z1, fc2w_ref[...], preferred_element_type=jnp.float32)
    o_ref[...] = logits + fcb_ref[1:2, :]             # (N, 128) lane-dense store


def cascade_forward(packed, x_nchw):
    """Forward pass of CascadeModelWithBathNorm as ONE fused Pallas call."""
    N, C, H, W = x_nchw.shape
    assert C == 1, "placeholder modelA expects a single input channel"
    x2d = x_nchw.reshape(N, H * W)                    # lane-dense activation layout
    out_pad = pl.pallas_call(
        functools.partial(_cascade_kernel, N=N, H=H, W=W, eps=1e-5),
        out_shape=jax.ShapeDtypeStruct((N, LANE), jnp.float32),
        in_specs=[
            pl.BlockSpec(memory_space=pltpu.MemorySpace.VMEM),   # x        (N, HW)
            pl.BlockSpec(memory_space=pltpu.MemorySpace.SMEM),   # scalars  (155,)
            pl.BlockSpec(memory_space=pltpu.MemorySpace.VMEM),   # masks    (9, 1, HW)
            pl.BlockSpec(memory_space=pltpu.MemorySpace.VMEM),   # fc1_w    (HW, 128)
            pl.BlockSpec(memory_space=pltpu.MemorySpace.VMEM),   # fc2_w    (128, 128)
            pl.BlockSpec(memory_space=pltpu.MemorySpace.VMEM),   # fc_b     (2, 128)
        ],
        out_specs=pl.BlockSpec(memory_space=pltpu.MemorySpace.VMEM),
        # Total working set < 1 MiB so no grid is needed.  When scaling N/H/W:
        # add a "parallel" batch grid axis (uses both v7x TensorCores) and tile
        # against VMEM with pltpu.CompilerParams(vmem_limit_bytes=...) —
        # v7x has only 64 MiB VMEM vs 128 MiB on v5e/v6e.
    )(x2d, packed["scalars"], packed["masks"], packed["fc1_w"],
      packed["fc2_w"], packed["fc_b"])
    return out_pad[:, :NCLS]                          # (N, 10)


# ------------------------- parameters & packing ----------------------------- #

def init_params(key, H=16, W=16):
    """Deterministic placeholder parameters in PyTorch layouts."""
    ks = jax.random.split(key, 8)
    p = {}
    # modelA: conv denoiser 1 -> 8 -> 1 channels (3x3, padding=1)
    p["convA1_w"] = 0.1 * jax.random.normal(ks[0], (C1, 1, 3, 3), jnp.float32)
    p["convA1_b"] = 0.1 * jax.random.normal(ks[1], (C1,), jnp.float32)
    p["convA2_w"] = 0.1 * jax.random.normal(ks[2], (1, C1, 3, 3), jnp.float32)
    p["convA2_b"] = 0.1 * jax.random.normal(ks[3], (1,), jnp.float32)
    # bn: BatchNorm2d(1) affine params at nn.BatchNorm2d init values
    p["bn_gamma"] = jnp.ones((1,), jnp.float32)
    p["bn_beta"] = jnp.zeros((1,), jnp.float32)
    # modelB: MLP classifier (H*W -> 32 -> 10)
    feat = H * W
    p["fcB1_w"] = 0.1 * jax.random.normal(ks[4], (HID, feat), jnp.float32)
    p["fcB1_b"] = 0.1 * jax.random.normal(ks[5], (HID,), jnp.float32)
    p["fcB2_w"] = 0.1 * jax.random.normal(ks[6], (NCLS, HID), jnp.float32)
    p["fcB2_b"] = 0.1 * jax.random.normal(ks[7], (NCLS,), jnp.float32)
    return p


def pack_params(params, H, W):
    """One-time re-layout of PyTorch params into kernel-ready buffers."""
    feat = H * W
    # conv weights/biases + bn affine -> one flat SMEM scalar buffer
    scalars = jnp.concatenate([
        params["convA1_w"].reshape(-1),   # (8,1,3,3) -> 72 : co*9 + kh*3 + kw
        params["convA1_b"].reshape(-1),   # 8
        params["convA2_w"].reshape(-1),   # (1,8,3,3) -> 72 : ci*9 + kh*3 + kw
        params["convA2_b"].reshape(-1),   # 1
        params["bn_gamma"].reshape(-1),   # 1
        params["bn_beta"].reshape(-1),    # 1
    ]).astype(jnp.float32)
    assert scalars.shape[0] == _N_SCALARS

    # fc weights pre-transposed to (K, N) matmul layout, zero-padded to 128 lanes
    fc1_w = jnp.zeros((feat, LANE), jnp.float32).at[:, :HID].set(params["fcB1_w"].T)
    fc2_w = jnp.zeros((LANE, LANE), jnp.float32).at[:HID, :NCLS].set(params["fcB2_w"].T)
    fc_b = jnp.zeros((2, LANE), jnp.float32)
    fc_b = fc_b.at[0, :HID].set(params["fcB1_b"])
    fc_b = fc_b.at[1, :NCLS].set(params["fcB2_b"])

    # 0/1 edge masks implementing padding=1 for the 9 conv taps (flat H*W layout)
    hh = jnp.arange(H)[:, None]
    ww = jnp.arange(W)[None, :]
    masks = []
    for dh in (-1, 0, 1):
        for dw in (-1, 0, 1):
            valid = ((hh + dh >= 0) & (hh + dh < H) & (ww + dw >= 0) & (ww + dw < W))
            masks.append(valid.reshape(1, feat).astype(jnp.float32))
    masks = jnp.stack(masks, axis=0)                  # (9, 1, H*W)

    return {"scalars": scalars, "masks": masks,
            "fc1_w": fc1_w, "fc2_w": fc2_w, "fc_b": fc_b}


# --------------------- pure-JAX reference (validation) ---------------------- #

def reference_forward(params, x):
    """Pure-JAX reference with identical (PyTorch) semantics."""
    def conv3x3(h, w, b):
        n, cin, hh, ww = h.shape
        cout = w.shape[0]
        hp = jnp.pad(h, ((0, 0), (0, 0), (1, 1), (1, 1)))
        out = jnp.zeros((n, cout, hh, ww), jnp.float32)
        for kh in range(3):
            for kw in range(3):
                patch = hp[:, :, kh:kh + hh, kw:kw + ww]
                out = out + jnp.einsum("nchw,oc->nohw", patch, w[:, :, kh, kw],
                                       precision=jax.lax.Precision.HIGHEST)
        return out + b.reshape(1, cout, 1, 1)

    h = jnp.maximum(conv3x3(x, params["convA1_w"], params["convA1_b"]), 0.0)
    h = conv3x3(h, params["convA2_w"], params["convA2_b"])
    mean = jnp.mean(h)
    var = jnp.mean((h - mean) ** 2)
    h = (h - mean) * jax.lax.rsqrt(var + 1e-5) * params["bn_gamma"][0] + params["bn_beta"][0]
    f = h.reshape(h.shape[0], -1)
    f = jnp.maximum(jnp.dot(f, params["fcB1_w"].T, precision=jax.lax.Precision.HIGHEST)
                    + params["fcB1_b"], 0.0)
    return (jnp.dot(f, params["fcB2_w"].T, precision=jax.lax.Precision.HIGHEST)
            + params["fcB2_b"])


# ----------------------------------- main ----------------------------------- #

if __name__ == "__main__":
    key = jax.random.PRNGKey(0)
    kx, kp = jax.random.split(key)
    N, H, W = 2, 16, 16
    x = jax.random.normal(kx, (N, 1, H, W), dtype=jnp.float32)

    params = init_params(kp, H=H, W=W)
    packed = pack_params(params, H, W)    # one-time re-layout; no per-forward transposes

    out = jax.jit(cascade_forward)(packed, x)
    jax.block_until_ready(out)
    assert out.shape == (N, NCLS) and out.dtype == jnp.float32

    ref = reference_forward(params, x)
    np.testing.assert_allclose(np.asarray(out), np.asarray(ref), rtol=2e-2, atol=2e-2)
    print("KERNEL_OK")
</pallas_src>

<mosaic_0001>
module attributes {stable_mosaic.version = 11 : i64} {
  func.func @_cascade_kernel(%arg0: memref<2x256xf32, #tpu.memory_space<vmem>>, %arg1: memref<155xf32, #tpu.memory_space<smem>>, %arg2: memref<9x1x256xf32, #tpu.memory_space<vmem>>, %arg3: memref<256x128xf32, #tpu.memory_space<vmem>>, %arg4: memref<128x128xf32, #tpu.memory_space<vmem>>, %arg5: memref<2x128xf32, #tpu.memory_space<vmem>>, %arg6: memref<2x128xf32, #tpu.memory_space<vmem>>) attributes {dimension_semantics = [], scalar_prefetch = 0 : i64, scratch_operands = 0 : i64, tpu.core_type = #tpu.core_type<tc>} {
    %c0 = arith.constant 0 : index
    %c0_0 = arith.constant 0 : index
    %0 = vector.load %arg0[%c0, %c0_0] : memref<2x256xf32, #tpu.memory_space<vmem>>, vector<2x256xf32>
    %c17_i32 = arith.constant 17 : i32
    %1 = tpu.dynamic_rotate %0 by %c17_i32 dim 1 : vector<2x256xf32>, i32 -> vector<2x256xf32>
    %c0_1 = arith.constant 0 : index
    %c0_2 = arith.constant 0 : index
    %c0_3 = arith.constant 0 : index
    %2 = vector.load %arg2[%c0_1, %c0_2, %c0_3] : memref<9x1x256xf32, #tpu.memory_space<vmem>>, vector<1x1x256xf32>
    %3 = vector.shape_cast %2 : vector<1x1x256xf32> to vector<1x256xf32>
    %4 = vector.broadcast %3 : vector<1x256xf32> to vector<2x256xf32>
    %5 = arith.mulf %1, %4 : vector<2x256xf32>
    %c16_i32 = arith.constant 16 : i32
    %6 = tpu.dynamic_rotate %0 by %c16_i32 dim 1 : vector<2x256xf32>, i32 -> vector<2x256xf32>
    %c1 = arith.constant 1 : index
    %c0_4 = arith.constant 0 : index
    %c0_5 = arith.constant 0 : index
    %7 = vector.load %arg2[%c1, %c0_4, %c0_5] : memref<9x1x256xf32, #tpu.memory_space<vmem>>, vector<1x1x256xf32>
    %8 = vector.shape_cast %7 : vector<1x1x256xf32> to vector<1x256xf32>
    %9 = vector.broadcast %8 : vector<1x256xf32> to vector<2x256xf32>
    %10 = arith.mulf %6, %9 : vector<2x256xf32>
    %c15_i32 = arith.constant 15 : i32
    %11 = tpu.dynamic_rotate %0 by %c15_i32 dim 1 : vector<2x256xf32>, i32 -> vector<2x256xf32>
    %c2 = arith.constant 2 : index
    %c0_6 = arith.constant 0 : index
    %c0_7 = arith.constant 0 : index
    %12 = vector.load %arg2[%c2, %c0_6, %c0_7] : memref<9x1x256xf32, #tpu.memory_space<vmem>>, vector<1x1x256xf32>
    %13 = vector.shape_cast %12 : vector<1x1x256xf32> to vector<1x256xf32>
    %14 = vector.broadcast %13 : vector<1x256xf32> to vector<2x256xf32>
    %15 = arith.mulf %11, %14 : vector<2x256xf32>
    %c1_i32 = arith.constant 1 : i32
    %16 = tpu.dynamic_rotate %0 by %c1_i32 dim 1 : vector<2x256xf32>, i32 -> vector<2x256xf32>
    %c3 = arith.constant 3 : index
    %c0_8 = arith.constant 0 : index
    %c0_9 = arith.constant 0 : index
    %17 = vector.load %arg2[%c3, %c0_8, %c0_9] : memref<9x1x256xf32, #tpu.memory_space<vmem>>, vector<1x1x256xf32>
    %18 = vector.shape_cast %17 : vector<1x1x256xf32> to vector<1x256xf32>
    %19 = vector.broadcast %18 : vector<1x256xf32> to vector<2x256xf32>
    %20 = arith.mulf %16, %19 : vector<2x256xf32>
    %c4 = arith.constant 4 : index
    %c0_10 = arith.constant 0 : index
    %c0_11 = arith.constant 0 : index
    %21 = vector.load %arg2[%c4, %c0_10, %c0_11] : memref<9x1x256xf32, #tpu.memory_space<vmem>>, vector<1x1x256xf32>
    %22 = vector.shape_cast %21 : vector<1x1x256xf32> to vector<1x256xf32>
    %23 = vector.broadcast %22 : vector<1x256xf32> to vector<2x256xf32>
    %24 = arith.mulf %0, %23 : vector<2x256xf32>
    %c255_i32 = arith.constant 255 : i32
    %25 = tpu.dynamic_rotate %0 by %c255_i32 dim 1 : vector<2x256xf32>, i32 -> vector<2x256xf32>
    %c5 = arith.constant 5 : index
    %c0_12 = arith.constant 0 : index
    %c0_13 = arith.constant 0 : index
    %26 = vector.load %arg2[%c5, %c0_12, %c0_13] : memref<9x1x256xf32, #tpu.memory_space<vmem>>, vector<1x1x256xf32>
    %27 = vector.shape_cast %26 : vector<1x1x256xf32> to vector<1x256xf32>
    %28 = vector.broadcast %27 : vector<1x256xf32> to vector<2x256xf32>
    %29 = arith.mulf %25, %28 : vector<2x256xf32>
    %c241_i32 = arith.constant 241 : i32
    %30 = tpu.dynamic_rotate %0 by %c241_i32 dim 1 : vector<2x256xf32>, i32 -> vector<2x256xf32>
    %c6 = arith.constant 6 : index
    %c0_14 = arith.constant 0 : index
    %c0_15 = arith.constant 0 : index
    %31 = vector.load %arg2[%c6, %c0_14, %c0_15] : memref<9x1x256xf32, #tpu.memory_space<vmem>>, vector<1x1x256xf32>
    %32 = vector.shape_cast %31 : vector<1x1x256xf32> to vector<1x256xf32>
    %33 = vector.broadcast %32 : vector<1x256xf32> to vector<2x256xf32>
    %34 = arith.mulf %30, %33 : vector<2x256xf32>
    %c240_i32 = arith.constant 240 : i32
    %35 = tpu.dynamic_rotate %0 by %c240_i32 dim 1 : vector<2x256xf32>, i32 -> vector<2x256xf32>
    %c7 = arith.constant 7 : index
    %c0_16 = arith.constant 0 : index
    %c0_17 = arith.constant 0 : index
    %36 = vector.load %arg2[%c7, %c0_16, %c0_17] : memref<9x1x256xf32, #tpu.memory_space<vmem>>, vector<1x1x256xf32>
    %37 = vector.shape_cast %36 : vector<1x1x256xf32> to vector<1x256xf32>
    %38 = vector.broadcast %37 : vector<1x256xf32> to vector<2x256xf32>
    %39 = arith.mulf %35, %38 : vector<2x256xf32>
    %c239_i32 = arith.constant 239 : i32
    %40 = tpu.dynamic_rotate %0 by %c239_i32 dim 1 : vector<2x256xf32>, i32 -> vector<2x256xf32>
    %c8 = arith.constant 8 : index
    %c0_18 = arith.constant 0 : index
    %c0_19 = arith.constant 0 : index
    %41 = vector.load %arg2[%c8, %c0_18, %c0_19] : memref<9x1x256xf32, #tpu.memory_space<vmem>>, vector<1x1x256xf32>
    %42 = vector.shape_cast %41 : vector<1x1x256xf32> to vector<1x256xf32>
    %43 = vector.broadcast %42 : vector<1x256xf32> to vector<2x256xf32>
    %44 = arith.mulf %40, %43 : vector<2x256xf32>
    %c0_20 = arith.constant 0 : index
    %45 = memref.load %arg1[%c0_20] : memref<155xf32, #tpu.memory_space<smem>>
    %46 = vector.broadcast %45 : f32 to vector<2x256xf32>
    %47 = arith.mulf %46, %5 : vector<2x256xf32>
    %c1_21 = arith.constant 1 : index
    %48 = memref.load %arg1[%c1_21] : memref<155xf32, #tpu.memory_space<smem>>
    %49 = vector.broadcast %48 : f32 to vector<2x256xf32>
    %50 = arith.mulf %49, %10 : vector<2x256xf32>
    %51 = arith.addf %47, %50 : vector<2x256xf32>
    %c2_22 = arith.constant 2 : index
    %52 = memref.load %arg1[%c2_22] : memref<155xf32, #tpu.memory_space<smem>>
    %53 = vector.broadcast %52 : f32 to vector<2x256xf32>
    %54 = arith.mulf %53, %15 : vector<2x256xf32>
    %55 = arith.addf %51, %54 : vector<2x256xf32>
    %c3_23 = arith.constant 3 : index
    %56 = memref.load %arg1[%c3_23] : memref<155xf32, #tpu.memory_space<smem>>
    %57 = vector.broadcast %56 : f32 to vector<2x256xf32>
    %58 = arith.mulf %57, %20 : vector<2x256xf32>
    %59 = arith.addf %55, %58 : vector<2x256xf32>
    %c4_24 = arith.constant 4 : index
    %60 = memref.load %arg1[%c4_24] : memref<155xf32, #tpu.memory_space<smem>>
    %61 = vector.broadcast %60 : f32 to vector<2x256xf32>
    %62 = arith.mulf %61, %24 : vector<2x256xf32>
    %63 = arith.addf %59, %62 : vector<2x256xf32>
    %c5_25 = arith.constant 5 : index
    %64 = memref.load %arg1[%c5_25] : memref<155xf32, #tpu.memory_space<smem>>
    %65 = vector.broadcast %64 : f32 to vector<2x256xf32>
    %66 = arith.mulf %65, %29 : vector<2x256xf32>
    %67 = arith.addf %63, %66 : vector<2x256xf32>
    %c6_26 = arith.constant 6 : index
    %68 = memref.load %arg1[%c6_26] : memref<155xf32, #tpu.memory_space<smem>>
    %69 = vector.broadcast %68 : f32 to vector<2x256xf32>
    %70 = arith.mulf %69, %34 : vector<2x256xf32>
    %71 = arith.addf %67, %70 : vector<2x256xf32>
    %c7_27 = arith.constant 7 : index
    %72 = memref.load %arg1[%c7_27] : memref<155xf32, #tpu.memory_space<smem>>
    %73 = vector.broadcast %72 : f32 to vector<2x256xf32>
    %74 = arith.mulf %73, %39 : vector<2x256xf32>
    %75 = arith.addf %71, %74 : vector<2x256xf32>
    %c8_28 = arith.constant 8 : index
    %76 = memref.load %arg1[%c8_28] : memref<155xf32, #tpu.memory_space<smem>>
    %77 = vector.broadcast %76 : f32 to vector<2x256xf32>
    %78 = arith.mulf %77, %44 : vector<2x256xf32>
    %79 = arith.addf %75, %78 : vector<2x256xf32>
    %c72 = arith.constant 72 : index
    %80 = memref.load %arg1[%c72] : memref<155xf32, #tpu.memory_space<smem>>
    %81 = vector.broadcast %80 : f32 to vector<2x256xf32>
    %82 = arith.addf %79, %81 : vector<2x256xf32>
    %cst = arith.constant 0.000000e+00 : f32
    %83 = vector.broadcast %cst : f32 to vector<2x256xf32>
    %84 = arith.maximumf %82, %83 : vector<2x256xf32>
    %c9 = arith.constant 9 : index
    %85 = memref.load %arg1[%c9] : memref<155xf32, #tpu.memory_space<smem>>
    %86 = vector.broadcast %85 : f32 to vector<2x256xf32>
    %87 = arith.mulf %86, %5 : vector<2x256xf32>
    %c10 = arith.constant 10 : index
    %88 = memref.load %arg1[%c10] : memref<155xf32, #tpu.memory_space<smem>>
    %89 = vector.broadcast %88 : f32 to vector<2x256xf32>
    %90 = arith.mulf %89, %10 : vector<2x256xf32>
    %91 = arith.addf %87, %90 : vector<2x256xf32>
    %c11 = arith.constant 11 : index
    %92 = memref.load %arg1[%c11] : memref<155xf32, #tpu.memory_space<smem>>
    %93 = vector.broadcast %92 : f32 to vector<2x256xf32>
    %94 = arith.mulf %93, %15 : vector<2x256xf32>
    %95 = arith.addf %91, %94 : vector<2x256xf32>
    %c12 = arith.constant 12 : index
    %96 = memref.load %arg1[%c12] : memref<155xf32, #tpu.memory_space<smem>>
    %97 = vector.broadcast %96 : f32 to vector<2x256xf32>
    %98 = arith.mulf %97, %20 : vector<2x256xf32>
    %99 = arith.addf %95, %98 : vector<2x256xf32>
    %c13 = arith.constant 13 : index
    %100 = memref.load %arg1[%c13] : memref<155xf32, #tpu.memory_space<smem>>
    %101 = vector.broadcast %100 : f32 to vector<2x256xf32>
    %102 = arith.mulf %101, %24 : vector<2x256xf32>
    %103 = arith.addf %99, %102 : vector<2x256xf32>
    %c14 = arith.constant 14 : index
    %104 = memref.load %arg1[%c14] : memref<155xf32, #tpu.memory_space<smem>>
    %105 = vector.broadcast %104 : f32 to vector<2x256xf32>
    %106 = arith.mulf %105, %29 : vector<2x256xf32>
    %107 = arith.addf %103, %106 : vector<2x256xf32>
    %c15 = arith.constant 15 : index
    %108 = memref.load %arg1[%c15] : memref<155xf32, #tpu.memory_space<smem>>
    %109 = vector.broadcast %108 : f32 to vector<2x256xf32>
    %110 = arith.mulf %109, %34 : vector<2x256xf32>
    %111 = arith.addf %107, %110 : vector<2x256xf32>
    %c16 = arith.constant 16 : index
    %112 = memref.load %arg1[%c16] : memref<155xf32, #tpu.memory_space<smem>>
    %113 = vector.broadcast %112 : f32 to vector<2x256xf32>
    %114 = arith.mulf %113, %39 : vector<2x256xf32>
    %115 = arith.addf %111, %114 : vector<2x256xf32>
    %c17 = arith.constant 17 : index
    %116 = memref.load %arg1[%c17] : memref<155xf32, #tpu.memory_space<smem>>
    %117 = vector.broadcast %116 : f32 to vector<2x256xf32>
    %118 = arith.mulf %117, %44 : vector<2x256xf32>
    %119 = arith.addf %115, %118 : vector<2x256xf32>
    %c73 = arith.constant 73 : index
    %120 = memref.load %arg1[%c73] : memref<155xf32, #tpu.memory_space<smem>>
    %121 = vector.broadcast %120 : f32 to vector<2x256xf32>
    %122 = arith.addf %119, %121 : vector<2x256xf32>
    %cst_29 = arith.constant 0.000000e+00 : f32
    %123 = vector.broadcast %cst_29 : f32 to vector<2x256xf32>
    %124 = arith.maximumf %122, %123 : vector<2x256xf32>
    %c18 = arith.constant 18 : index
    %125 = memref.load %arg1[%c18] : memref<155xf32, #tpu.memory_space<smem>>
    %126 = vector.broadcast %125 : f32 to vector<2x256xf32>
    %127 = arith.mulf %126, %5 : vector<2x256xf32>
    %c19 = arith.constant 19 : index
    %128 = memref.load %arg1[%c19] : memref<155xf32, #tpu.memory_space<smem>>
    %129 = vector.broadcast %128 : f32 to vector<2x256xf32>
    %130 = arith.mulf %129, %10 : vector<2x256xf32>
    %131 = arith.addf %127, %130 : vector<2x256xf32>
    %c20 = arith.constant 20 : index
    %132 = memref.load %arg1[%c20] : memref<155xf32, #tpu.memory_space<smem>>
    %133 = vector.broadcast %132 : f32 to vector<2x256xf32>
    %134 = arith.mulf %133, %15 : vector<2x256xf32>
    %135 = arith.addf %131, %134 : vector<2x256xf32>
    %c21 = arith.constant 21 : index
    %136 = memref.load %arg1[%c21] : memref<155xf32, #tpu.memory_space<smem>>
    %137 = vector.broadcast %136 : f32 to vector<2x256xf32>
    %138 = arith.mulf %137, %20 : vector<2x256xf32>
    %139 = arith.addf %135, %138 : vector<2x256xf32>
    %c22 = arith.constant 22 : index
    %140 = memref.load %arg1[%c22] : memref<155xf32, #tpu.memory_space<smem>>
    %141 = vector.broadcast %140 : f32 to vector<2x256xf32>
    %142 = arith.mulf %141, %24 : vector<2x256xf32>
    %143 = arith.addf %139, %142 : vector<2x256xf32>
    %c23 = arith.constant 23 : index
    %144 = memref.load %arg1[%c23] : memref<155xf32, #tpu.memory_space<smem>>
    %145 = vector.broadcast %144 : f32 to vector<2x256xf32>
    %146 = arith.mulf %145, %29 : vector<2x256xf32>
    %147 = arith.addf %143, %146 : vector<2x256xf32>
    %c24 = arith.constant 24 : index
    %148 = memref.load %arg1[%c24] : memref<155xf32, #tpu.memory_space<smem>>
    %149 = vector.broadcast %148 : f32 to vector<2x256xf32>
    %150 = arith.mulf %149, %34 : vector<2x256xf32>
    %151 = arith.addf %147, %150 : vector<2x256xf32>
    %c25 = arith.constant 25 : index
    %152 = memref.load %arg1[%c25] : memref<155xf32, #tpu.memory_space<smem>>
    %153 = vector.broadcast %152 : f32 to vector<2x256xf32>
    %154 = arith.mulf %153, %39 : vector<2x256xf32>
    %155 = arith.addf %151, %154 : vector<2x256xf32>
    %c26 = arith.constant 26 : index
    %156 = memref.load %arg1[%c26] : memref<155xf32, #tpu.memory_space<smem>>
    %157 = vector.broadcast %156 : f32 to vector<2x256xf32>
    %158 = arith.mulf %157, %44 : vector<2x256xf32>
    %159 = arith.addf %155, %158 : vector<2x256xf32>
    %c74 = arith.constant 74 : index
    %160 = memref.load %arg1[%c74] : memref<155xf32, #tpu.memory_space<smem>>
    %161 = vector.broadcast %160 : f32 to vector<2x256xf32>
    %162 = arith.addf %159, %161 : vector<2x256xf32>
    %cst_30 = arith.constant 0.000000e+00 : f32
    %163 = vector.broadcast %cst_30 : f32 to vector<2x256xf32>
    %164 = arith.maximumf %162, %163 : vector<2x256xf32>
    %c27 = arith.constant 27 : index
    %165 = memref.load %arg1[%c27] : memref<155xf32, #tpu.memory_space<smem>>
    %166 = vector.broadcast %165 : f32 to vector<2x256xf32>
    %167 = arith.mulf %166, %5 : vector<2x256xf32>
    %c28 = arith.constant 28 : index
    %168 = memref.load %arg1[%c28] : memref<155xf32, #tpu.memory_space<smem>>
    %169 = vector.broadcast %168 : f32 to vector<2x256xf32>
    %170 = arith.mulf %169, %10 : vector<2x256xf32>
    %171 = arith.addf %167, %170 : vector<2x256xf32>
    %c29 = arith.constant 29 : index
    %172 = memref.load %arg1[%c29] : memref<155xf32, #tpu.memory_space<smem>>
    %173 = vector.broadcast %172 : f32 to vector<2x256xf32>
    %174 = arith.mulf %173, %15 : vector<2x256xf32>
    %175 = arith.addf %171, %174 : vector<2x256xf32>
    %c30 = arith.constant 30 : index
    %176 = memref.load %arg1[%c30] : memref<155xf32, #tpu.memory_space<smem>>
    %177 = vector.broadcast %176 : f32 to vector<2x256xf32>
    %178 = arith.mulf %177, %20 : vector<2x256xf32>
    %179 = arith.addf %175, %178 : vector<2x256xf32>
    %c31 = arith.constant 31 : index
    %180 = memref.load %arg1[%c31] : memref<155xf32, #tpu.memory_space<smem>>
    %181 = vector.broadcast %180 : f32 to vector<2x256xf32>
    %182 = arith.mulf %181, %24 : vector<2x256xf32>
    %183 = arith.addf %179, %182 : vector<2x256xf32>
    %c32 = arith.constant 32 : index
    %184 = memref.load %arg1[%c32] : memref<155xf32, #tpu.memory_space<smem>>
    %185 = vector.broadcast %184 : f32 to vector<2x256xf32>
    %186 = arith.mulf %185, %29 : vector<2x256xf32>
    %187 = arith.addf %183, %186 : vector<2x256xf32>
    %c33 = arith.constant 33 : index
    %188 = memref.load %arg1[%c33] : memref<155xf32, #tpu.memory_space<smem>>
    %189 = vector.broadcast %188 : f32 to vector<2x256xf32>
    %190 = arith.mulf %189, %34 : vector<2x256xf32>
    %191 = arith.addf %187, %190 : vector<2x256xf32>
    %c34 = arith.constant 34 : index
    %192 = memref.load %arg1[%c34] : memref<155xf32, #tpu.memory_space<smem>>
    %193 = vector.broadcast %192 : f32 to vector<2x256xf32>
    %194 = arith.mulf %193, %39 : vector<2x256xf32>
    %195 = arith.addf %191, %194 : vector<2x256xf32>
    %c35 = arith.constant 35 : index
    %196 = memref.load %arg1[%c35] : memref<155xf32, #tpu.memory_space<smem>>
    %197 = vector.broadcast %196 : f32 to vector<2x256xf32>
    %198 = arith.mulf %197, %44 : vector<2x256xf32>
    %199 = arith.addf %195, %198 : vector<2x256xf32>
    %c75 = arith.constant 75 : index
    %200 = memref.load %arg1[%c75] : memref<155xf32, #tpu.memory_space<smem>>
    %201 = vector.broadcast %200 : f32 to vector<2x256xf32>
    %202 = arith.addf %199, %201 : vector<2x256xf32>
    %cst_31 = arith.constant 0.000000e+00 : f32
    %203 = vector.broadcast %cst_31 : f32 to vector<2x256xf32>
    %204 = arith.maximumf %202, %203 : vector<2x256xf32>
    %c36 = arith.constant 36 : index
    %205 = memref.load %arg1[%c36] : memref<155xf32, #tpu.memory_space<smem>>
    %206 = vector.broadcast %205 : f32 to vector<2x256xf32>
    %207 = arith.mulf %206, %5 : vector<2x256xf32>
    %c37 = arith.constant 37 : index
    %208 = memref.load %arg1[%c37] : memref<155xf32, #tpu.memory_space<smem>>
    %209 = vector.broadcast %208 : f32 to vector<2x256xf32>
    %210 = arith.mulf %209, %10 : vector<2x256xf32>
    %211 = arith.addf %207, %210 : vector<2x256xf32>
    %c38 = arith.constant 38 : index
    %212 = memref.load %arg1[%c38] : memref<155xf32, #tpu.memory_space<smem>>
    %213 = vector.broadcast %212 : f32 to vector<2x256xf32>
    %214 = arith.mulf %213, %15 : vector<2x256xf32>
    %215 = arith.addf %211, %214 : vector<2x256xf32>
    %c39 = arith.constant 39 : index
    %216 = memref.load %arg1[%c39] : memref<155xf32, #tpu.memory_space<smem>>
    %217 = vector.broadcast %216 : f32 to vector<2x256xf32>
    %218 = arith.mulf %217, %20 : vector<2x256xf32>
    %219 = arith.addf %215, %218 : vector<2x256xf32>
    %c40 = arith.constant 40 : index
    %220 = memref.load %arg1[%c40] : memref<155xf32, #tpu.memory_space<smem>>
    %221 = vector.broadcast %220 : f32 to vector<2x256xf32>
    %222 = arith.mulf %221, %24 : vector<2x256xf32>
    %223 = arith.addf %219, %222 : vector<2x256xf32>
    %c41 = arith.constant 41 : index
    %224 = memref.load %arg1[%c41] : memref<155xf32, #tpu.memory_space<smem>>
    %225 = vector.broadcast %224 : f32 to vector<2x256xf32>
    %226 = arith.mulf %225, %29 : vector<2x256xf32>
    %227 = arith.addf %223, %226 : vector<2x256xf32>
    %c42 = arith.constant 42 : index
    %228 = memref.load %arg1[%c42] : memref<155xf32, #tpu.memory_space<smem>>
    %229 = vector.broadcast %228 : f32 to vector<2x256xf32>
    %230 = arith.mulf %229, %34 : vector<2x256xf32>
    %231 = arith.addf %227, %230 : vector<2x256xf32>
    %c43 = arith.constant 43 : index
    %232 = memref.load %arg1[%c43] : memref<155xf32, #tpu.memory_space<smem>>
    %233 = vector.broadcast %232 : f32 to vector<2x256xf32>
    %234 = arith.mulf %233, %39 : vector<2x256xf32>
    %235 = arith.addf %231, %234 : vector<2x256xf32>
    %c44 = arith.constant 44 : index
    %236 = memref.load %arg1[%c44] : memref<155xf32, #tpu.memory_space<smem>>
    %237 = vector.broadcast %236 : f32 to vector<2x256xf32>
    %238 = arith.mulf %237, %44 : vector<2x256xf32>
    %239 = arith.addf %235, %238 : vector<2x256xf32>
    %c76 = arith.constant 76 : index
    %240 = memref.load %arg1[%c76] : memref<155xf32, #tpu.memory_space<smem>>
    %241 = vector.broadcast %240 : f32 to vector<2x256xf32>
    %242 = arith.addf %239, %241 : vector<2x256xf32>
    %cst_32 = arith.constant 0.000000e+00 : f32
    %243 = vector.broadcast %cst_32 : f32 to vector<2x256xf32>
    %244 = arith.maximumf %242, %243 : vector<2x256xf32>
    %c45 = arith.constant 45 : index
    %245 = memref.load %arg1[%c45] : memref<155xf32, #tpu.memory_space<smem>>
    %246 = vector.broadcast %245 : f32 to vector<2x256xf32>
    %247 = arith.mulf %246, %5 : vector<2x256xf32>
    %c46 = arith.constant 46 : index
    %248 = memref.load %arg1[%c46] : memref<155xf32, #tpu.memory_space<smem>>
    %249 = vector.broadcast %248 : f32 to vector<2x256xf32>
    %250 = arith.mulf %249, %10 : vector<2x256xf32>
    %251 = arith.addf %247, %250 : vector<2x256xf32>
    %c47 = arith.constant 47 : index
    %252 = memref.load %arg1[%c47] : memref<155xf32, #tpu.memory_space<smem>>
    %253 = vector.broadcast %252 : f32 to vector<2x256xf32>
    %254 = arith.mulf %253, %15 : vector<2x256xf32>
    %255 = arith.addf %251, %254 : vector<2x256xf32>
    %c48 = arith.constant 48 : index
    %256 = memref.load %arg1[%c48] : memref<155xf32, #tpu.memory_space<smem>>
    %257 = vector.broadcast %256 : f32 to vector<2x256xf32>
    %258 = arith.mulf %257, %20 : vector<2x256xf32>
    %259 = arith.addf %255, %258 : vector<2x256xf32>
    %c49 = arith.constant 49 : index
    %260 = memref.load %arg1[%c49] : memref<155xf32, #tpu.memory_space<smem>>
    %261 = vector.broadcast %260 : f32 to vector<2x256xf32>
    %262 = arith.mulf %261, %24 : vector<2x256xf32>
    %263 = arith.addf %259, %262 : vector<2x256xf32>
    %c50 = arith.constant 50 : index
    %264 = memref.load %arg1[%c50] : memref<155xf32, #tpu.memory_space<smem>>
    %265 = vector.broadcast %264 : f32 to vector<2x256xf32>
    %266 = arith.mulf %265, %29 : vector<2x256xf32>
    %267 = arith.addf %263, %266 : vector<2x256xf32>
    %c51 = arith.constant 51 : index
    %268 = memref.load %arg1[%c51] : memref<155xf32, #tpu.memory_space<smem>>
    %269 = vector.broadcast %268 : f32 to vector<2x256xf32>
    %270 = arith.mulf %269, %34 : vector<2x256xf32>
    %271 = arith.addf %267, %270 : vector<2x256xf32>
    %c52 = arith.constant 52 : index
    %272 = memref.load %arg1[%c52] : memref<155xf32, #tpu.memory_space<smem>>
    %273 = vector.broadcast %272 : f32 to vector<2x256xf32>
    %274 = arith.mulf %273, %39 : vector<2x256xf32>
    %275 = arith.addf %271, %274 : vector<2x256xf32>
    %c53 = arith.constant 53 : index
    %276 = memref.load %arg1[%c53] : memref<155xf32, #tpu.memory_space<smem>>
    %277 = vector.broadcast %276 : f32 to vector<2x256xf32>
    %278 = arith.mulf %277, %44 : vector<2x256xf32>
    %279 = arith.addf %275, %278 : vector<2x256xf32>
    %c77 = arith.constant 77 : index
    %280 = memref.load %arg1[%c77] : memref<155xf32, #tpu.memory_space<smem>>
    %281 = vector.broadcast %280 : f32 to vector<2x256xf32>
    %282 = arith.addf %279, %281 : vector<2x256xf32>
    %cst_33 = arith.constant 0.000000e+00 : f32
    %283 = vector.broadcast %cst_33 : f32 to vector<2x256xf32>
    %284 = arith.maximumf %282, %283 : vector<2x256xf32>
    %c54 = arith.constant 54 : index
    %285 = memref.load %arg1[%c54] : memref<155xf32, #tpu.memory_space<smem>>
    %286 = vector.broadcast %285 : f32 to vector<2x256xf32>
    %287 = arith.mulf %286, %5 : vector<2x256xf32>
    %c55 = arith.constant 55 : index
    %288 = memref.load %arg1[%c55] : memref<155xf32, #tpu.memory_space<smem>>
    %289 = vector.broadcast %288 : f32 to vector<2x256xf32>
    %290 = arith.mulf %289, %10 : vector<2x256xf32>
    %291 = arith.addf %287, %290 : vector<2x256xf32>
    %c56 = arith.constant 56 : index
    %292 = memref.load %arg1[%c56] : memref<155xf32, #tpu.memory_space<smem>>
    %293 = vector.broadcast %292 : f32 to vector<2x256xf32>
    %294 = arith.mulf %293, %15 : vector<2x256xf32>
    %295 = arith.addf %291, %294 : vector<2x256xf32>
    %c57 = arith.constant 57 : index
    %296 = memref.load %arg1[%c57] : memref<155xf32, #tpu.memory_space<smem>>
    %297 = vector.broadcast %296 : f32 to vector<2x256xf32>
    %298 = arith.mulf %297, %20 : vector<2x256xf32>
    %299 = arith.addf %295, %298 : vector<2x256xf32>
    %c58 = arith.constant 58 : index
    %300 = memref.load %arg1[%c58] : memref<155xf32, #tpu.memory_space<smem>>
    %301 = vector.broadcast %300 : f32 to vector<2x256xf32>
    %302 = arith.mulf %301, %24 : vector<2x256xf32>
    %303 = arith.addf %299, %302 : vector<2x256xf32>
    %c59 = arith.constant 59 : index
    %304 = memref.load %arg1[%c59] : memref<155xf32, #tpu.memory_space<smem>>
    %305 = vector.broadcast %304 : f32 to vector<2x256xf32>
    %306 = arith.mulf %305, %29 : vector<2x256xf32>
    %307 = arith.addf %303, %306 : vector<2x256xf32>
    %c60 = arith.constant 60 : index
    %308 = memref.load %arg1[%c60] : memref<155xf32, #tpu.memory_space<smem>>
    %309 = vector.broadcast %308 : f32 to vector<2x256xf32>
    %310 = arith.mulf %309, %34 : vector<2x256xf32>
    %311 = arith.addf %307, %310 : vector<2x256xf32>
    %c61 = arith.constant 61 : index
    %312 = memref.load %arg1[%c61] : memref<155xf32, #tpu.memory_space<smem>>
    %313 = vector.broadcast %312 : f32 to vector<2x256xf32>
    %314 = arith.mulf %313, %39 : vector<2x256xf32>
    %315 = arith.addf %311, %314 : vector<2x256xf32>
    %c62 = arith.constant 62 : index
    %316 = memref.load %arg1[%c62] : memref<155xf32, #tpu.memory_space<smem>>
    %317 = vector.broadcast %316 : f32 to vector<2x256xf32>
    %318 = arith.mulf %317, %44 : vector<2x256xf32>
    %319 = arith.addf %315, %318 : vector<2x256xf32>
    %c78 = arith.constant 78 : index
    %320 = memref.load %arg1[%c78] : memref<155xf32, #tpu.memory_space<smem>>
    %321 = vector.broadcast %320 : f32 to vector<2x256xf32>
    %322 = arith.addf %319, %321 : vector<2x256xf32>
    %cst_34 = arith.constant 0.000000e+00 : f32
    %323 = vector.broadcast %cst_34 : f32 to vector<2x256xf32>
    %324 = arith.maximumf %322, %323 : vector<2x256xf32>
    %c63 = arith.constant 63 : index
    %325 = memref.load %arg1[%c63] : memref<155xf32, #tpu.memory_space<smem>>
    %326 = vector.broadcast %325 : f32 to vector<2x256xf32>
    %327 = arith.mulf %326, %5 : vector<2x256xf32>
    %c64 = arith.constant 64 : index
    %328 = memref.load %arg1[%c64] : memref<155xf32, #tpu.memory_space<smem>>
    %329 = vector.broadcast %328 : f32 to vector<2x256xf32>
    %330 = arith.mulf %329, %10 : vector<2x256xf32>
    %331 = arith.addf %327, %330 : vector<2x256xf32>
    %c65 = arith.constant 65 : index
    %332 = memref.load %arg1[%c65] : memref<155xf32, #tpu.memory_space<smem>>
    %333 = vector.broadcast %332 : f32 to vector<2x256xf32>
    %334 = arith.mulf %333, %15 : vector<2x256xf32>
    %335 = arith.addf %331, %334 : vector<2x256xf32>
    %c66 = arith.constant 66 : index
    %336 = memref.load %arg1[%c66] : memref<155xf32, #tpu.memory_space<smem>>
    %337 = vector.broadcast %336 : f32 to vector<2x256xf32>
    %338 = arith.mulf %337, %20 : vector<2x256xf32>
    %339 = arith.addf %335, %338 : vector<2x256xf32>
    %c67 = arith.constant 67 : index
    %340 = memref.load %arg1[%c67] : memref<155xf32, #tpu.memory_space<smem>>
    %341 = vector.broadcast %340 : f32 to vector<2x256xf32>
    %342 = arith.mulf %341, %24 : vector<2x256xf32>
    %343 = arith.addf %339, %342 : vector<2x256xf32>
    %c68 = arith.constant 68 : index
    %344 = memref.load %arg1[%c68] : memref<155xf32, #tpu.memory_space<smem>>
    %345 = vector.broadcast %344 : f32 to vector<2x256xf32>
    %346 = arith.mulf %345, %29 : vector<2x256xf32>
    %347 = arith.addf %343, %346 : vector<2x256xf32>
    %c69 = arith.constant 69 : index
    %348 = memref.load %arg1[%c69] : memref<155xf32, #tpu.memory_space<smem>>
    %349 = vector.broadcast %348 : f32 to vector<2x256xf32>
    %350 = arith.mulf %349, %34 : vector<2x256xf32>
    %351 = arith.addf %347, %350 : vector<2x256xf32>
    %c70 = arith.constant 70 : index
    %352 = memref.load %arg1[%c70] : memref<155xf32, #tpu.memory_space<smem>>
    %353 = vector.broadcast %352 : f32 to vector<2x256xf32>
    %354 = arith.mulf %353, %39 : vector<2x256xf32>
    %355 = arith.addf %351, %354 : vector<2x256xf32>
    %c71 = arith.constant 71 : index
    %356 = memref.load %arg1[%c71] : memref<155xf32, #tpu.memory_space<smem>>
    %357 = vector.broadcast %356 : f32 to vector<2x256xf32>
    %358 = arith.mulf %357, %44 : vector<2x256xf32>
    %359 = arith.addf %355, %358 : vector<2x256xf32>
    %c79 = arith.constant 79 : index
    %360 = memref.load %arg1[%c79] : memref<155xf32, #tpu.memory_space<smem>>
    %361 = vector.broadcast %360 : f32 to vector<2x256xf32>
    %362 = arith.addf %359, %361 : vector<2x256xf32>
    %cst_35 = arith.constant 0.000000e+00 : f32
    %363 = vector.broadcast %cst_35 : f32 to vector<2x256xf32>
    %364 = arith.maximumf %362, %363 : vector<2x256xf32>
    %c80 = arith.constant 80 : index
    %365 = memref.load %arg1[%c80] : memref<155xf32, #tpu.memory_space<smem>>
    %366 = vector.broadcast %365 : f32 to vector<2x256xf32>
    %367 = arith.mulf %366, %84 : vector<2x256xf32>
    %c89 = arith.constant 89 : index
    %368 = memref.load %arg1[%c89] : memref<155xf32, #tpu.memory_space<smem>>
    %369 = vector.broadcast %368 : f32 to vector<2x256xf32>
    %370 = arith.mulf %369, %124 : vector<2x256xf32>
    %371 = arith.addf %367, %370 : vector<2x256xf32>
    %c98 = arith.constant 98 : index
    %372 = memref.load %arg1[%c98] : memref<155xf32, #tpu.memory_space<smem>>
    %373 = vector.broadcast %372 : f32 to vector<2x256xf32>
    %374 = arith.mulf %373, %164 : vector<2x256xf32>
    %375 = arith.addf %371, %374 : vector<2x256xf32>
    %c107 = arith.constant 107 : index
    %376 = memref.load %arg1[%c107] : memref<155xf32, #tpu.memory_space<smem>>
    %377 = vector.broadcast %376 : f32 to vector<2x256xf32>
    %378 = arith.mulf %377, %204 : vector<2x256xf32>
    %379 = arith.addf %375, %378 : vector<2x256xf32>
    %c116 = arith.constant 116 : index
    %380 = memref.load %arg1[%c116] : memref<155xf32, #tpu.memory_space<smem>>
    %381 = vector.broadcast %380 : f32 to vector<2x256xf32>
    %382 = arith.mulf %381, %244 : vector<2x256xf32>
    %383 = arith.addf %379, %382 : vector<2x256xf32>
    %c125 = arith.constant 125 : index
    %384 = memref.load %arg1[%c125] : memref<155xf32, #tpu.memory_space<smem>>
    %385 = vector.broadcast %384 : f32 to vector<2x256xf32>
    %386 = arith.mulf %385, %284 : vector<2x256xf32>
    %387 = arith.addf %383, %386 : vector<2x256xf32>
    %c134 = arith.constant 134 : index
    %388 = memref.load %arg1[%c134] : memref<155xf32, #tpu.memory_space<smem>>
    %389 = vector.broadcast %388 : f32 to vector<2x256xf32>
    %390 = arith.mulf %389, %324 : vector<2x256xf32>
    %391 = arith.addf %387, %390 : vector<2x256xf32>
    %c143 = arith.constant 143 : index
    %392 = memref.load %arg1[%c143] : memref<155xf32, #tpu.memory_space<smem>>
    %393 = vector.broadcast %392 : f32 to vector<2x256xf32>
    %394 = arith.mulf %393, %364 : vector<2x256xf32>
    %395 = arith.addf %391, %394 : vector<2x256xf32>
    %c17_i32_36 = arith.constant 17 : i32
    %396 = tpu.dynamic_rotate %395 by %c17_i32_36 dim 1 : vector<2x256xf32>, i32 -> vector<2x256xf32>
    %c0_37 = arith.constant 0 : index
    %c0_38 = arith.constant 0 : index
    %c0_39 = arith.constant 0 : index
    %397 = vector.load %arg2[%c0_37, %c0_38, %c0_39] : memref<9x1x256xf32, #tpu.memory_space<vmem>>, vector<1x1x256xf32>
    %398 = vector.shape_cast %397 : vector<1x1x256xf32> to vector<1x256xf32>
    %399 = vector.broadcast %398 : vector<1x256xf32> to vector<2x256xf32>
    %400 = arith.mulf %396, %399 : vector<2x256xf32>
    %c81 = arith.constant 81 : index
    %401 = memref.load %arg1[%c81] : memref<155xf32, #tpu.memory_space<smem>>
    %402 = vector.broadcast %401 : f32 to vector<2x256xf32>
    %403 = arith.mulf %402, %84 : vector<2x256xf32>
    %c90 = arith.constant 90 : index
    %404 = memref.load %arg1[%c90] : memref<155xf32, #tpu.memory_space<smem>>
    %405 = vector.broadcast %404 : f32 to vector<2x256xf32>
    %406 = arith.mulf %405, %124 : vector<2x256xf32>
    %407 = arith.addf %403, %406 : vector<2x256xf32>
    %c99 = arith.constant 99 : index
    %408 = memref.load %arg1[%c99] : memref<155xf32, #tpu.memory_space<smem>>
    %409 = vector.broadcast %408 : f32 to vector<2x256xf32>
    %410 = arith.mulf %409, %164 : vector<2x256xf32>
    %411 = arith.addf %407, %410 : vector<2x256xf32>
    %c108 = arith.constant 108 : index
    %412 = memref.load %arg1[%c108] : memref<155xf32, #tpu.memory_space<smem>>
    %413 = vector.broadcast %412 : f32 to vector<2x256xf32>
    %414 = arith.mulf %413, %204 : vector<2x256xf32>
    %415 = arith.addf %411, %414 : vector<2x256xf32>
    %c117 = arith.constant 117 : index
    %416 = memref.load %arg1[%c117] : memref<155xf32, #tpu.memory_space<smem>>
    %417 = vector.broadcast %416 : f32 to vector<2x256xf32>
    %418 = arith.mulf %417, %244 : vector<2x256xf32>
    %419 = arith.addf %415, %418 : vector<2x256xf32>
    %c126 = arith.constant 126 : index
    %420 = memref.load %arg1[%c126] : memref<155xf32, #tpu.memory_space<smem>>
    %421 = vector.broadcast %420 : f32 to vector<2x256xf32>
    %422 = arith.mulf %421, %284 : vector<2x256xf32>
    %423 = arith.addf %419, %422 : vector<2x256xf32>
    %c135 = arith.constant 135 : index
    %424 = memref.load %arg1[%c135] : memref<155xf32, #tpu.memory_space<smem>>
    %425 = vector.broadcast %424 : f32 to vector<2x256xf32>
    %426 = arith.mulf %425, %324 : vector<2x256xf32>
    %427 = arith.addf %423, %426 : vector<2x256xf32>
    %c144 = arith.constant 144 : index
    %428 = memref.load %arg1[%c144] : memref<155xf32, #tpu.memory_space<smem>>
    %429 = vector.broadcast %428 : f32 to vector<2x256xf32>
    %430 = arith.mulf %429, %364 : vector<2x256xf32>
    %431 = arith.addf %427, %430 : vector<2x256xf32>
    %c16_i32_40 = arith.constant 16 : i32
    %432 = tpu.dynamic_rotate %431 by %c16_i32_40 dim 1 : vector<2x256xf32>, i32 -> vector<2x256xf32>
    %c1_41 = arith.constant 1 : index
    %c0_42 = arith.constant 0 : index
    %c0_43 = arith.constant 0 : index
    %433 = vector.load %arg2[%c1_41, %c0_42, %c0_43] : memref<9x1x256xf32, #tpu.memory_space<vmem>>, vector<1x1x256xf32>
    %434 = vector.shape_cast %433 : vector<1x1x256xf32> to vector<1x256xf32>
    %435 = vector.broadcast %434 : vector<1x256xf32> to vector<2x256xf32>
    %436 = arith.mulf %432, %435 : vector<2x256xf32>
    %437 = arith.addf %400, %436 : vector<2x256xf32>
    %c82 = arith.constant 82 : index
    %438 = memref.load %arg1[%c82] : memref<155xf32, #tpu.memory_space<smem>>
    %439 = vector.broadcast %438 : f32 to vector<2x256xf32>
    %440 = arith.mulf %439, %84 : vector<2x256xf32>
    %c91 = arith.constant 91 : index
    %441 = memref.load %arg1[%c91] : memref<155xf32, #tpu.memory_space<smem>>
    %442 = vector.broadcast %441 : f32 to vector<2x256xf32>
    %443 = arith.mulf %442, %124 : vector<2x256xf32>
    %444 = arith.addf %440, %443 : vector<2x256xf32>
    %c100 = arith.constant 100 : index
    %445 = memref.load %arg1[%c100] : memref<155xf32, #tpu.memory_space<smem>>
    %446 = vector.broadcast %445 : f32 to vector<2x256xf32>
    %447 = arith.mulf %446, %164 : vector<2x256xf32>
    %448 = arith.addf %444, %447 : vector<2x256xf32>
    %c109 = arith.constant 109 : index
    %449 = memref.load %arg1[%c109] : memref<155xf32, #tpu.memory_space<smem>>
    %450 = vector.broadcast %449 : f32 to vector<2x256xf32>
    %451 = arith.mulf %450, %204 : vector<2x256xf32>
    %452 = arith.addf %448, %451 : vector<2x256xf32>
    %c118 = arith.constant 118 : index
    %453 = memref.load %arg1[%c118] : memref<155xf32, #tpu.memory_space<smem>>
    %454 = vector.broadcast %453 : f32 to vector<2x256xf32>
    %455 = arith.mulf %454, %244 : vector<2x256xf32>
    %456 = arith.addf %452, %455 : vector<2x256xf32>
    %c127 = arith.constant 127 : index
    %457 = memref.load %arg1[%c127] : memref<155xf32, #tpu.memory_space<smem>>
    %458 = vector.broadcast %457 : f32 to vector<2x256xf32>
    %459 = arith.mulf %458, %284 : vector<2x256xf32>
    %460 = arith.addf %456, %459 : vector<2x256xf32>
    %c136 = arith.constant 136 : index
    %461 = memref.load %arg1[%c136] : memref<155xf32, #tpu.memory_space<smem>>
    %462 = vector.broadcast %461 : f32 to vector<2x256xf32>
    %463 = arith.mulf %462, %324 : vector<2x256xf32>
    %464 = arith.addf %460, %463 : vector<2x256xf32>
    %c145 = arith.constant 145 : index
    %465 = memref.load %arg1[%c145] : memref<155xf32, #tpu.memory_space<smem>>
    %466 = vector.broadcast %465 : f32 to vector<2x256xf32>
    %467 = arith.mulf %466, %364 : vector<2x256xf32>
    %468 = arith.addf %464, %467 : vector<2x256xf32>
    %c15_i32_44 = arith.constant 15 : i32
    %469 = tpu.dynamic_rotate %468 by %c15_i32_44 dim 1 : vector<2x256xf32>, i32 -> vector<2x256xf32>
    %c2_45 = arith.constant 2 : index
    %c0_46 = arith.constant 0 : index
    %c0_47 = arith.constant 0 : index
    %470 = vector.load %arg2[%c2_45, %c0_46, %c0_47] : memref<9x1x256xf32, #tpu.memory_space<vmem>>, vector<1x1x256xf32>
    %471 = vector.shape_cast %470 : vector<1x1x256xf32> to vector<1x256xf32>
    %472 = vector.broadcast %471 : vector<1x256xf32> to vector<2x256xf32>
    %473 = arith.mulf %469, %472 : vector<2x256xf32>
    %474 = arith.addf %437, %473 : vector<2x256xf32>
    %c83 = arith.constant 83 : index
    %475 = memref.load %arg1[%c83] : memref<155xf32, #tpu.memory_space<smem>>
    %476 = vector.broadcast %475 : f32 to vector<2x256xf32>
    %477 = arith.mulf %476, %84 : vector<2x256xf32>
    %c92 = arith.constant 92 : index
    %478 = memref.load %arg1[%c92] : memref<155xf32, #tpu.memory_space<smem>>
    %479 = vector.broadcast %478 : f32 to vector<2x256xf32>
    %480 = arith.mulf %479, %124 : vector<2x256xf32>
    %481 = arith.addf %477, %480 : vector<2x256xf32>
    %c101 = arith.constant 101 : index
    %482 = memref.load %arg1[%c101] : memref<155xf32, #tpu.memory_space<smem>>
    %483 = vector.broadcast %482 : f32 to vector<2x256xf32>
    %484 = arith.mulf %483, %164 : vector<2x256xf32>
    %485 = arith.addf %481, %484 : vector<2x256xf32>
    %c110 = arith.constant 110 : index
    %486 = memref.load %arg1[%c110] : memref<155xf32, #tpu.memory_space<smem>>
    %487 = vector.broadcast %486 : f32 to vector<2x256xf32>
    %488 = arith.mulf %487, %204 : vector<2x256xf32>
    %489 = arith.addf %485, %488 : vector<2x256xf32>
    %c119 = arith.constant 119 : index
    %490 = memref.load %arg1[%c119] : memref<155xf32, #tpu.memory_space<smem>>
    %491 = vector.broadcast %490 : f32 to vector<2x256xf32>
    %492 = arith.mulf %491, %244 : vector<2x256xf32>
    %493 = arith.addf %489, %492 : vector<2x256xf32>
    %c128 = arith.constant 128 : index
    %494 = memref.load %arg1[%c128] : memref<155xf32, #tpu.memory_space<smem>>
    %495 = vector.broadcast %494 : f32 to vector<2x256xf32>
    %496 = arith.mulf %495, %284 : vector<2x256xf32>
    %497 = arith.addf %493, %496 : vector<2x256xf32>
    %c137 = arith.constant 137 : index
    %498 = memref.load %arg1[%c137] : memref<155xf32, #tpu.memory_space<smem>>
    %499 = vector.broadcast %498 : f32 to vector<2x256xf32>
    %500 = arith.mulf %499, %324 : vector<2x256xf32>
    %501 = arith.addf %497, %500 : vector<2x256xf32>
    %c146 = arith.constant 146 : index
    %502 = memref.load %arg1[%c146] : memref<155xf32, #tpu.memory_space<smem>>
    %503 = vector.broadcast %502 : f32 to vector<2x256xf32>
    %504 = arith.mulf %503, %364 : vector<2x256xf32>
    %505 = arith.addf %501, %504 : vector<2x256xf32>
    %c1_i32_48 = arith.constant 1 : i32
    %506 = tpu.dynamic_rotate %505 by %c1_i32_48 dim 1 : vector<2x256xf32>, i32 -> vector<2x256xf32>
    %c3_49 = arith.constant 3 : index
    %c0_50 = arith.constant 0 : index
    %c0_51 = arith.constant 0 : index
    %507 = vector.load %arg2[%c3_49, %c0_50, %c0_51] : memref<9x1x256xf32, #tpu.memory_space<vmem>>, vector<1x1x256xf32>
    %508 = vector.shape_cast %507 : vector<1x1x256xf32> to vector<1x256xf32>
    %509 = vector.broadcast %508 : vector<1x256xf32> to vector<2x256xf32>
    %510 = arith.mulf %506, %509 : vector<2x256xf32>
    %511 = arith.addf %474, %510 : vector<2x256xf32>
    %c84 = arith.constant 84 : index
    %512 = memref.load %arg1[%c84] : memref<155xf32, #tpu.memory_space<smem>>
    %513 = vector.broadcast %512 : f32 to vector<2x256xf32>
    %514 = arith.mulf %513, %84 : vector<2x256xf32>
    %c93 = arith.constant 93 : index
    %515 = memref.load %arg1[%c93] : memref<155xf32, #tpu.memory_space<smem>>
    %516 = vector.broadcast %515 : f32 to vector<2x256xf32>
    %517 = arith.mulf %516, %124 : vector<2x256xf32>
    %518 = arith.addf %514, %517 : vector<2x256xf32>
    %c102 = arith.constant 102 : index
    %519 = memref.load %arg1[%c102] : memref<155xf32, #tpu.memory_space<smem>>
    %520 = vector.broadcast %519 : f32 to vector<2x256xf32>
    %521 = arith.mulf %520, %164 : vector<2x256xf32>
    %522 = arith.addf %518, %521 : vector<2x256xf32>
    %c111 = arith.constant 111 : index
    %523 = memref.load %arg1[%c111] : memref<155xf32, #tpu.memory_space<smem>>
    %524 = vector.broadcast %523 : f32 to vector<2x256xf32>
    %525 = arith.mulf %524, %204 : vector<2x256xf32>
    %526 = arith.addf %522, %525 : vector<2x256xf32>
    %c120 = arith.constant 120 : index
    %527 = memref.load %arg1[%c120] : memref<155xf32, #tpu.memory_space<smem>>
    %528 = vector.broadcast %527 : f32 to vector<2x256xf32>
    %529 = arith.mulf %528, %244 : vector<2x256xf32>
    %530 = arith.addf %526, %529 : vector<2x256xf32>
    %c129 = arith.constant 129 : index
    %531 = memref.load %arg1[%c129] : memref<155xf32, #tpu.memory_space<smem>>
    %532 = vector.broadcast %531 : f32 to vector<2x256xf32>
    %533 = arith.mulf %532, %284 : vector<2x256xf32>
    %534 = arith.addf %530, %533 : vector<2x256xf32>
    %c138 = arith.constant 138 : index
    %535 = memref.load %arg1[%c138] : memref<155xf32, #tpu.memory_space<smem>>
    %536 = vector.broadcast %535 : f32 to vector<2x256xf32>
    %537 = arith.mulf %536, %324 : vector<2x256xf32>
    %538 = arith.addf %534, %537 : vector<2x256xf32>
    %c147 = arith.constant 147 : index
    %539 = memref.load %arg1[%c147] : memref<155xf32, #tpu.memory_space<smem>>
    %540 = vector.broadcast %539 : f32 to vector<2x256xf32>
    %541 = arith.mulf %540, %364 : vector<2x256xf32>
    %542 = arith.addf %538, %541 : vector<2x256xf32>
    %c4_52 = arith.constant 4 : index
    %c0_53 = arith.constant 0 : index
    %c0_54 = arith.constant 0 : index
    %543 = vector.load %arg2[%c4_52, %c0_53, %c0_54] : memref<9x1x256xf32, #tpu.memory_space<vmem>>, vector<1x1x256xf32>
    %544 = vector.shape_cast %543 : vector<1x1x256xf32> to vector<1x256xf32>
    %545 = vector.broadcast %544 : vector<1x256xf32> to vector<2x256xf32>
    %546 = arith.mulf %542, %545 : vector<2x256xf32>
    %547 = arith.addf %511, %546 : vector<2x256xf32>
    %c85 = arith.constant 85 : index
    %548 = memref.load %arg1[%c85] : memref<155xf32, #tpu.memory_space<smem>>
    %549 = vector.broadcast %548 : f32 to vector<2x256xf32>
    %550 = arith.mulf %549, %84 : vector<2x256xf32>
    %c94 = arith.constant 94 : index
    %551 = memref.load %arg1[%c94] : memref<155xf32, #tpu.memory_space<smem>>
    %552 = vector.broadcast %551 : f32 to vector<2x256xf32>
    %553 = arith.mulf %552, %124 : vector<2x256xf32>
    %554 = arith.addf %550, %553 : vector<2x256xf32>
    %c103 = arith.constant 103 : index
    %555 = memref.load %arg1[%c103] : memref<155xf32, #tpu.memory_space<smem>>
    %556 = vector.broadcast %555 : f32 to vector<2x256xf32>
    %557 = arith.mulf %556, %164 : vector<2x256xf32>
    %558 = arith.addf %554, %557 : vector<2x256xf32>
    %c112 = arith.constant 112 : index
    %559 = memref.load %arg1[%c112] : memref<155xf32, #tpu.memory_space<smem>>
    %560 = vector.broadcast %559 : f32 to vector<2x256xf32>
    %561 = arith.mulf %560, %204 : vector<2x256xf32>
    %562 = arith.addf %558, %561 : vector<2x256xf32>
    %c121 = arith.constant 121 : index
    %563 = memref.load %arg1[%c121] : memref<155xf32, #tpu.memory_space<smem>>
    %564 = vector.broadcast %563 : f32 to vector<2x256xf32>
    %565 = arith.mulf %564, %244 : vector<2x256xf32>
    %566 = arith.addf %562, %565 : vector<2x256xf32>
    %c130 = arith.constant 130 : index
    %567 = memref.load %arg1[%c130] : memref<155xf32, #tpu.memory_space<smem>>
    %568 = vector.broadcast %567 : f32 to vector<2x256xf32>
    %569 = arith.mulf %568, %284 : vector<2x256xf32>
    %570 = arith.addf %566, %569 : vector<2x256xf32>
    %c139 = arith.constant 139 : index
    %571 = memref.load %arg1[%c139] : memref<155xf32, #tpu.memory_space<smem>>
    %572 = vector.broadcast %571 : f32 to vector<2x256xf32>
    %573 = arith.mulf %572, %324 : vector<2x256xf32>
    %574 = arith.addf %570, %573 : vector<2x256xf32>
    %c148 = arith.constant 148 : index
    %575 = memref.load %arg1[%c148] : memref<155xf32, #tpu.memory_space<smem>>
    %576 = vector.broadcast %575 : f32 to vector<2x256xf32>
    %577 = arith.mulf %576, %364 : vector<2x256xf32>
    %578 = arith.addf %574, %577 : vector<2x256xf32>
    %c255_i32_55 = arith.constant 255 : i32
    %579 = tpu.dynamic_rotate %578 by %c255_i32_55 dim 1 : vector<2x256xf32>, i32 -> vector<2x256xf32>
    %c5_56 = arith.constant 5 : index
    %c0_57 = arith.constant 0 : index
    %c0_58 = arith.constant 0 : index
    %580 = vector.load %arg2[%c5_56, %c0_57, %c0_58] : memref<9x1x256xf32, #tpu.memory_space<vmem>>, vector<1x1x256xf32>
    %581 = vector.shape_cast %580 : vector<1x1x256xf32> to vector<1x256xf32>
    %582 = vector.broadcast %581 : vector<1x256xf32> to vector<2x256xf32>
    %583 = arith.mulf %579, %582 : vector<2x256xf32>
    %584 = arith.addf %547, %583 : vector<2x256xf32>
    %c86 = arith.constant 86 : index
    %585 = memref.load %arg1[%c86] : memref<155xf32, #tpu.memory_space<smem>>
    %586 = vector.broadcast %585 : f32 to vector<2x256xf32>
    %587 = arith.mulf %586, %84 : vector<2x256xf32>
    %c95 = arith.constant 95 : index
    %588 = memref.load %arg1[%c95] : memref<155xf32, #tpu.memory_space<smem>>
    %589 = vector.broadcast %588 : f32 to vector<2x256xf32>
    %590 = arith.mulf %589, %124 : vector<2x256xf32>
    %591 = arith.addf %587, %590 : vector<2x256xf32>
    %c104 = arith.constant 104 : index
    %592 = memref.load %arg1[%c104] : memref<155xf32, #tpu.memory_space<smem>>
    %593 = vector.broadcast %592 : f32 to vector<2x256xf32>
    %594 = arith.mulf %593, %164 : vector<2x256xf32>
    %595 = arith.addf %591, %594 : vector<2x256xf32>
    %c113 = arith.constant 113 : index
    %596 = memref.load %arg1[%c113] : memref<155xf32, #tpu.memory_space<smem>>
    %597 = vector.broadcast %596 : f32 to vector<2x256xf32>
    %598 = arith.mulf %597, %204 : vector<2x256xf32>
    %599 = arith.addf %595, %598 : vector<2x256xf32>
    %c122 = arith.constant 122 : index
    %600 = memref.load %arg1[%c122] : memref<155xf32, #tpu.memory_space<smem>>
    %601 = vector.broadcast %600 : f32 to vector<2x256xf32>
    %602 = arith.mulf %601, %244 : vector<2x256xf32>
    %603 = arith.addf %599, %602 : vector<2x256xf32>
    %c131 = arith.constant 131 : index
    %604 = memref.load %arg1[%c131] : memref<155xf32, #tpu.memory_space<smem>>
    %605 = vector.broadcast %604 : f32 to vector<2x256xf32>
    %606 = arith.mulf %605, %284 : vector<2x256xf32>
    %607 = arith.addf %603, %606 : vector<2x256xf32>
    %c140 = arith.constant 140 : index
    %608 = memref.load %arg1[%c140] : memref<155xf32, #tpu.memory_space<smem>>
    %609 = vector.broadcast %608 : f32 to vector<2x256xf32>
    %610 = arith.mulf %609, %324 : vector<2x256xf32>
    %611 = arith.addf %607, %610 : vector<2x256xf32>
    %c149 = arith.constant 149 : index
    %612 = memref.load %arg1[%c149] : memref<155xf32, #tpu.memory_space<smem>>
    %613 = vector.broadcast %612 : f32 to vector<2x256xf32>
    %614 = arith.mulf %613, %364 : vector<2x256xf32>
    %615 = arith.addf %611, %614 : vector<2x256xf32>
    %c241_i32_59 = arith.constant 241 : i32
    %616 = tpu.dynamic_rotate %615 by %c241_i32_59 dim 1 : vector<2x256xf32>, i32 -> vector<2x256xf32>
    %c6_60 = arith.constant 6 : index
    %c0_61 = arith.constant 0 : index
    %c0_62 = arith.constant 0 : index
    %617 = vector.load %arg2[%c6_60, %c0_61, %c0_62] : memref<9x1x256xf32, #tpu.memory_space<vmem>>, vector<1x1x256xf32>
    %618 = vector.shape_cast %617 : vector<1x1x256xf32> to vector<1x256xf32>
    %619 = vector.broadcast %618 : vector<1x256xf32> to vector<2x256xf32>
    %620 = arith.mulf %616, %619 : vector<2x256xf32>
    %621 = arith.addf %584, %620 : vector<2x256xf32>
    %c87 = arith.constant 87 : index
    %622 = memref.load %arg1[%c87] : memref<155xf32, #tpu.memory_space<smem>>
    %623 = vector.broadcast %622 : f32 to vector<2x256xf32>
    %624 = arith.mulf %623, %84 : vector<2x256xf32>
    %c96 = arith.constant 96 : index
    %625 = memref.load %arg1[%c96] : memref<155xf32, #tpu.memory_space<smem>>
    %626 = vector.broadcast %625 : f32 to vector<2x256xf32>
    %627 = arith.mulf %626, %124 : vector<2x256xf32>
    %628 = arith.addf %624, %627 : vector<2x256xf32>
    %c105 = arith.constant 105 : index
    %629 = memref.load %arg1[%c105] : memref<155xf32, #tpu.memory_space<smem>>
    %630 = vector.broadcast %629 : f32 to vector<2x256xf32>
    %631 = arith.mulf %630, %164 : vector<2x256xf32>
    %632 = arith.addf %628, %631 : vector<2x256xf32>
    %c114 = arith.constant 114 : index
    %633 = memref.load %arg1[%c114] : memref<155xf32, #tpu.memory_space<smem>>
    %634 = vector.broadcast %633 : f32 to vector<2x256xf32>
    %635 = arith.mulf %634, %204 : vector<2x256xf32>
    %636 = arith.addf %632, %635 : vector<2x256xf32>
    %c123 = arith.constant 123 : index
    %637 = memref.load %arg1[%c123] : memref<155xf32, #tpu.memory_space<smem>>
    %638 = vector.broadcast %637 : f32 to vector<2x256xf32>
    %639 = arith.mulf %638, %244 : vector<2x256xf32>
    %640 = arith.addf %636, %639 : vector<2x256xf32>
    %c132 = arith.constant 132 : index
    %641 = memref.load %arg1[%c132] : memref<155xf32, #tpu.memory_space<smem>>
    %642 = vector.broadcast %641 : f32 to vector<2x256xf32>
    %643 = arith.mulf %642, %284 : vector<2x256xf32>
    %644 = arith.addf %640, %643 : vector<2x256xf32>
    %c141 = arith.constant 141 : index
    %645 = memref.load %arg1[%c141] : memref<155xf32, #tpu.memory_space<smem>>
    %646 = vector.broadcast %645 : f32 to vector<2x256xf32>
    %647 = arith.mulf %646, %324 : vector<2x256xf32>
    %648 = arith.addf %644, %647 : vector<2x256xf32>
    %c150 = arith.constant 150 : index
    %649 = memref.load %arg1[%c150] : memref<155xf32, #tpu.memory_space<smem>>
    %650 = vector.broadcast %649 : f32 to vector<2x256xf32>
    %651 = arith.mulf %650, %364 : vector<2x256xf32>
    %652 = arith.addf %648, %651 : vector<2x256xf32>
    %c240_i32_63 = arith.constant 240 : i32
    %653 = tpu.dynamic_rotate %652 by %c240_i32_63 dim 1 : vector<2x256xf32>, i32 -> vector<2x256xf32>
    %c7_64 = arith.constant 7 : index
    %c0_65 = arith.constant 0 : index
    %c0_66 = arith.constant 0 : index
    %654 = vector.load %arg2[%c7_64, %c0_65, %c0_66] : memref<9x1x256xf32, #tpu.memory_space<vmem>>, vector<1x1x256xf32>
    %655 = vector.shape_cast %654 : vector<1x1x256xf32> to vector<1x256xf32>
    %656 = vector.broadcast %655 : vector<1x256xf32> to vector<2x256xf32>
    %657 = arith.mulf %653, %656 : vector<2x256xf32>
    %658 = arith.addf %621, %657 : vector<2x256xf32>
    %c88 = arith.constant 88 : index
    %659 = memref.load %arg1[%c88] : memref<155xf32, #tpu.memory_space<smem>>
    %660 = vector.broadcast %659 : f32 to vector<2x256xf32>
    %661 = arith.mulf %660, %84 : vector<2x256xf32>
    %c97 = arith.constant 97 : index
    %662 = memref.load %arg1[%c97] : memref<155xf32, #tpu.memory_space<smem>>
    %663 = vector.broadcast %662 : f32 to vector<2x256xf32>
    %664 = arith.mulf %663, %124 : vector<2x256xf32>
    %665 = arith.addf %661, %664 : vector<2x256xf32>
    %c106 = arith.constant 106 : index
    %666 = memref.load %arg1[%c106] : memref<155xf32, #tpu.memory_space<smem>>
    %667 = vector.broadcast %666 : f32 to vector<2x256xf32>
    %668 = arith.mulf %667, %164 : vector<2x256xf32>
    %669 = arith.addf %665, %668 : vector<2x256xf32>
    %c115 = arith.constant 115 : index
    %670 = memref.load %arg1[%c115] : memref<155xf32, #tpu.memory_space<smem>>
    %671 = vector.broadcast %670 : f32 to vector<2x256xf32>
    %672 = arith.mulf %671, %204 : vector<2x256xf32>
    %673 = arith.addf %669, %672 : vector<2x256xf32>
    %c124 = arith.constant 124 : index
    %674 = memref.load %arg1[%c124] : memref<155xf32, #tpu.memory_space<smem>>
    %675 = vector.broadcast %674 : f32 to vector<2x256xf32>
    %676 = arith.mulf %675, %244 : vector<2x256xf32>
    %677 = arith.addf %673, %676 : vector<2x256xf32>
    %c133 = arith.constant 133 : index
    %678 = memref.load %arg1[%c133] : memref<155xf32, #tpu.memory_space<smem>>
    %679 = vector.broadcast %678 : f32 to vector<2x256xf32>
    %680 = arith.mulf %679, %284 : vector<2x256xf32>
    %681 = arith.addf %677, %680 : vector<2x256xf32>
    %c142 = arith.constant 142 : index
    %682 = memref.load %arg1[%c142] : memref<155xf32, #tpu.memory_space<smem>>
    %683 = vector.broadcast %682 : f32 to vector<2x256xf32>
    %684 = arith.mulf %683, %324 : vector<2x256xf32>
    %685 = arith.addf %681, %684 : vector<2x256xf32>
    %c151 = arith.constant 151 : index
    %686 = memref.load %arg1[%c151] : memref<155xf32, #tpu.memory_space<smem>>
    %687 = vector.broadcast %686 : f32 to vector<2x256xf32>
    %688 = arith.mulf %687, %364 : vector<2x256xf32>
    %689 = arith.addf %685, %688 : vector<2x256xf32>
    %c239_i32_67 = arith.constant 239 : i32
    %690 = tpu.dynamic_rotate %689 by %c239_i32_67 dim 1 : vector<2x256xf32>, i32 -> vector<2x256xf32>
    %c8_68 = arith.constant 8 : index
    %c0_69 = arith.constant 0 : index
    %c0_70 = arith.constant 0 : index
    %691 = vector.load %arg2[%c8_68, %c0_69, %c0_70] : memref<9x1x256xf32, #tpu.memory_space<vmem>>, vector<1x1x256xf32>
    %692 = vector.shape_cast %691 : vector<1x1x256xf32> to vector<1x256xf32>
    %693 = vector.broadcast %692 : vector<1x256xf32> to vector<2x256xf32>
    %694 = arith.mulf %690, %693 : vector<2x256xf32>
    %695 = arith.addf %658, %694 : vector<2x256xf32>
    %c152 = arith.constant 152 : index
    %696 = memref.load %arg1[%c152] : memref<155xf32, #tpu.memory_space<smem>>
    %697 = vector.broadcast %696 : f32 to vector<2x256xf32>
    %698 = arith.addf %695, %697 : vector<2x256xf32>
    %699 = vector.shape_cast %698 : vector<2x256xf32> to vector<1x2x256xf32>
    %cst_71 = arith.constant dense<0.000000e+00> : vector<1xf32>
    %700 = vector.multi_reduction <add>, %699, %cst_71 [1, 2] : vector<1x2x256xf32> to vector<1xf32>
    %701 = vector.shape_cast %700 : vector<1xf32> to vector<1x1x1xf32>
    %702 = vector.extract %701[0, 0, 0] : f32 from vector<1x1x1xf32>
    %cst_72 = arith.constant 5.120000e+02 : f32
    %703 = arith.divf %702, %cst_72 : f32
    %704 = vector.broadcast %703 : f32 to vector<2x256xf32>
    %705 = arith.subf %698, %704 : vector<2x256xf32>
    %706 = arith.mulf %705, %705 : vector<2x256xf32>
    %707 = vector.shape_cast %706 : vector<2x256xf32> to vector<1x2x256xf32>
    %cst_73 = arith.constant dense<0.000000e+00> : vector<1xf32>
    %708 = vector.multi_reduction <add>, %707, %cst_73 [1, 2] : vector<1x2x256xf32> to vector<1xf32>
    %709 = vector.shape_cast %708 : vector<1xf32> to vector<1x1x1xf32>
    %710 = vector.extract %709[0, 0, 0] : f32 from vector<1x1x1xf32>
    %cst_74 = arith.constant 5.120000e+02 : f32
    %711 = arith.divf %710, %cst_74 : f32
    %cst_75 = arith.constant 9.99999974E-6 : f32
    %712 = arith.addf %711, %cst_75 : f32
    %713 = math.rsqrt %712 : f32
    %714 = vector.broadcast %713 : f32 to vector<2x256xf32>
    %715 = arith.mulf %705, %714 : vector<2x256xf32>
    %c153 = arith.constant 153 : index
    %716 = memref.load %arg1[%c153] : memref<155xf32, #tpu.memory_space<smem>>
    %717 = vector.broadcast %716 : f32 to vector<2x256xf32>
    %718 = arith.mulf %715, %717 : vector<2x256xf32>
    %c154 = arith.constant 154 : index
    %719 = memref.load %arg1[%c154] : memref<155xf32, #tpu.memory_space<smem>>
    %720 = vector.broadcast %719 : f32 to vector<2x256xf32>
    %721 = arith.addf %718, %720 : vector<2x256xf32>
    %c0_76 = arith.constant 0 : index
    %c0_77 = arith.constant 0 : index
    %722 = vector.load %arg3[%c0_76, %c0_77] : memref<256x128xf32, #tpu.memory_space<vmem>>, vector<256x128xf32>
    %cst_78 = arith.constant dense<0.000000e+00> : vector<2x128xf32>
    %723 = tpu.matmul %721, %722, %cst_78 {dimension_numbers = #tpu.dot_dimension_numbers<[1], [0], [0], [1], [0, 0, 1, 1], [], []>} : vector<2x256xf32>, vector<256x128xf32>, vector<2x128xf32> -> vector<2x128xf32>
    %c0_79 = arith.constant 0 : index
    %c0_80 = arith.constant 0 : index
    %724 = vector.load %arg5[%c0_79, %c0_80] : memref<2x128xf32, #tpu.memory_space<vmem>>, vector<1x128xf32>
    %725 = vector.broadcast %724 : vector<1x128xf32> to vector<2x128xf32>
    %726 = arith.addf %723, %725 : vector<2x128xf32>
    %cst_81 = arith.constant 0.000000e+00 : f32
    %727 = vector.broadcast %cst_81 : f32 to vector<2x128xf32>
    %728 = arith.maximumf %726, %727 : vector<2x128xf32>
    %c0_82 = arith.constant 0 : index
    %c0_83 = arith.constant 0 : index
    %729 = vector.load %arg4[%c0_82, %c0_83] : memref<128x128xf32, #tpu.memory_space<vmem>>, vector<128x128xf32>
    %cst_84 = arith.constant dense<0.000000e+00> : vector<2x128xf32>
    %730 = tpu.matmul %728, %729, %cst_84 {dimension_numbers = #tpu.dot_dimension_numbers<[1], [0], [0], [1], [0, 0, 1, 1], [], []>} : vector<2x128xf32>, vector<128x128xf32>, vector<2x128xf32> -> vector<2x128xf32>
    %c1_85 = arith.constant 1 : index
    %c0_86 = arith.constant 0 : index
    %731 = vector.load %arg5[%c1_85, %c0_86] : memref<2x128xf32, #tpu.memory_space<vmem>>, vector<1x128xf32>
    %732 = vector.broadcast %731 : vector<1x128xf32> to vector<2x128xf32>
    %733 = arith.addf %730, %732 : vector<2x128xf32>
    %c0_87 = arith.constant 0 : index
    %c0_88 = arith.constant 0 : index
    %734 = vector.load %arg6[%c0_87, %c0_88] : memref<2x128xf32, #tpu.memory_space<vmem>>, vector<2x128xf32>
    tpu.vector_store %arg6[%c0_87, %c0_88], %733 {strides = array<i32>} : memref<2x128xf32, #tpu.memory_space<vmem>>, vector<2x128xf32>,
    return
  }
}

</mosaic_0001>

<bundles_post_ra>
// kernel: cascade_forward.1
= control target key start
LH: loop header
LB: loop body
LE: loop exit
PB: predicated region body
PF: predicated region fallthrough
CT: control target
= control target key end

     0   :  { %s3513_s0 = inlined_call_operand.vmem [shape: f32[2,256], index: 0, kind: input, shape index: {}]   ;;  %s3514_s1 = inlined_call_operand.vmem [shape: f32[155], index: 1, kind: input, shape index: {}]   ;;  %s3515_s2 = inlined_call_operand.vmem [shape: f32[9,1,256], index: 2, kind: input, shape index: {}]   ;;  %s3516_s3 = inlined_call_operand.hbm [shape: f32[256,128], index: 3, kind: input, shape index: {}]   ;;  %s3517_s4 = inlined_call_operand.hbm [shape: f32[128,128], index: 4, kind: input, shape index: {}]   ;;  %s3518_s5 = inlined_call_operand.vmem [shape: f32[2,128], index: 5, kind: input, shape index: {}]   ;;  %s3519_s6 = inlined_call_operand.hbm [shape: f32[2,128], index: 6, kind: output, shape index: {}]  }
   0x1   :  { %3717 = sst [smem:[#allocation140_spill]] %s3518_s5 }
   0x2   :  { %3718 = sst [smem:[#allocation141_spill]] %s3519_s6 }
   0x3   :  { %11 = vsyncpa [#allocation5], 0 }
   0x4   :  { %12 = vsyncpa [#allocation3], 0 }
   0x5   :  { %13 = vsyncpa [#allocation8], 0 }
   0x6   :  { %14 = vsyncpa [#allocation4], 0  ;;  %s23_s23 = sshll.u32 %s3514_s1, 4  ;;  %s24_s23 = int_to_ptr.vmem [resolvable:$true] %s23_s23 }
   0x7   :  { %s1865_s24 = scalar_lea.vmem %s24_s23, 32  ;;  %p1870_p1 = scmp.lt.s32.totalorder %s24_s23, %s24_s23 }
   0x8   :  { %p1866_p0 = scmp.ne.s32.totalorder %s24_s23, %s1865_s24  ;;  %p1871_p2 = scmp.lt.s32.totalorder %s1865_s24, %s1865_s24 }
   0xa   :  { %p1872_p3 = por %p1871_p2, %p1870_p1 }
   0xc   :  { %p1873_p4 = pnand %p1872_p3, %p1866_p0 }
   0xe   :  { %1876 = shalt.err (!%p1873_p4)
}
   0xf   :  { %s1945_s25 = smov [#allocation2]   ;;  %s1946_s26 = smov [#allocation6]  }
  0x10   :  { %26 = dma.vmem_to_smem %s24_s23, 32, %s1945_s25, [#allocation5]  }
  0x11   :  { %s34_s27 = sshll.u32 %s1946_s26, 4  ;;  %s35_s27 = int_to_ptr.vmem [resolvable:$true] %s34_s27 }
  0x12   :  { %s1885_s28 = scalar_lea.vmem %s35_s27, 4096  ;;  %p1890_p6 = scmp.lt.s32.totalorder %s35_s27, %s35_s27 }
  0x13   :  { %p1886_p5 = scmp.ne.s32.totalorder %s35_s27, %s1885_s28  ;;  %p1891_p7 = scmp.lt.s32.totalorder %s1885_s28, %s1885_s28 }
  0x15   :  { %p1892_p8 = por %p1891_p7, %p1890_p6 }
  0x17   :  { %p1893_p9 = pnand %p1892_p8, %p1886_p5 }
  0x19   :  { %1896 = shalt.err (!%p1893_p9)
}
  0x1a   :  { %s1947_s1 = smov 128   ;;  %s1948_s29 = smov 8  }
  0x1b   :  { %40 = dma.hbm_to_vmem [thread:$0]  %s3516_s3, 4096, %s35_s27, [#allocation3], %s1947_s1, %s1947_s1, %s1948_s29  }
  0x1c   :  { %s1949_s8 = smov [#allocation7]  }
  0x1d   :  { %s46_s9 = sshll.u32 %s1949_s8, 4  ;;  %s47_s9 = int_to_ptr.vmem [resolvable:$true] %s46_s9 }
  0x1e   :  { %s1905_s10 = scalar_lea.vmem %s47_s9, 2048  ;;  %p1910_p11 = scmp.lt.s32.totalorder %s47_s9, %s47_s9 }
  0x1f   :  { %p1906_p10 = scmp.ne.s32.totalorder %s47_s9, %s1905_s10  ;;  %p1911_p12 = scmp.lt.s32.totalorder %s1905_s10, %s1905_s10 }
  0x21   :  { %p1912_p13 = por %p1911_p12, %p1910_p11 }
  0x23   :  { %p1913_p0 = pnand %p1912_p13, %p1906_p10 }
  0x25   :  { %1916 = shalt.err (!%p1913_p0)
}
  0x26   :  { %52 = dma.hbm_to_vmem [thread:$0]  %s3517_s4, 2048, %s47_s9, [#allocation8], %s1947_s1, %s1947_s1, %s1948_s29  }
  0x27   :  { %1937 = dma.done.wait [#allocation5], 32  }
  0x28   :  { %1938 = vsyncadd [#allocation5], 4294967264 }
  0x29   :  { %1939 = dma.done.wait [#allocation3], 4096  }
  0x2a   :  { %1940 = vsyncadd [#allocation3], 4294963200 }
  0x2b   :  { %1941 = dma.done.wait [#allocation8], 2048  }
  0x2c   :  { %1942 = vsyncadd [#allocation8], 4294965248 }
  0x2d   :  { %64 = sfence }
  0x2e   :  { %v70_v0 = vlaneseq  ;;  %v1950_v1 = vmov 1983009808   ;;  %v1592_v5 = vld [vmem:[%s3515_s2 + $0x8] sm:$0x3]  ;;  %v65_v6 = vld [vmem:[%s3513_s0] sm:$0xf] }
  0x2f   :  { %v68_v2 = vunpack.c.l.s4 %v1950_v1  ;;  %s2017_s4 = sld [smem:[#allocation2 + $0x1]]  ;;  %s3524_s19 = smov 16   ;;  %v1589_v41 = vld [vmem:[%s3515_s2 + $0x2] sm:$0x3]  ;;  %v1590_v42 = vld [vmem:[%s3515_s2 + $0x4] sm:$0x3] }
  0x30   :  { %v71_v3 = vshrl.u32 %v70_v0, 7  ;;  %s2021_s16 = sld [smem:[#allocation2 + $0xa]]  ;;  %s3526_s20 = smov 17   ;;  %v86_v43 = vld [vmem:[%s3515_s2] sm:$0x3]  ;;  %v2257_v44 = vand.u32 127, %v70_v0 }
  0x31   :  { %v69_v4 = vunpack.c.0.s8 %v68_v2  ;;  %s2029_s17 = sld [smem:[#allocation2 + $0x13]]  ;;  %s3520_s25 = smov 15   ;;  %v1591_v50 = vld [vmem:[%s3515_s2 + $0x6] sm:$0x3]  ;;  %vm1321_vm8 = vcmask 1041408   ;;  %vm1960_vm9 = vmmov 0  }
  0x32   :  { %v2013_v7 = vsub.s32 0, %v71_v3  ;;  %v2015_v8 = vsub.s32 1, %v71_v3  ;;  %s2032_s0 = sld [smem:[#allocation2 + $0x1c]]  ;;  %s3522_s9 = smov 1   ;;  %vm104_vm0 = vcmp.lt.s32.totalorder %v2257_v44, 16  ;;  %vm126_vm1 = vcmp.lt.s32.totalorder %v2257_v44, 15 }
  0x33   :  { %v2019_v9 = vsub.s32 %v69_v4, %v71_v3  ;;  %s2036_s18 = sld [smem:[#allocation2 + $0x25]]  ;;  %s3529_s13 = smov 127   ;;  %v1593_v3 = vld [vmem:[%s3515_s2 + $0xa] sm:$0x3]  ;;  %vm83_vm2 = vcmp.lt.s32.totalorder %v2257_v44, 17  ;;  %vm148_vm3 = vcmp.lt.s32.totalorder %v2257_v44, 1 }
  0x34   :  { %v2024_v10 = vrot.slane %v1592_v5, %v2013_v7  ;;  %v2027_v11 = vrot.slane %v1592_v5, %v2015_v8  ;;  %s2040_s21 = sld [smem:[#allocation2 + $0x2e]]  ;;  %v2260_v45 = vrot.slane %v1589_v41, %v2013_v7  ;;  %v2265_v46 = vrot.slane %v1589_v41, %v2015_v8  ;;  %v1595_v41 = vld [vmem:[%s3515_s2 + $0xe] sm:$0x3] }
  0x35   :  { %3719 = sst [smem:[#allocation14_spill]] %s2017_s4  ;;  %v73_v12 = vrot.slane %v65_v6, %v2019_v9  ;;  %v2268_v47 = vrot.slane %v1590_v42, %v2013_v7  ;;  %v2271_v48 = vrot.slane %v1590_v42, %v2015_v8  ;;  %v2274_v49 = vrot.slane %v86_v43, %v2013_v7 }
  0x36   :  { %3720 = sst [smem:[#allocation15_spill]] %s2021_s16  ;;  %3721 = vst [vmem:[#allocation16_spill] sm:$0xff] %v2024_v10  ;;  %3722 = vst [vmem:[#allocation17_spill] sm:$0xff] %v2027_v11  ;;  %v179_v13 = vcombine.low %v2024_v10, %v2027_v11  ;;  %v282_v51 = vstv %s2017_s4  ;;  %v350_v52 = vstv %s2021_s16  ;;  %v2285_v54 = vrot.slane %v86_v43, %v2015_v8 }
  0x37   :  { %3723 = sst [smem:[#allocation18_spill]] %s2029_s17  ;;  %100 = vrot.lane.b32.xlu1 %v73_v12, %s3524_s19  ;;  %77 = vrot.lane.b32.xlu0 %v73_v12, %s3526_s20  ;;  %v74_v14 = vcombine.high %v73_v12, %v73_v12  ;;  %3813 = vst [vmem:[#allocation108_spill] sm:$0xff] %v2260_v45  ;;  %3815 = vst [vmem:[#allocation110_spill] sm:$0xff] %v2265_v46  ;;  %v418_v53 = vstv %s2029_s17  ;;  %v2299_v62 = vrot.slane %v1591_v50, %v2013_v7 }
  0x38   :  { %3724 = sst [smem:[#allocation19_spill]] %s2032_s0  ;;  %v186_v15 = vrot.slane %v179_v13, %v2019_v9  ;;  %3816 = vst [vmem:[#allocation111_spill] sm:$0xff] %v2268_v47  ;;  %3817 = vst [vmem:[#allocation112_spill] sm:$0xff] %v2271_v48  ;;  %v486_v55 = vstv %s2032_s0  ;;  %v2307_v2 = vrot.slane %v1591_v50, %v2015_v8  ;;  %v2397_v43 = vrot.slane %v1595_v41, %v2015_v8 }
  0x39   :  { %3725 = sst [smem:[#allocation20_spill]] %s2036_s18  ;;  %3818 = vst [vmem:[#allocation113_spill] sm:$0xff] %v2274_v49  ;;  %3820 = vst [vmem:[#allocation115_spill] sm:$0xff] %v2285_v54  ;;  %v554_v56 = vstv %s2036_s18  ;;  %vm193_vm4 = vcmp.lt.s32.totalorder %v2257_v44, 127  ;;  %vm215_vm5 = vcmp.lt.s32.totalorder %v2257_v44, 113  ;;  %vm237_vm6 = vcmp.lt.s32.totalorder %v2257_v44, 112 }
  0x3a   :  { %3726 = sst [smem:[#allocation21_spill]] %s2040_s21  ;;  %v2047_v16 = vmul.f32 %v186_v15, %v65_v6  ;;  %v622_v57 = vstv %s2040_s21  ;;  %3828 = vst [vmem:[#allocation118_spill] sm:$0xff] %v2307_v2  ;;  %3869 = vst [vmem:[#allocation134_spill] sm:$0xff] %v2397_v43  ;;  %vm259_vm7 = vcmp.lt.s32.totalorder %v2257_v44, 111 }
  0x3b   :  { %s2043_s22 = sld [smem:[#allocation2 + $0x37]]  ;;  %122 = vrot.lane.b32.xlu0 %v73_v12, %s3520_s25  ;;  %102 = vrot.lane.b32.xlu1 %v74_v14, %s3524_s19  ;;  %s3535_s19 = smov 113  }
  0x3c   :  { %s2045_s23 = sld [smem:[#allocation2 + $0x40]] }
  0x3d   :  { %s2049_s24 = sld [smem:[#allocation2 + $0x2]] }
  0x3e   :  { %s2053_s26 = sld [smem:[#allocation2 + $0xb]] }
  0x3f   :  { %s2055_s27 = sld [smem:[#allocation2 + $0x14]]  ;;  %124 = vrot.lane.b32.xlu1 %v74_v14, %s3520_s25  ;;  %79 = vrot.lane.b32.xlu0 %v74_v14, %s3526_s20 }
  0x40   :  { %s2057_s28 = sld [smem:[#allocation2 + $0x1d]] }
  0x41   :  { %3727 = sst [smem:[#allocation22_spill]] %s2043_s22  ;;  %v690_v58 = vstv %s2043_s22 }
  0x42   :  { %3728 = sst [smem:[#allocation23_spill]] %s2045_s23  ;;  %v758_v59 = vstv %s2045_s23 }
  0x43   :  { %3729 = sst [smem:[#allocation24_spill]] %s2049_s24  ;;  %146 = vrot.lane.b32.xlu1 %v74_v14, %s3522_s9  ;;  %144 = vrot.lane.b32.xlu0 %v73_v12, %s3522_s9  ;;  %v288_v60 = vstv %s2049_s24 }
  0x44   :  { %3730 = sst [smem:[#allocation25_spill]] %s2053_s26  ;;  %v356_v61 = vstv %s2053_s26 }
  0x45   :  { %3731 = sst [smem:[#allocation26_spill]] %s2055_s27  ;;  %v424_v63 = vstv %s2055_s27 }
  0x46   :  { %3732 = sst [smem:[#allocation27_spill]] %s2057_s28  ;;  %v492_v0 = vstv %s2057_s28 }
  0x47   :  { %s2059_s1 = sld [smem:[#allocation2 + $0x26]]  ;;  %191 = vrot.lane.b32.xlu1 %v74_v14, %s3529_s13  ;;  %189 = vrot.lane.b32.xlu0 %v73_v12, %s3529_s13 }
  0x48   :  { %s2063_s29 = sld [smem:[#allocation2 + $0x2f]] }
  0x49   :  { %s2065_s30 = sld [smem:[#allocation2 + $0x38]] }
  0x4a   :  { %s2067_s7 = sld [smem:[#allocation2 + $0x41]] }
  0x4b   :  { %s2069_s8 = sld [smem:[#allocation2]]  ;;  %213 = vrot.lane.b32.xlu1 %v74_v14, %s3535_s19  ;;  %211 = vrot.lane.b32.xlu0 %v73_v12, %s3535_s19 }
  0x4c   :  { %s2073_s10 = sld [smem:[#allocation2 + $0x9]] }
  0x4d   :  { %3733 = sst [smem:[#allocation28_spill]] %s2059_s1  ;;  %v560_v1 = vstv %s2059_s1 }
  0x4e   :  { %3734 = sst [smem:[#allocation29_spill]] %s2063_s29  ;;  %v628_v4 = vstv %s2063_s29 }
  0x4f   :  { %3735 = sst [smem:[#allocation30_spill]] %s2065_s30 }
  0x50   :  { %3736 = sst [smem:[#allocation31_spill]] %s2067_s7 }
  0x51   :  { %3737 = sst [smem:[#allocation32_spill]] %s2069_s8 }
  0x52   :  { %3738 = sst [smem:[#allocation33_spill]] %s2073_s10 }
  0x53   :  { %s2075_s11 = sld [smem:[#allocation2 + $0x12]] }
  0x54   :  { %s2077_s12 = sld [smem:[#allocation2 + $0x1b]] }
  0x55   :  { %s2079_s3 = sld [smem:[#allocation2 + $0x24]] }
  0x56   :  { %s2083_s14 = sld [smem:[#allocation2 + $0x2d]] }
  0x57   :  { %s2085_s15 = sld [smem:[#allocation2 + $0x36]] }
  0x58   :  { %s2087_s25 = sld [smem:[#allocation2 + $0x3f]] }
  0x59   :  { %3739 = sst [smem:[#allocation34_spill]] %s2075_s11 }
  0x5a   :  { %3740 = sst [smem:[#allocation35_spill]] %s2077_s12 }
  0x5b   :  { %3741 = sst [smem:[#allocation36_spill]] %s2079_s3  ;;  %s3547_s3 = smov 111  }
  0x5c   :  { %3742 = sst [smem:[#allocation37_spill]] %s2083_s14  ;;  %s3543_s14 = smov 112  }
  0x5d   :  { %3743 = sst [smem:[#allocation38_spill]] %s2085_s15  ;;  %235 = vrot.lane.b32.xlu1 %v74_v14, %s3543_s14  ;;  %233 = vrot.lane.b32.xlu0 %v73_v12, %s3543_s14 }
  0x5e   :  { %3744 = sst [smem:[#allocation39_spill]] %s2087_s25 }
  0x5f   :  { %s2089_s9 = sld [smem:[#allocation2 + $0x3]] }
  0x60   :  { %s2093_s20 = sld [smem:[#allocation2 + $0xc]] }
  0x61   :  { %s2095_s6 = sld [smem:[#allocation2 + $0x15]]  ;;  %257 = vrot.lane.b32.xlu1 %v74_v14, %s3547_s3  ;;  %255 = vrot.lane.b32.xlu0 %v73_v12, %s3547_s3 }
  0x62   :  { %s2097_s5 = sld [smem:[#allocation2 + $0x1e]] }
  0x63   :  { %s2099_s13 = sld [smem:[#allocation2 + $0x27]] }
  0x64   :  { %s2103_s25 = sld [smem:[#allocation2 + $0x30]] }
  0x65   :  { %3745 = sst [smem:[#allocation40_spill]] %s2089_s9 }
  0x66   :  { %3746 = sst [smem:[#allocation41_spill]] %s2093_s20 }
  0x67   :  { %3747 = sst [smem:[#allocation42_spill]] %s2095_s6 }
  0x68   :  { %3748 = sst [smem:[#allocation43_spill]] %s2097_s5 }
  0x69   :  { %3749 = sst [smem:[#allocation44_spill]] %s2099_s13 }
  0x6a   :  { %3750 = sst [smem:[#allocation45_spill]] %s2103_s25 }
  0x6b   :  { %s2105_s9 = sld [smem:[#allocation2 + $0x39]] }
  0x6c   :  { %s2107_s15 = sld [smem:[#allocation2 + $0x42]] }
  0x6d   :  { %s1600_s19 = sld [smem:[#allocation2 + $0x4]] }
  0x6e   :  { %s2111_s5 = sld [smem:[#allocation2 + $0x5]] }
  0x6f   :  { %s1610_s13 = sld [smem:[#allocation2 + $0xd]] }
  0x70   :  { %s2113_s6 = sld [smem:[#allocation2 + $0xe]] }
  0x71   :  { %3751 = sst [smem:[#allocation46_spill]] %s2105_s9 }
  0x72   :  { %3752 = sst [smem:[#allocation47_spill]] %s2107_s15 }
  0x73   :  { %s1620_s20 = sld [smem:[#allocation2 + $0x16]]  ;;  %v300_v17 = vstv %s1600_s19 }
  0x74   :  { %3753 = sst [smem:[#allocation48_spill]] %s2111_s5  ;;  %v301_v18 = vmul.f32 %v300_v17, %v2047_v16 }
  0x75   :  { %s2115_s12 = sld [smem:[#allocation2 + $0x17]]  ;;  %v368_v19 = vstv %s1610_s13 }
  0x76   :  { %3754 = sst [smem:[#allocation49_spill]] %s2113_s6  ;;  %v2121_v20 = vrot.slane %v301_v18, %v2019_v9  ;;  %v369_v21 = vmul.f32 %v368_v19, %v2047_v16  ;;  %v2330_v19 = vrot.slane %v1593_v3, %v2013_v7 }
  0x77   :  { %s1630_s14 = sld [smem:[#allocation2 + $0x1f]] }
  0x78   :  { %s2118_s9 = sld [smem:[#allocation2 + $0x20]]  ;;  %3757 = vst [vmem:[#allocation52_spill] sm:$0xff] %v2121_v20  ;;  %v2127_v23 = vrot.slane %v369_v21, %v2019_v9  ;;  %3842 = vst [vmem:[#allocation122_spill] sm:$0xff] %v2330_v19  ;;  %v1594_v21 = vld [vmem:[%s3515_s2 + $0xc] sm:$0x3] }
  0x79   :  { %s1640_s15 = sld [smem:[#allocation2 + $0x28]]  ;;  %v436_v22 = vstv %s1620_s20 }
  0x7a   :  { %s2124_s3 = sld [smem:[#allocation2 + $0x29]]  ;;  %3759 = vst [vmem:[#allocation54_spill] sm:$0xff] %v2127_v23  ;;  %v437_v24 = vmul.f32 %v436_v22, %v2047_v16 }
  0x7b   :  { %3755 = sst [smem:[#allocation50_spill]] %s2115_s12 }
  0x7c   :  { %s1650_s6 = sld [smem:[#allocation2 + $0x31]]  ;;  %v2133_v26 = vrot.slane %v437_v24, %v2019_v9 }
  0x7d   :  { %s2130_s19 = sld [smem:[#allocation2 + $0x32]]  ;;  %v504_v25 = vstv %s1630_s14 }
  0x7e   :  { %3756 = sst [smem:[#allocation51_spill]] %s2118_s9  ;;  %3761 = vst [vmem:[#allocation56_spill] sm:$0xff] %v2133_v26  ;;  %v505_v27 = vmul.f32 %v504_v25, %v2047_v16 }
  0x7f   :  { %s1660_s9 = sld [smem:[#allocation2 + $0x3a]]  ;;  %v572_v28 = vstv %s1640_s15 }
  0x80   :  { %3758 = sst [smem:[#allocation53_spill]] %s2124_s3  ;;  %v2139_v29 = vrot.slane %v505_v27, %v2019_v9  ;;  %v573_v30 = vmul.f32 %v572_v28, %v2047_v16  ;;  %v2341_v27 = vrot.slane %v1593_v3, %v2015_v8  ;;  %v2368_v3 = vrot.slane %v1594_v21, %v2015_v8 }
  0x81   :  { %s2136_s13 = sld [smem:[#allocation2 + $0x3b]] }
  0x82   :  { %s1670_s3 = sld [smem:[#allocation2 + $0x43]]  ;;  %3763 = vst [vmem:[#allocation58_spill] sm:$0xff] %v2139_v29  ;;  %v640_v31 = vstv %s1650_s6  ;;  %v2147_v32 = vrot.slane %v573_v30, %v2019_v9  ;;  %3845 = vst [vmem:[#allocation124_spill] sm:$0xff] %v2341_v27 }
  0x83   :  { %3760 = sst [smem:[#allocation55_spill]] %s2130_s19  ;;  %v641_v33 = vmul.f32 %v640_v31, %v2047_v16  ;;  %3856 = vst [vmem:[#allocation129_spill] sm:$0xff] %v2368_v3 }
  0x84   :  { %s2142_s20 = sld [smem:[#allocation2 + $0x44]]  ;;  %3766 = vst [vmem:[#allocation61_spill] sm:$0xff] %v2147_v32 }
  0x85   :  { %s2144_s19 = sld [smem:[#allocation2 + $0x6]]  ;;  %v708_v34 = vstv %s1660_s9  ;;  %v2155_v35 = vrot.slane %v641_v33, %v2019_v9  ;;  %v2385_v33 = vrot.slane %v1595_v41, %v2013_v7 }
  0x86   :  { %s2150_s14 = sld [smem:[#allocation2 + $0xf]]  ;;  %v709_v36 = vmul.f32 %v708_v34, %v2047_v16  ;;  %v1596_v34 = vld [vmem:[%s3515_s2 + $0x10] sm:$0x3] }
  0x87   :  { %3762 = sst [smem:[#allocation57_spill]] %s2136_s13  ;;  %3769 = vst [vmem:[#allocation64_spill] sm:$0xff] %v2155_v35  ;;  %3864 = vst [vmem:[#allocation132_spill] sm:$0xff] %v2385_v33  ;;  %v2413_v30 = vrot.slane %v1596_v34, %v2013_v7  ;;  %v2421_v42 = vrot.slane %v1596_v34, %v2015_v8 }
  0x88   :  { %s2152_s15 = sld [smem:[#allocation2 + $0x18]]  ;;  %v776_v37 = vstv %s1670_s3  ;;  %v2163_v38 = vrot.slane %v709_v36, %v2019_v9 }
  0x89   :  { %s2158_s13 = sld [smem:[#allocation2 + $0x21]]  ;;  %v777_v39 = vmul.f32 %v776_v37, %v2047_v16  ;;  %3880 = vst [vmem:[#allocation137_spill] sm:$0xff] %v2413_v30  ;;  %3885 = vst [vmem:[#allocation139_spill] sm:$0xff] %v2421_v42 }
  0x8a   :  { %3764 = sst [smem:[#allocation59_spill]] %s2142_s20  ;;  %3772 = vst [vmem:[#allocation67_spill] sm:$0xff] %v2163_v38 }
  0x8b   :  { %3765 = sst [smem:[#allocation60_spill]] %s2144_s19  ;;  %v2171_v40 = vrot.slane %v777_v39, %v2019_v9  ;;  %v2355_v39 = vrot.slane %v1594_v21, %v2013_v7 }
  0x8c   :  { %3767 = sst [smem:[#allocation62_spill]] %s2150_s14 }
  0x8d   :  { %s2160_s6 = sld [smem:[#allocation2 + $0x2a]]  ;;  %3775 = vst [vmem:[#allocation70_spill] sm:$0xff] %v2171_v40  ;;  %3852 = vst [vmem:[#allocation127_spill] sm:$0xff] %v2355_v39 }
  0x8e   :  { %3768 = sst [smem:[#allocation63_spill]] %s2152_s15 }
  0x8f   :  { %3770 = sst [smem:[#allocation65_spill]] %s2158_s13 }
  0x90   :  { %s2166_s19 = sld [smem:[#allocation2 + $0x33]] }
  0x91   :  { %s2168_s9 = sld [smem:[#allocation2 + $0x3c]] }
  0x92   :  { %s2173_s15 = sld [smem:[#allocation2 + $0x45]] }
  0x93   :  { %3771 = sst [smem:[#allocation66_spill]] %s2160_s6 }
  0x94   :  { %s2175_s14 = sld [smem:[#allocation2 + $0x7]] }
  0x95   :  { %s2177_s13 = sld [smem:[#allocation2 + $0x10]] }
  0x96   :  { %3773 = sst [smem:[#allocation68_spill]] %s2166_s19 }
  0x97   :  { %3774 = sst [smem:[#allocation69_spill]] %s2168_s9 }
  0x98   :  { %3776 = sst [smem:[#allocation71_spill]] %s2173_s15 }
  0x99   :  { %s2179_s3 = sld [smem:[#allocation2 + $0x19]] }
  0x9a   :  { %3777 = sst [smem:[#allocation72_spill]] %s2175_s14 }
  0x9b   :  { %3778 = sst [smem:[#allocation73_spill]] %s2177_s13 }
  0x9c   :  { %s2181_s6 = sld [smem:[#allocation2 + $0x22]] }
  0x9d   :  { %s2183_s20 = sld [smem:[#allocation2 + $0x2b]] }
  0x9e   :  { %s2185_s12 = sld [smem:[#allocation2 + $0x34]] }
  0x9f   :  { %3779 = sst [smem:[#allocation74_spill]] %s2179_s3 }
  0xa0   :  { %s2187_s19 = sld [smem:[#allocation2 + $0x3d]] }
  0xa1   :  { %s2189_s9 = sld [smem:[#allocation2 + $0x46]] }
  0xa2   :  { %3780 = sst [smem:[#allocation75_spill]] %s2181_s6 }
  0xa3   :  { %3781 = sst [smem:[#allocation76_spill]] %s2183_s20 }
  0xa4   :  { %3782 = sst [smem:[#allocation77_spill]] %s2185_s12 }
  0xa5   :  { %s2191_s5 = sld [smem:[#allocation2 + $0x8]] }
  0xa6   :  { %3783 = sst [smem:[#allocation78_spill]] %s2187_s19 }
  0xa7   :  { %3784 = sst [smem:[#allocation79_spill]] %s2189_s9 }
  0xa8   :  { %s2193_s25 = sld [smem:[#allocation2 + $0x48]] }
  0xa9   :  { %s2195_s15 = sld [smem:[#allocation2 + $0x11]]  ;;  %v101_v8 = vpop.permute.xlu1 %100  ;;  %v2474_v37 = vpop.permute.xlu0 %77 }
  0xaa   :  { %s2197_s14 = sld [smem:[#allocation2 + $0x49]] }
  0xab   :  { %3785 = sst [smem:[#allocation80_spill]] %s2191_s5 }
  0xac   :  { %s2199_s13 = sld [smem:[#allocation2 + $0x1a]] }
  0xad   :  { %s2201_s3 = sld [smem:[#allocation2 + $0x4a]]  ;;  %v123_v31 = vpop.permute.xlu0 %122  ;;  %v103_v41 = vpop.permute.xlu1 %102 }
  0xae   :  { %3786 = sst [smem:[#allocation81_spill]] %s2193_s25  ;;  %v105_v25 = vsel %vm104_vm0, %v101_v8, %v103_v41  ;;  %v106_v22 = vsel %vm104_vm0, %v103_v41, %v101_v8 }
  0xaf   :  { %3787 = sst [smem:[#allocation82_spill]] %s2195_s15  ;;  %v120_v50 = vmul.f32 %v2260_v45, %v106_v22  ;;  %v121_v7 = vmul.f32 %v2265_v46, %v105_v25 }
  0xb0   :  { %3788 = sst [smem:[#allocation83_spill]] %s2197_s14 }
  0xb1   :  { %s2203_s6 = sld [smem:[#allocation2 + $0x23]]  ;;  %v125_v22 = vpop.permute.xlu1 %124  ;;  %v80_v25 = vpop.permute.xlu0 %79  ;;  %v283_v28 = vmul.f32 %v282_v51, %v120_v50  ;;  %v284_v41 = vmul.f32 %v282_v51, %v121_v7  ;;  %v351_v8 = vmul.f32 %v350_v52, %v120_v50  ;;  %v352_v24 = vmul.f32 %v350_v52, %v121_v7 }
  0xb2   :  { %3789 = sst [smem:[#allocation84_spill]] %s2199_s13  ;;  %v2535_v17 = vmul.f32 %v418_v53, %v120_v50  ;;  %v2539_v16 = vmul.f32 %v418_v53, %v121_v7  ;;  %v2543_v34 = vmul.f32 %v486_v55, %v120_v50  ;;  %v2547_v18 = vmul.f32 %v486_v55, %v121_v7 }
  0xb3   :  { %3790 = sst [smem:[#allocation85_spill]] %s2201_s3  ;;  %v2551_v51 = vmul.f32 %v554_v56, %v120_v50  ;;  %v2555_v52 = vmul.f32 %v554_v56, %v121_v7  ;;  %v2559_v36 = vmul.f32 %v622_v57, %v120_v50  ;;  %v2563_v53 = vmul.f32 %v622_v57, %v121_v7 }
  0xb4   :  { %s2205_s20 = sld [smem:[#allocation2 + $0x4b]]  ;;  %v127_v21 = vsel %vm126_vm1, %v123_v31, %v125_v22  ;;  %v128_v55 = vsel %vm126_vm1, %v125_v22, %v123_v31  ;;  %v84_v15 = vsel %vm83_vm2, %v2474_v37, %v80_v25  ;;  %v85_v56 = vsel %vm83_vm2, %v80_v25, %v2474_v37 }
  0xb5   :  { %s2207_s12 = sld [smem:[#allocation2 + $0x2c]]  ;;  %v147_v57 = vpop.permute.xlu1 %146  ;;  %v145_v14 = vpop.permute.xlu0 %144  ;;  %v691_v13 = vmul.f32 %v690_v58, %v120_v50  ;;  %v692_v31 = vmul.f32 %v690_v58, %v121_v7  ;;  %v142_v22 = vmul.f32 %v2268_v47, %v128_v55  ;;  %v143_v6 = vmul.f32 %v2271_v48, %v127_v21 }
  0xb6   :  { %s2209_s19 = sld [smem:[#allocation2 + $0x4c]]  ;;  %v759_v5 = vmul.f32 %v758_v59, %v120_v50  ;;  %v760_v37 = vmul.f32 %v758_v59, %v121_v7  ;;  %v98_v25 = vmul.f32 %v2274_v49, %v85_v56  ;;  %v99_v12 = vmul.f32 %v2285_v54, %v84_v15 }
  0xb7   :  { %3791 = sst [smem:[#allocation86_spill]] %s2203_s6  ;;  %v2589_v58 = vsel %vm148_vm3, %v145_v14, %v147_v57  ;;  %v2593_v21 = vsel %vm148_vm3, %v147_v57, %v145_v14  ;;  %v289_v7 = vmul.f32 %v288_v60, %v142_v22  ;;  %v290_v15 = vmul.f32 %v288_v60, %v143_v6 }
  0xb8   :  { %s2211_s9 = sld [smem:[#allocation2 + $0x35]]  ;;  %v357_v55 = vmul.f32 %v356_v61, %v142_v22  ;;  %v358_v56 = vmul.f32 %v356_v61, %v143_v6  ;;  %v425_v14 = vmul.f32 %v424_v63, %v142_v22  ;;  %v426_v57 = vmul.f32 %v424_v63, %v143_v6 }
  0xb9   :  { %s2213_s5 = sld [smem:[#allocation2 + $0x4d]]  ;;  %v493_v59 = vmul.f32 %v492_v0, %v142_v22  ;;  %v494_v50 = vmul.f32 %v492_v0, %v143_v6  ;;  %v561_v60 = vmul.f32 %v560_v1, %v142_v22  ;;  %v562_v9 = vmul.f32 %v560_v1, %v143_v6 }
  0xba   :  { %3792 = sst [smem:[#allocation87_spill]] %s2205_s20  ;;  %v629_v11 = vmul.f32 %v628_v4, %v142_v22  ;;  %v630_v61 = vmul.f32 %v628_v4, %v143_v6 }
  0xbb   :  { %3793 = sst [smem:[#allocation88_spill]] %s2207_s12 }
  0xbc   :  { %3794 = sst [smem:[#allocation89_spill]] %s2209_s19 }
  0xbd   :  { %s2215_s25 = sld [smem:[#allocation2 + $0x3e]] }
  0xbe   :  { %3795 = sst [smem:[#allocation90_spill]] %s2211_s9 }
  0xbf   :  { %3796 = sst [smem:[#allocation91_spill]] %s2213_s5 }
  0xc0   :  { %s2217_s15 = sld [smem:[#allocation2 + $0x4e]] }
  0xc1   :  { %s2219_s14 = sld [smem:[#allocation2 + $0x47]] }
  0xc2   :  { %s2221_s13 = sld [smem:[#allocation2 + $0x4f]] }
  0xc3   :  { %3797 = sst [smem:[#allocation92_spill]] %s2215_s25 }
  0xc4   :  { %s2223_s3 = sld [smem:[#allocation2 + $0x50]] }
  0xc5   :  { %s2225_s6 = sld [smem:[#allocation2 + $0x59]] }
  0xc6   :  { %3798 = sst [smem:[#allocation93_spill]] %s2217_s15 }
  0xc7   :  { %3799 = sst [smem:[#allocation94_spill]] %s2219_s14 }
  0xc8   :  { %3800 = sst [smem:[#allocation95_spill]] %s2221_s13 }
  0xc9   :  { %s2227_s20 = sld [smem:[#allocation2 + $0x62]] }
  0xca   :  { %3801 = sst [smem:[#allocation96_spill]] %s2223_s3 }
  0xcb   :  { %3802 = sst [smem:[#allocation97_spill]] %s2225_s6 }
  0xcc   :  { %s2229_s12 = sld [smem:[#allocation2 + $0x6b]] }
  0xcd   :  { %s2231_s19 = sld [smem:[#allocation2 + $0x74]] }
  0xce   :  { %s2233_s9 = sld [smem:[#allocation2 + $0x7d]] }
  0xcf   :  { %3803 = sst [smem:[#allocation98_spill]] %s2227_s20 }
  0xd0   :  { %s2235_s5 = sld [smem:[#allocation2 + $0x86]] }
  0xd1   :  { %s2237_s25 = sld [smem:[#allocation2 + $0x8f]] }
  0xd2   :  { %3804 = sst [smem:[#allocation99_spill]] %s2229_s12 }
  0xd3   :  { %3805 = sst [smem:[#allocation100_spill]] %s2231_s19 }
  0xd4   :  { %3806 = sst [smem:[#allocation101_spill]] %s2233_s9 }
  0xd5   :  { %s2239_s15 = sld [smem:[#allocation2 + $0x51]] }
  0xd6   :  { %3807 = sst [smem:[#allocation102_spill]] %s2235_s5 }
  0xd7   :  { %3808 = sst [smem:[#allocation103_spill]] %s2237_s25 }
  0xd8   :  { %s2244_s6 = sld [smem:[#allocation2 + $0x5a]] }
  0xd9   :  { %s2252_s25 = sld [smem:[#allocation2 + $0x63]] }
  0xda   :  { %s2262_s12 = sld [smem:[#allocation2 + $0x75]] }
  0xdb   :  { %3809 = sst [smem:[#allocation104_spill]] %s2239_s15 }
  0xdc   :  { %s2254_s15 = sld [smem:[#allocation2 + $0x6c]] }
  0xdd   :  { %s2279_s20 = sld [smem:[#allocation2 + $0x7e]] }
  0xde   :  { %3810 = sst [smem:[#allocation105_spill]] %s2244_s6 }
  0xdf   :  { %3811 = sst [smem:[#allocation106_spill]] %s2252_s25 }
  0xe0   :  { %3814 = sst [smem:[#allocation109_spill]] %s2262_s12 }
  0xe1   :  { %s2287_s14 = sld [smem:[#allocation2 + $0x87]] }
  0xe2   :  { %3812 = sst [smem:[#allocation107_spill]] %s2254_s15 }
  0xe3   :  { %3819 = sst [smem:[#allocation114_spill]] %s2279_s20 }
  0xe4   :  { %s2293_s9 = sld [smem:[#allocation2 + $0x90]] }
  0xe5   :  { %s2301_s0 = sld [smem:[#allocation2 + $0x52]] }
  0xe6   :  { %s2312_s26 = sld [smem:[#allocation2 + $0x5b]] }
  0xe7   :  { %s2318_s28 = sld [smem:[#allocation2 + $0x64]] }
  0xe8   :  { %s2324_s24 = sld [smem:[#allocation2 + $0x6d]] }
  0xe9   :  { %s2335_s11 = sld [smem:[#allocation2 + $0x76]] }
  0xea   :  { %3821 = sst [smem:[#allocation116_spill]] %s2293_s9 }
  0xeb   :  { %3824 = sst [smem:[#allocation117_spill]] %s2301_s0 }
  0xec   :  { %3829 = sst [smem:[#allocation119_spill]] %s2312_s26 }
  0xed   :  { %3833 = sst [smem:[#allocation120_spill]] %s2318_s28 }
  0xee   :  { %3838 = sst [smem:[#allocation121_spill]] %s2324_s24 }
  0xef   :  { %3843 = sst [smem:[#allocation123_spill]] %s2335_s11 }
  0xf0   :  { %s2343_s21 = sld [smem:[#allocation2 + $0x7f]] }
  0xf1   :  { %s2349_s19 = sld [smem:[#allocation2 + $0x88]] }
  0xf2   :  { %s2360_s1 = sld [smem:[#allocation2 + $0x91]] }
  0xf3   :  { %s2370_s30 = sld [smem:[#allocation2 + $0x53]] }
  0xf4   :  { %s2378_s23 = sld [smem:[#allocation2 + $0x5c]] }
  0xf5   :  { %s2390_s22 = sld [smem:[#allocation2 + $0x65]] }
  0xf6   :  { %3846 = sst [smem:[#allocation125_spill]] %s2343_s21 }
  0xf7   :  { %3849 = sst [smem:[#allocation126_spill]] %s2349_s19 }
  0xf8   :  { %3853 = sst [smem:[#allocation128_spill]] %s2360_s1 }
  0xf9   :  { %3857 = sst [smem:[#allocation130_spill]] %s2370_s30 }
  0xfa   :  { %3860 = sst [smem:[#allocation131_spill]] %s2378_s23 }
  0xfb   :  { %3865 = sst [smem:[#allocation133_spill]] %s2390_s22 }
  0xfc   :  { %s2399_s10 = sld [smem:[#allocation2 + $0x6e]] }
  0xfd   :  { %s2407_s29 = sld [smem:[#allocation2 + $0x77]] }
  0xfe   :  { %s2415_s21 = sld [smem:[#allocation2 + $0x80]] }
  0xff   :  { %s3883_s16 = sld [smem:[#allocation82_spill]] }
 0x100   :  { %s3888_s4 = sld [smem:[#allocation85_spill]] }
 0x101   :  { %s3889_s0 = sld [smem:[#allocation86_spill]] }
 0x102   :  { %3870 = sst [smem:[#allocation135_spill]] %s2399_s10 }
 0x103   :  { %3875 = sst [smem:[#allocation136_spill]] %s2407_s29 }
 0x104   :  { %3881 = sst [smem:[#allocation138_spill]] %s2415_s21 }
 0x105   :  { %s2423_s29 = sld [smem:[#allocation2 + $0x89]] }
 0x106   :  { %s3890_s24 = sld [smem:[#allocation87_spill]] }
 0x107   :  { %s2429_s18 = sld [smem:[#allocation2 + $0x92]] }
 0x108   :  { %s2435_s9 = sld [smem:[#allocation2 + $0x55]] }
 0x109   :  { %s2442_s7 = sld [smem:[#allocation2 + $0x5e]] }
 0x10a   :  { %s2454_s13 = sld [smem:[#allocation2 + $0x70]] }
 0x10b   :  { %3887 = sst [smem:[#allocation82_spill]] %s2423_s29 }
 0x10c   :  { %s2460_s21 = sld [smem:[#allocation2 + $0x79]] }
 0x10d   :  { %3892 = sst [smem:[#allocation85_spill]] %s2429_s18 }
 0x10e   :  { %3897 = sst [smem:[#allocation86_spill]] %s2435_s9 }
 0x10f   :  { %s2448_s9 = sld [smem:[#allocation2 + $0x67]] }
 0x110   :  { %s2466_s28 = sld [smem:[#allocation2 + $0x82]] }
 0x111   :  { %s3909_s23 = sld [smem:[#allocation116_spill]] }
 0x112   :  { %3908 = sst [smem:[#allocation87_spill]] %s2460_s21 }
 0x113   :  { %s3910_s2 = sld [smem:[#allocation117_spill]] }
 0x114   :  { %s3911_s30 = sld [smem:[#allocation119_spill]] }
 0x115   :  { %s2472_s3 = sld [smem:[#allocation2 + $0x8b]] }
 0x116   :  { %s3913_s17 = sld [smem:[#allocation120_spill]] }
 0x117   :  { %s3914_s26 = sld [smem:[#allocation121_spill]] }
 0x118   :  { %s3915_s10 = sld [smem:[#allocation123_spill]] }
 0x119   :  { %s3916_s8 = sld [smem:[#allocation125_spill]] }
 0x11a   :  { %s3917_s19 = sld [smem:[#allocation126_spill]] }
 0x11b   :  { %3912 = sst [smem:[#allocation116_spill]] %s2472_s3 }
 0x11c   :  { %s2480_s22 = sld [smem:[#allocation2 + $0x94]] }
 0x11d   :  { %s2488_s25 = sld [smem:[#allocation2 + $0x56]] }
 0x11e   :  { %s3927_s15 = sld [smem:[#allocation85_spill]] }
 0x11f   :  { %s3928_s20 = sld [smem:[#allocation86_spill]] }
 0x120   :  { %s2513_s1 = sld [smem:[#allocation2 + $0x5f]] }
 0x121   :  { %s2519_s5 = sld [smem:[#allocation2 + $0x68]] }
 0x122   :  { %3920 = sst [smem:[#allocation117_spill]] %s2480_s22 }
 0x123   :  { %3925 = sst [smem:[#allocation119_spill]] %s2488_s25 }
 0x124   :  { %s3944_s21 = sld [smem:[#allocation32_spill]] }
 0x125   :  { %s3945_s25 = sld [smem:[#allocation33_spill]] }
 0x126   :  { %3931 = sst [smem:[#allocation120_spill]] %s2513_s1 }
 0x127   :  { %s3946_s22 = sld [smem:[#allocation30_spill]] }
 0x128   :  { %s3947_s3 = sld [smem:[#allocation31_spill]] }
 0x129   :  { %s3948_s1 = sld [smem:[#allocation34_spill]] }
 0x12a   :  { %s3949_s29 = sld [smem:[#allocation35_spill]]  ;;  %v3950_v10 = vstv %s3944_s21 }
 0x12b   :  { %v279_v48 = vmul.f32 %v3950_v10, %v98_v25  ;;  %v3951_v47 = vmov %v3950_v10  ;;  %v3952_v54 = vstv %s3945_s25  ;;  %s3953_s18 = sld [smem:[#allocation36_spill]] }
 0x12c   :  { %v280_v63 = vmul.f32 %v3951_v47, %v99_v12  ;;  %v347_v49 = vmul.f32 %v3952_v54, %v98_v25  ;;  %v3954_v46 = vmov %v3952_v54  ;;  %s3956_s11 = sld [smem:[#allocation37_spill]] }
 0x12d   :  { %v348_v0 = vmul.f32 %v3954_v46, %v99_v12  ;;  %v3955_v45 = vstv %s3946_s22  ;;  %s3960_s6 = sld [smem:[#allocation38_spill]]  ;;  %v285_v35 = vadd.f32 %v283_v28, %v279_v48 }
 0x12e   :  { %v697_v42 = vmul.f32 %v3955_v45, %v142_v22  ;;  %v3957_v30 = vmov %v3955_v45  ;;  %v3958_v43 = vstv %s3947_s3  ;;  %s3962_s12 = sld [smem:[#allocation39_spill]]  ;;  %v353_v32 = vadd.f32 %v351_v8, %v347_v49  ;;  %v192_v8 = vpop.permute.xlu1 %191 }
 0x12f   :  { %v698_v1 = vmul.f32 %v3957_v30, %v143_v6  ;;  %v765_v33 = vmul.f32 %v3958_v43, %v142_v22  ;;  %v3959_v3 = vmov %v3958_v43  ;;  %v3961_v10 = vstv %s3948_s1  ;;  %s3974_s22 = sld [smem:[#allocation40_spill]] }
 0x130   :  { %v766_v4 = vmul.f32 %v3959_v3, %v143_v6  ;;  %v415_v47 = vmul.f32 %v3961_v10, %v98_v25  ;;  %v3963_v54 = vmov %v3961_v10  ;;  %v3964_v39 = vstv %s3949_s29  ;;  %s3975_s1 = sld [smem:[#allocation41_spill]] }
 0x131   :  { %v416_v46 = vmul.f32 %v3963_v54, %v99_v12  ;;  %v483_v40 = vmul.f32 %v3964_v39, %v98_v25  ;;  %v3965_v45 = vmov %v3964_v39  ;;  %v286_v30 = vadd.f32 %v284_v41, %v280_v63  ;;  %s3977_s3 = sld [smem:[#allocation42_spill]] }
 0x132   :  { %v484_v38 = vmul.f32 %v3965_v45, %v99_v12  ;;  %v354_v43 = vadd.f32 %v352_v24, %v348_v0  ;;  %v3966_v22 = vstv %s3953_s18  ;;  %v3968_v26 = vstv %s3956_s11  ;;  %s3978_s27 = sld [smem:[#allocation43_spill]] }
 0x133   :  { %v551_v29 = vmul.f32 %v3966_v22, %v98_v25  ;;  %v3967_v6 = vmov %v3966_v22  ;;  %v619_v23 = vmul.f32 %v3968_v26, %v98_v25  ;;  %v3969_v20 = vmov %v3968_v26  ;;  %s3981_s21 = sld [smem:[#allocation44_spill]] }
 0x134   :  { %v552_v3 = vmul.f32 %v3967_v6, %v99_v12  ;;  %v620_v27 = vmul.f32 %v3969_v20, %v99_v12  ;;  %v3970_v10 = vstv %s3960_s6  ;;  %v3972_v2 = vstv %s3962_s12  ;;  %v190_v20 = vpop.permute.xlu0 %189  ;;  %s3984_s25 = sld [smem:[#allocation45_spill]] }
 0x135   :  { %v687_v54 = vmul.f32 %v3970_v10, %v98_v25  ;;  %v3971_v19 = vmov %v3970_v10  ;;  %v755_v45 = vmul.f32 %v3972_v2, %v98_v25  ;;  %v3973_v48 = vmov %v3972_v2  ;;  %s3987_s29 = sld [smem:[#allocation46_spill]] }
 0x136   :  { %v688_v39 = vmul.f32 %v3971_v19, %v99_v12  ;;  %v756_v28 = vmul.f32 %v3973_v48, %v99_v12  ;;  %v421_v49 = vadd.f32 %v2535_v17, %v415_v47  ;;  %v422_v24 = vadd.f32 %v2539_v16, %v416_v46  ;;  %s3988_s18 = sld [smem:[#allocation47_spill]] }
 0x137   :  { %v489_v41 = vadd.f32 %v2543_v34, %v483_v40  ;;  %v490_v26 = vadd.f32 %v2547_v18, %v484_v38  ;;  %v557_v63 = vadd.f32 %v2551_v51, %v551_v29  ;;  %v558_v0 = vadd.f32 %v2555_v52, %v552_v3  ;;  %v214_v52 = vpop.permute.xlu1 %213  ;;  %s4001_s11 = sld [smem:[#allocation48_spill]] }
 0x138   :  { %v625_v19 = vadd.f32 %v2559_v36, %v619_v23  ;;  %v626_v2 = vadd.f32 %v2563_v53, %v620_v27  ;;  %v693_v25 = vadd.f32 %v691_v13, %v687_v54  ;;  %v694_v12 = vadd.f32 %v692_v31, %v688_v39  ;;  %s4003_s6 = sld [smem:[#allocation49_spill]] }
 0x139   :  { %v761_v22 = vadd.f32 %v759_v5, %v755_v45  ;;  %v762_v17 = vadd.f32 %v760_v37, %v756_v28  ;;  %v291_v47 = vadd.f32 %v289_v7, %v285_v35  ;;  %v292_v16 = vadd.f32 %v290_v15, %v286_v30  ;;  %v3976_v35 = vld [vmem:[#allocation118_spill] sm:$0xff]  ;;  %s4010_s12 = sld [smem:[#allocation50_spill]] }
 0x13a   :  { %v359_v46 = vadd.f32 %v357_v55, %v353_v32  ;;  %v360_v40 = vadd.f32 %v358_v56, %v354_v43  ;;  %v427_v34 = vadd.f32 %v425_v14, %v421_v49  ;;  %v428_v38 = vadd.f32 %v426_v57, %v422_v24  ;;  %v3985_v14 = vld [vmem:[#allocation122_spill] sm:$0xff] }
 0x13b   :  { %v495_v18 = vadd.f32 %v493_v59, %v489_v41  ;;  %v496_v6 = vadd.f32 %v494_v50, %v490_v26  ;;  %v563_v29 = vadd.f32 %v561_v60, %v557_v63  ;;  %v564_v51 = vadd.f32 %v562_v9, %v558_v0  ;;  %v212_v9 = vpop.permute.xlu0 %211  ;;  %v3986_v60 = vld [vmem:[#allocation124_spill] sm:$0xff] }
 0x13c   :  { %v631_v23 = vadd.f32 %v629_v11, %v625_v19  ;;  %v632_v27 = vadd.f32 %v630_v61, %v626_v2  ;;  %v164_v5 = vmul.f32 %v2299_v62, %v2593_v21  ;;  %v165_v13 = vmul.f32 %v3976_v35, %v2589_v58 }
 0x13d   :  { %v194_v32 = vsel %vm193_vm4, %v190_v20, %v192_v8  ;;  %v195_v36 = vsel %vm193_vm4, %v192_v8, %v190_v20  ;;  %v699_v11 = vadd.f32 %v697_v42, %v693_v25  ;;  %v700_v53 = vadd.f32 %v698_v1, %v694_v12 }
 0x13e   :  { %v767_v31 = vadd.f32 %v765_v33, %v761_v22  ;;  %v768_v37 = vadd.f32 %v766_v4, %v762_v17  ;;  %v3979_v21 = vstv %s3974_s22  ;;  %v3982_v7 = vstv %s3975_s1  ;;  %s4013_s22 = sld [smem:[#allocation51_spill]] }
 0x13f   :  { %v295_v50 = vmul.f32 %v3979_v21, %v164_v5  ;;  %v3980_v59 = vmov %v3979_v21  ;;  %v363_v15 = vmul.f32 %v3982_v7, %v164_v5  ;;  %v3983_v55 = vmov %v3982_v7  ;;  %s4021_s1 = sld [smem:[#allocation53_spill]] }
 0x140   :  { %v296_v58 = vmul.f32 %v3980_v59, %v165_v13  ;;  %v364_v56 = vmul.f32 %v3983_v55, %v165_v13  ;;  %v2688_v57 = vmul.f32 %v3985_v14, %v194_v32  ;;  %v2691_v42 = vmul.f32 %v3986_v60, %v195_v36 }
 0x141   :  { %v2695_v33 = vsel %vm215_vm5, %v212_v9, %v214_v52  ;;  %v2699_v61 = vsel %vm215_vm5, %v214_v52, %v212_v9  ;;  %v3989_v1 = vstv %s3977_s3  ;;  %v3991_v3 = vstv %s3978_s27  ;;  %s4024_s3 = sld [smem:[#allocation55_spill]] }
 0x142   :  { %v431_v4 = vmul.f32 %v3989_v1, %v164_v5  ;;  %v3990_v30 = vmov %v3989_v1  ;;  %v499_v10 = vmul.f32 %v3991_v3, %v164_v5  ;;  %v3992_v54 = vmov %v3991_v3  ;;  %s4027_s27 = sld [smem:[#allocation57_spill]] }
 0x143   :  { %v432_v43 = vmul.f32 %v3990_v30, %v165_v13  ;;  %v500_v39 = vmul.f32 %v3992_v54, %v165_v13  ;;  %v297_v45 = vadd.f32 %v295_v50, %v291_v47  ;;  %v298_v48 = vadd.f32 %v296_v58, %v292_v16 }
 0x144   :  { %v365_v28 = vadd.f32 %v363_v15, %v359_v46  ;;  %v366_v49 = vadd.f32 %v364_v56, %v360_v40  ;;  %v3993_v24 = vstv %s3981_s21  ;;  %v3995_v20 = vstv %s3984_s25  ;;  %v4002_v56 = vld [vmem:[#allocation52_spill] sm:$0xff]  ;;  %s4030_s21 = sld [smem:[#allocation59_spill]] }
 0x145   :  { %v567_v41 = vmul.f32 %v3993_v24, %v164_v5  ;;  %v3994_v26 = vmov %v3993_v24  ;;  %v635_v63 = vmul.f32 %v3995_v20, %v164_v5  ;;  %v3996_v0 = vmov %v3995_v20  ;;  %s4041_s25 = sld [smem:[#allocation60_spill]] }
 0x146   :  { %v568_v8 = vmul.f32 %v3994_v26, %v165_v13  ;;  %v636_v19 = vmul.f32 %v3996_v0, %v165_v13  ;;  %v3997_v2 = vstv %s3987_s29  ;;  %v3999_v17 = vstv %s3988_s18  ;;  %s4042_s29 = sld [smem:[#allocation62_spill]] }
 0x147   :  { %v703_v25 = vmul.f32 %v3997_v2, %v164_v5  ;;  %v3998_v12 = vmov %v3997_v2  ;;  %v771_v32 = vmul.f32 %v3999_v17, %v164_v5  ;;  %v4000_v36 = vmov %v3999_v17  ;;  %s4045_s18 = sld [smem:[#allocation63_spill]] }
 0x148   :  { %v704_v22 = vmul.f32 %v3998_v12, %v165_v13  ;;  %v772_v52 = vmul.f32 %v4000_v36, %v165_v13  ;;  %v433_v47 = vadd.f32 %v431_v4, %v427_v34  ;;  %v434_v16 = vadd.f32 %v432_v43, %v428_v38  ;;  %v4005_v38 = vld [vmem:[#allocation54_spill] sm:$0xff]  ;;  %v4012_v4 = vld [vmem:[#allocation61_spill] sm:$0xff] }
 0x149   :  { %v501_v46 = vadd.f32 %v499_v10, %v495_v18  ;;  %v502_v40 = vadd.f32 %v500_v39, %v496_v6  ;;  %v569_v9 = vadd.f32 %v567_v41, %v563_v29  ;;  %v570_v21 = vadd.f32 %v568_v8, %v564_v51  ;;  %v4007_v51 = vld [vmem:[#allocation56_spill] sm:$0xff]  ;;  %v4015_v10 = vld [vmem:[#allocation64_spill] sm:$0xff] }
 0x14a   :  { %v637_v50 = vadd.f32 %v635_v63, %v631_v23  ;;  %v638_v59 = vadd.f32 %v636_v19, %v632_v27  ;;  %v705_v58 = vadd.f32 %v703_v25, %v699_v11  ;;  %v706_v7 = vadd.f32 %v704_v22, %v700_v53  ;;  %v4009_v11 = vld [vmem:[#allocation58_spill] sm:$0xff]  ;;  %v4022_v63 = vld [vmem:[#allocation67_spill] sm:$0xff] }
 0x14b   :  { %v773_v15 = vadd.f32 %v771_v32, %v767_v31  ;;  %v774_v55 = vadd.f32 %v772_v52, %v768_v37  ;;  %v313_v1 = vadd.f32 %v4002_v56, %v297_v45  ;;  %v4004_v5 = vcombine.high %v4002_v56, %v4002_v56  ;;  %v4025_v25 = vld [vmem:[#allocation70_spill] sm:$0xff] }
 0x14c   :  { %v381_v18 = vadd.f32 %v4005_v38, %v365_v28  ;;  %v4006_v6 = vcombine.high %v4005_v38, %v4005_v38  ;;  %v449_v23 = vadd.f32 %v4007_v51, %v433_v47  ;;  %v4008_v27 = vcombine.high %v4007_v51, %v4007_v51 }
 0x14d   :  { %v314_v34 = vadd.f32 %v4004_v5, %v298_v48  ;;  %v517_v53 = vadd.f32 %v4009_v11, %v501_v46  ;;  %v4011_v31 = vcombine.high %v4009_v11, %v4009_v11  ;;  %v585_v30 = vadd.f32 %v4012_v4, %v569_v9 }
 0x14e   :  { %v382_v29 = vadd.f32 %v4006_v6, %v366_v49  ;;  %v450_v13 = vadd.f32 %v4008_v27, %v434_v16  ;;  %v4014_v43 = vcombine.high %v4012_v4, %v4012_v4  ;;  %v653_v54 = vadd.f32 %v4015_v10, %v637_v50  ;;  %v234_v50 = vpop.permute.xlu0 %233 }
 0x14f   :  { %v518_v37 = vadd.f32 %v4011_v31, %v502_v40  ;;  %v4016_v39 = vcombine.high %v4015_v10, %v4015_v10  ;;  %v4017_v48 = vstv %s4001_s11  ;;  %v4019_v41 = vstv %s4003_s6  ;;  %s4046_s11 = sld [smem:[#allocation65_spill]] }
 0x150   :  { %v586_v3 = vadd.f32 %v4014_v43, %v570_v21  ;;  %v317_v28 = vmul.f32 %v4017_v48, %v2688_v57  ;;  %v4018_v49 = vmov %v4017_v48  ;;  %v385_v26 = vmul.f32 %v4019_v41, %v2688_v57  ;;  %v236_v21 = vpop.permute.xlu1 %235  ;;  %s4049_s6 = sld [smem:[#allocation66_spill]] }
 0x151   :  { %v654_v45 = vadd.f32 %v4016_v39, %v638_v59  ;;  %v318_v24 = vmul.f32 %v4018_v49, %v2691_v42  ;;  %v4020_v8 = vmov %v4019_v41  ;;  %v721_v0 = vadd.f32 %v4022_v63, %v705_v58 }
 0x152   :  { %v386_v20 = vmul.f32 %v4020_v8, %v2691_v42  ;;  %v4023_v19 = vcombine.high %v4022_v63, %v4022_v63  ;;  %v789_v12 = vadd.f32 %v4025_v25, %v773_v15  ;;  %v4026_v22 = vcombine.high %v4025_v25, %v4025_v25 }
 0x153   :  { %v4028_v32 = vstv %s4010_s12  ;;  %v4031_v16 = vstv %s4013_s22  ;;  %v319_v59 = vadd.f32 %v317_v28, %v313_v1  ;;  %v320_v58 = vadd.f32 %v318_v24, %v314_v34  ;;  %s4052_s12 = sld [smem:[#allocation68_spill]] }
 0x154   :  { %v722_v2 = vadd.f32 %v4023_v19, %v706_v7  ;;  %v790_v17 = vadd.f32 %v4026_v22, %v774_v55  ;;  %v453_v36 = vmul.f32 %v4028_v32, %v2688_v57  ;;  %v4029_v52 = vmov %v4028_v32  ;;  %s4055_s22 = sld [smem:[#allocation69_spill]] }
 0x155   :  { %v454_v47 = vmul.f32 %v4029_v52, %v2691_v42  ;;  %v521_v46 = vmul.f32 %v4031_v16, %v2688_v57  ;;  %v4032_v40 = vmov %v4031_v16  ;;  %v387_v7 = vadd.f32 %v385_v26, %v381_v18 }
 0x156   :  { %v522_v9 = vmul.f32 %v4032_v40, %v2691_v42  ;;  %v388_v15 = vadd.f32 %v386_v20, %v382_v29  ;;  %v4033_v55 = vstv %s4021_s1  ;;  %v4035_v6 = vstv %s4024_s3  ;;  %v4043_v20 = vld [vmem:[#allocation127_spill] sm:$0xff]  ;;  %s4056_s1 = sld [smem:[#allocation71_spill]] }
 0x157   :  { %v589_v56 = vmul.f32 %v4033_v55, %v2688_v57  ;;  %v4034_v5 = vmov %v4033_v55  ;;  %v657_v51 = vmul.f32 %v4035_v6, %v2688_v57  ;;  %v4036_v27 = vmov %v4035_v6  ;;  %s4063_s3 = sld [smem:[#allocation72_spill]] }
 0x158   :  { %v590_v38 = vmul.f32 %v4034_v5, %v2691_v42  ;;  %v658_v11 = vmul.f32 %v4036_v27, %v2691_v42  ;;  %v4037_v31 = vstv %s4027_s27  ;;  %v4039_v18 = vstv %s4030_s21  ;;  %s4066_s27 = sld [smem:[#allocation73_spill]] }
 0x159   :  { %v725_v4 = vmul.f32 %v4037_v31, %v2688_v57  ;;  %v4038_v1 = vmov %v4037_v31  ;;  %v793_v29 = vmul.f32 %v4039_v18, %v2688_v57  ;;  %v4040_v43 = vmov %v4039_v18  ;;  %v4044_v57 = vld [vmem:[#allocation129_spill] sm:$0xff]  ;;  %s4071_s21 = sld [smem:[#allocation74_spill]] }
 0x15a   :  { %v726_v34 = vmul.f32 %v4038_v1, %v2691_v42  ;;  %v794_v10 = vmul.f32 %v4040_v43, %v2691_v42  ;;  %v455_v39 = vadd.f32 %v453_v36, %v449_v23  ;;  %v456_v48 = vadd.f32 %v454_v47, %v450_v13  ;;  %v258_v13 = vpop.permute.xlu1 %257  ;;  %v4053_v47 = vld [vmem:[#allocation132_spill] sm:$0xff] }
 0x15b   :  { %v523_v28 = vadd.f32 %v521_v46, %v517_v53  ;;  %v524_v49 = vadd.f32 %v522_v9, %v518_v37  ;;  %v591_v24 = vadd.f32 %v589_v56, %v585_v30  ;;  %v592_v41 = vadd.f32 %v590_v38, %v586_v3  ;;  %v256_v53 = vpop.permute.xlu0 %255  ;;  %v4054_v46 = vld [vmem:[#allocation134_spill] sm:$0xff] }
 0x15c   :  { %v659_v26 = vadd.f32 %v657_v51, %v653_v54  ;;  %v660_v8 = vadd.f32 %v658_v11, %v654_v45  ;;  %v231_v63 = vmul.f32 %v4043_v20, %v2695_v33  ;;  %v232_v19 = vmul.f32 %v4044_v57, %v2699_v61 }
 0x15d   :  { %v238_v42 = vsel %vm237_vm6, %v234_v50, %v236_v21  ;;  %v239_v23 = vsel %vm237_vm6, %v236_v21, %v234_v50  ;;  %v727_v37 = vadd.f32 %v725_v4, %v721_v0  ;;  %v728_v30 = vadd.f32 %v726_v34, %v722_v2 }
 0x15e   :  { %v795_v3 = vadd.f32 %v793_v29, %v789_v12  ;;  %v796_v54 = vadd.f32 %v794_v10, %v790_v17  ;;  %v4047_v33 = vstv %s4041_s25  ;;  %v4050_v22 = vstv %s4042_s29  ;;  %s4072_s25 = sld [smem:[#allocation75_spill]] }
 0x15f   :  { %v323_v45 = vmul.f32 %v4047_v33, %v231_v63  ;;  %v4048_v25 = vmov %v4047_v33  ;;  %v391_v32 = vmul.f32 %v4050_v22, %v231_v63  ;;  %v4051_v36 = vmov %v4050_v22  ;;  %s4077_s29 = sld [smem:[#allocation76_spill]] }
 0x160   :  { %v324_v61 = vmul.f32 %v4048_v25, %v232_v19  ;;  %v392_v52 = vmul.f32 %v4051_v36, %v232_v19  ;;  %v253_v16 = vmul.f32 %v4053_v47, %v238_v42  ;;  %v254_v0 = vmul.f32 %v4054_v46, %v239_v23 }
 0x161   :  { %v2827_v2 = vsel %vm259_vm7, %v256_v53, %v258_v13  ;;  %v2831_v12 = vsel %vm259_vm7, %v258_v13, %v256_v53  ;;  %v4057_v17 = vstv %s4045_s18  ;;  %v4059_v50 = vstv %s4046_s11  ;;  %s2865_s18 = sld [smem:[#allocation2 + $0x71]] }
 0x162   :  { %v459_v40 = vmul.f32 %v4057_v17, %v231_v63  ;;  %v4058_v9 = vmov %v4057_v17  ;;  %v527_v55 = vmul.f32 %v4059_v50, %v231_v63  ;;  %v4060_v56 = vmov %v4059_v50  ;;  %s4078_s11 = sld [smem:[#allocation77_spill]] }
 0x163   :  { %v460_v21 = vmul.f32 %v4058_v9, %v232_v19  ;;  %v528_v5 = vmul.f32 %v4060_v56, %v232_v19  ;;  %v325_v38 = vadd.f32 %v323_v45, %v319_v59  ;;  %v326_v6 = vadd.f32 %v324_v61, %v320_v58 }
 0x164   :  { %v393_v51 = vadd.f32 %v391_v32, %v387_v7  ;;  %v394_v27 = vadd.f32 %v392_v52, %v388_v15  ;;  %v4061_v11 = vstv %s4049_s6  ;;  %v4064_v34 = vstv %s4052_s12  ;;  %s4079_s6 = sld [smem:[#allocation78_spill]] }
 0x165   :  { %v595_v31 = vmul.f32 %v4061_v11, %v231_v63  ;;  %v4062_v4 = vmov %v4061_v11  ;;  %v663_v18 = vmul.f32 %v4064_v34, %v231_v63  ;;  %v4065_v29 = vmov %v4064_v34  ;;  %s2867_s12 = sld [smem:[#allocation2 + $0x7a]] }
 0x166   :  { %v596_v1 = vmul.f32 %v4062_v4, %v232_v19  ;;  %v664_v43 = vmul.f32 %v4065_v29, %v232_v19  ;;  %v4067_v10 = vstv %s4055_s22  ;;  %v4069_v59 = vstv %s4056_s1  ;;  %s4081_s22 = sld [smem:[#allocation79_spill]] }
 0x167   :  { %v731_v42 = vmul.f32 %v4067_v10, %v231_v63  ;;  %v4068_v23 = vmov %v4067_v10  ;;  %v799_v58 = vmul.f32 %v4069_v59, %v231_v63  ;;  %v4070_v7 = vmov %v4069_v59  ;;  %s2885_s1 = sld [smem:[#allocation2 + $0x83]] }
 0x168   :  { %v732_v13 = vmul.f32 %v4068_v23, %v232_v19  ;;  %v800_v15 = vmul.f32 %v4070_v7, %v232_v19  ;;  %v461_v53 = vadd.f32 %v459_v40, %v455_v39  ;;  %v462_v33 = vadd.f32 %v460_v21, %v456_v48 }
 0x169   :  { %v529_v45 = vadd.f32 %v527_v55, %v523_v28  ;;  %v530_v25 = vadd.f32 %v528_v5, %v524_v49  ;;  %v597_v61 = vadd.f32 %v595_v31, %v591_v24  ;;  %v598_v22 = vadd.f32 %v596_v1, %v592_v41 }
 0x16a   :  { %v665_v32 = vadd.f32 %v663_v18, %v659_v26  ;;  %v666_v36 = vadd.f32 %v664_v43, %v660_v8  ;;  %v4073_v52 = vstv %s4063_s3  ;;  %v4075_v56 = vstv %s4066_s27  ;;  %s2895_s3 = sld [smem:[#allocation2 + $0x8c]] }
 0x16b   :  { %v329_v17 = vmul.f32 %v4073_v52, %v253_v16  ;;  %v4074_v9 = vmov %v4073_v52  ;;  %v397_v63 = vmul.f32 %v4075_v56, %v253_v16  ;;  %v4076_v11 = vmov %v4075_v56  ;;  %s4094_s27 = sld [smem:[#allocation80_spill]] }
 0x16c   :  { %v330_v50 = vmul.f32 %v4074_v9, %v254_v0  ;;  %v398_v39 = vmul.f32 %v4076_v11, %v254_v0  ;;  %v733_v48 = vadd.f32 %v731_v42, %v727_v37  ;;  %v734_v28 = vadd.f32 %v732_v13, %v728_v30 }
 0x16d   :  { %v801_v49 = vadd.f32 %v799_v58, %v795_v3  ;;  %v802_v24 = vadd.f32 %v800_v15, %v796_v54  ;;  %v4080_v41 = vstv %s4071_s21  ;;  %v4083_v40 = vstv %s4072_s25  ;;  %s2897_s21 = sld [smem:[#allocation2 + $0x95]] }
 0x16e   :  { %v465_v26 = vmul.f32 %v4080_v41, %v253_v16  ;;  %v4082_v8 = vmov %v4080_v41  ;;  %v533_v21 = vmul.f32 %v4083_v40, %v253_v16  ;;  %v4084_v55 = vmov %v4083_v40  ;;  %s4096_s25 = sld [smem:[#allocation84_spill]] }
 0x16f   :  { %v466_v19 = vmul.f32 %v4082_v8, %v254_v0  ;;  %v534_v5 = vmul.f32 %v4084_v55, %v254_v0  ;;  %v331_v31 = vadd.f32 %v329_v17, %v325_v38  ;;  %v332_v37 = vadd.f32 %v330_v50, %v326_v6  ;;  %v4099_v50 = vld [vmem:[#allocation139_spill] sm:$0xff] }
 0x170   :  { %v399_v4 = vadd.f32 %v397_v63, %v393_v51  ;;  %v400_v30 = vadd.f32 %v398_v39, %v394_v27  ;;  %v4085_v3 = vstv %s4077_s29  ;;  %v4087_v18 = vstv %s4078_s11  ;;  %4093 = sst [smem:[#allocation121_spill]] %s2895_s3 }
 0x171   :  { %v601_v1 = vmul.f32 %v4085_v3, %v253_v16  ;;  %v4086_v54 = vmov %v4085_v3  ;;  %v669_v29 = vmul.f32 %v4087_v18, %v253_v16  ;;  %v4088_v43 = vmov %v4087_v18  ;;  %s2899_s29 = sld [smem:[#allocation2 + $0x57]] }
 0x172   :  { %v602_v34 = vmul.f32 %v4086_v54, %v254_v0  ;;  %v670_v10 = vmul.f32 %v4088_v43, %v254_v0  ;;  %v4089_v42 = vstv %s4079_s6  ;;  %v4091_v58 = vstv %s4081_s22  ;;  %s4102_s11 = sld [smem:[#allocation81_spill]] }
 0x173   :  { %v737_v23 = vmul.f32 %v4089_v42, %v253_v16  ;;  %v4090_v13 = vmov %v4089_v42  ;;  %v805_v7 = vmul.f32 %v4091_v58, %v253_v16  ;;  %v4092_v38 = vmov %v4091_v58  ;;  %4095 = sst [smem:[#allocation123_spill]] %s2897_s21 }
 0x174   :  { %v738_v59 = vmul.f32 %v4090_v13, %v254_v0  ;;  %v806_v6 = vmul.f32 %v4092_v38, %v254_v0  ;;  %v467_v51 = vadd.f32 %v465_v26, %v461_v53  ;;  %v468_v27 = vadd.f32 %v466_v19, %v462_v33  ;;  %s4104_s6 = sld [smem:[#allocation83_spill]] }
 0x175   :  { %v535_v15 = vadd.f32 %v533_v21, %v529_v45  ;;  %v536_v52 = vadd.f32 %v534_v5, %v530_v25  ;;  %v603_v17 = vadd.f32 %v601_v1, %v597_v61  ;;  %v604_v9 = vadd.f32 %v602_v34, %v598_v22  ;;  %v4098_v45 = vld [vmem:[#allocation137_spill] sm:$0xff]  ;;  %s4116_s22 = sld [smem:[#allocation92_spill]] }
 0x176   :  { %v671_v16 = vadd.f32 %v669_v29, %v665_v32  ;;  %v672_v0 = vadd.f32 %v670_v10, %v666_v36  ;;  %v739_v53 = vadd.f32 %v737_v23, %v733_v48  ;;  %v740_v33 = vadd.f32 %v738_v59, %v734_v28 }
 0x177   :  { %4097 = sst [smem:[#allocation125_spill]] %s2899_s29  ;;  %v275_v25 = vmul.f32 %v4098_v45, %v2827_v2  ;;  %v276_v56 = vmul.f32 %v4099_v50, %v2831_v12  ;;  %v807_v63 = vadd.f32 %v805_v7, %v801_v49  ;;  %v808_v61 = vadd.f32 %v806_v6, %v802_v24 }
 0x178   :  { %v1166_v11 = vstv %s2865_s18  ;;  %v1172_v22 = vstv %s2867_s12  ;;  %v4100_v39 = vstv %s4094_s27  ;;  %v4103_v26 = vstv %s3883_s16  ;;  %s4112_s16 = sld [smem:[#allocation88_spill]] }
 0x179   :  { %v335_v32 = vmul.f32 %v4100_v39, %v275_v25  ;;  %v4101_v41 = vmov %v4100_v39  ;;  %v403_v8 = vmul.f32 %v4103_v26, %v275_v25  ;;  %v4105_v48 = vmov %v4103_v26  ;;  %s4117_s27 = sld [smem:[#allocation94_spill]] }
 0x17a   :  { %v336_v36 = vmul.f32 %v4101_v41, %v276_v56  ;;  %v404_v28 = vmul.f32 %v4105_v48, %v276_v56  ;;  %v4106_v19 = vstv %s4096_s25  ;;  %v4108_v49 = vstv %s3889_s0  ;;  %s4113_s0 = sld [smem:[#allocation90_spill]] }
 0x17b   :  { %v471_v2 = vmul.f32 %v4106_v19, %v275_v25  ;;  %v4107_v40 = vmov %v4106_v19  ;;  %v539_v24 = vmul.f32 %v4108_v49, %v275_v25  ;;  %v4109_v21 = vmov %v4108_v49  ;;  %s4124_s25 = sld [smem:[#allocation89_spill]] }
 0x17c   :  { %v472_v12 = vmul.f32 %v4107_v40, %v276_v56  ;;  %v540_v55 = vmul.f32 %v4109_v21, %v276_v56  ;;  %v337_v5 = vadd.f32 %v335_v32, %v331_v31  ;;  %v338_v3 = vadd.f32 %v336_v36, %v332_v37  ;;  %s3315_s18 = sld [smem:[#allocation2 + $0x61]] }
 0x17d   :  { %v405_v1 = vadd.f32 %v403_v8, %v399_v4  ;;  %v406_v54 = vadd.f32 %v404_v28, %v400_v30  ;;  %v473_v34 = vadd.f32 %v471_v2, %v467_v51  ;;  %v541_v29 = vadd.f32 %v539_v24, %v535_v15  ;;  %s3331_s12 = sld [smem:[#allocation2 + $0x7c]] }
 0x17e   :  { %v474_v18 = vadd.f32 %v472_v12, %v468_v27  ;;  %v542_v43 = vadd.f32 %v540_v55, %v536_v52  ;;  %v4110_v10 = vstv %s4102_s11  ;;  %v4111_v23 = vstv %s4104_s6  ;;  %s4133_s11 = sld [smem:[#allocation95_spill]] }
 0x17f   :  { %v342_v42 = vadd.f32 %v4110_v10, %v338_v3  ;;  %v410_v13 = vadd.f32 %v4111_v23, %v406_v54  ;;  %v1178_v59 = vstv %s2885_s1  ;;  %v1184_v31 = vstv %s2895_s3  ;;  %s4138_s6 = sld [smem:[#allocation96_spill]] }
 0x180   :  { %v4114_v58 = vstv %s3888_s4  ;;  %v4115_v4 = vstv %s3890_s24  ;;  %v1190_v7 = vstv %s2897_s21  ;;  %v1206_v38 = vstv %s2899_s29  ;;  %s4127_s4 = sld [smem:[#allocation91_spill]] }
 0x181   :  { %v478_v37 = vadd.f32 %v4114_v58, %v474_v18  ;;  %v546_v30 = vadd.f32 %v4115_v4, %v542_v43  ;;  %v4118_v6 = vmov %v4110_v10  ;;  %v4119_v27 = vmov %v4111_v23  ;;  %s4130_s24 = sld [smem:[#allocation93_spill]] }
 0x182   :  { %v341_v51 = vadd.f32 %v4118_v6, %v337_v5  ;;  %v409_v15 = vadd.f32 %v4119_v27, %v405_v1  ;;  %v4120_v52 = vmov %v4114_v58  ;;  %v4121_v32 = vmov %v4115_v4  ;;  %s4155_s29 = sld [smem:[#allocation105_spill]] }
 0x183   :  { %v477_v39 = vadd.f32 %v4120_v52, %v473_v34  ;;  %v545_v41 = vadd.f32 %v4121_v32, %v541_v29  ;;  %v2943_v36 = vmax.f32 %v342_v42, 0.0  ;;  %v2945_v26 = vmax.f32 %v410_v13, 0.0  ;;  %s4160_s21 = sld [smem:[#allocation106_spill]] }
 0x184   :  { %v2947_v8 = vmax.f32 %v478_v37, 0.0  ;;  %v2949_v48 = vmax.f32 %v546_v30, 0.0  ;;  %v4122_v28 = vstv %s4112_s16  ;;  %v4125_v12 = vstv %s4113_s0  ;;  %s4140_s16 = sld [smem:[#allocation97_spill]] }
 0x185   :  { %v607_v19 = vmul.f32 %v4122_v28, %v275_v25  ;;  %v4123_v2 = vmov %v4122_v28  ;;  %v675_v49 = vmul.f32 %v4125_v12, %v275_v25  ;;  %v4126_v24 = vmov %v4125_v12  ;;  %s4144_s0 = sld [smem:[#allocation98_spill]] }
 0x186   :  { %v608_v40 = vmul.f32 %v4123_v2, %v276_v56  ;;  %v676_v21 = vmul.f32 %v4126_v24, %v276_v56  ;;  %v4128_v55 = vstv %s4116_s22  ;;  %v4131_v54 = vstv %s4117_s27  ;;  %s4145_s22 = sld [smem:[#allocation99_spill]] }
 0x187   :  { %v743_v5 = vmul.f32 %v4128_v55, %v275_v25  ;;  %v4129_v3 = vmov %v4128_v55  ;;  %v811_v34 = vmul.f32 %v4131_v54, %v275_v25  ;;  %v4132_v18 = vmov %v4131_v54  ;;  %s4146_s27 = sld [smem:[#allocation100_spill]] }
 0x188   :  { %v744_v1 = vmul.f32 %v4129_v3, %v276_v56  ;;  %v812_v29 = vmul.f32 %v4132_v18, %v276_v56  ;;  %v609_v43 = vadd.f32 %v607_v19, %v603_v17  ;;  %v610_v10 = vadd.f32 %v608_v40, %v604_v9  ;;  %s4163_s3 = sld [smem:[#allocation107_spill]] }
 0x189   :  { %v677_v42 = vadd.f32 %v675_v49, %v671_v16  ;;  %v678_v23 = vadd.f32 %v676_v21, %v672_v0  ;;  %v745_v13 = vadd.f32 %v743_v5, %v739_v53  ;;  %v813_v37 = vadd.f32 %v811_v34, %v807_v63  ;;  %s3339_s1 = sld [smem:[#allocation2 + $0x85]] }
 0x18a   :  { %v746_v58 = vadd.f32 %v744_v1, %v740_v33  ;;  %v814_v4 = vadd.f32 %v812_v29, %v808_v61  ;;  %v4134_v30 = vstv %s4124_s25  ;;  %v4136_v32 = vstv %s4127_s4  ;;  %s4147_s25 = sld [smem:[#allocation101_spill]] }
 0x18b   :  { %v613_v6 = vadd.f32 %v4134_v30, %v609_v43  ;;  %v4135_v27 = vmov %v4134_v30  ;;  %v681_v28 = vadd.f32 %v4136_v32, %v677_v42  ;;  %v4137_v2 = vmov %v4136_v32  ;;  %s4148_s4 = sld [smem:[#allocation102_spill]] }
 0x18c   :  { %v614_v52 = vadd.f32 %v4135_v27, %v610_v10  ;;  %v682_v25 = vadd.f32 %v4137_v2, %v678_v23  ;;  %v4139_v12 = vstv %s4130_s24  ;;  %v4142_v16 = vstv %s4133_s11  ;;  %s4149_s24 = sld [smem:[#allocation103_spill]] }
 0x18d   :  { %v749_v56 = vadd.f32 %v4139_v12, %v745_v13  ;;  %v4141_v17 = vmov %v4139_v12  ;;  %v817_v0 = vadd.f32 %v4142_v16, %v813_v37  ;;  %v4143_v53 = vmov %v4142_v16  ;;  %s4152_s11 = sld [smem:[#allocation104_spill]] }
 0x18e   :  { %v750_v9 = vadd.f32 %v4141_v17, %v746_v58  ;;  %v818_v33 = vadd.f32 %v4143_v53, %v814_v4  ;;  %v2983_v63 = vmax.f32 %v341_v51, 0.0  ;;  %v2985_v61 = vmax.f32 %v409_v15, 0.0 }
 0x18f   :  { %v2987_v19 = vmax.f32 %v477_v39, 0.0  ;;  %v2989_v40 = vmax.f32 %v614_v52, 0.0  ;;  %v2991_v49 = vmax.f32 %v545_v41, 0.0  ;;  %v2993_v24 = vmax.f32 %v682_v25, 0.0 }
 0x190   :  { %v2995_v21 = vmax.f32 %v750_v9, 0.0  ;;  %v2997_v51 = vmax.f32 %v818_v33, 0.0  ;;  %v2999_v15 = vmax.f32 %v613_v6, 0.0  ;;  %v3001_v39 = vmax.f32 %v681_v28, 0.0 }
 0x191   :  { %v4150_v55 = vstv %s4138_s6  ;;  %v4151_v41 = vstv %s4140_s16  ;;  %v3009_v1 = vmax.f32 %v749_v56, 0.0  ;;  %v3011_v54 = vmax.f32 %v817_v0, 0.0  ;;  %s4167_s6 = sld [smem:[#allocation109_spill]] }
 0x192   :  { %v824_v5 = vmul.f32 %v4150_v55, %v2943_v36  ;;  %v828_v3 = vmul.f32 %v4151_v41, %v2945_v26  ;;  %v4153_v34 = vstv %s4144_s0  ;;  %v4154_v29 = vstv %s4145_s22  ;;  %s4169_s16 = sld [smem:[#allocation114_spill]] }
 0x193   :  { %v834_v18 = vmul.f32 %v4153_v34, %v2947_v8  ;;  %v840_v43 = vmul.f32 %v4154_v29, %v2949_v48  ;;  %v4156_v42 = vstv %s4146_s27  ;;  %v4157_v13 = vmov %v4150_v55  ;;  %s4211_s0 = sld [smem:[#allocation138_spill]] }
 0x194   :  { %v830_v10 = vadd.f32 %v828_v3, %v824_v5  ;;  %v846_v23 = vmul.f32 %v4156_v42, %v2989_v40  ;;  %v823_v58 = vmul.f32 %v4157_v13, %v2983_v63  ;;  %v4158_v37 = vmov %v4151_v41  ;;  %s4235_s22 = sld [smem:[#allocation117_spill]] }
 0x195   :  { %v827_v4 = vmul.f32 %v4158_v37, %v2985_v61  ;;  %v4159_v30 = vstv %s4147_s25  ;;  %v4161_v27 = vstv %s4148_s4  ;;  %v4162_v32 = vstv %s4149_s24  ;;  %s4239_s27 = sld [smem:[#allocation119_spill]] }
 0x196   :  { %v852_v6 = vmul.f32 %v4159_v30, %v2993_v24  ;;  %v858_v52 = vmul.f32 %v4161_v27, %v2995_v21  ;;  %v864_v28 = vmul.f32 %v4162_v32, %v2997_v51  ;;  %v4164_v2 = vmov %v4153_v34  ;;  %s3266_s25 = sld [smem:[#allocation2 + $0x7b]] }
 0x197   :  { %v833_v25 = vmul.f32 %v4164_v2, %v2987_v19  ;;  %v836_v12 = vadd.f32 %v834_v18, %v830_v10  ;;  %v829_v56 = vadd.f32 %v827_v4, %v823_v58  ;;  %v4165_v17 = vmov %v4154_v29  ;;  %s1750_s24 = sld [smem:[#allocation2 + $0x9a]] }
 0x198   :  { %v839_v9 = vmul.f32 %v4165_v17, %v2991_v49  ;;  %v4166_v16 = vstv %s4152_s11  ;;  %v4168_v53 = vmov %v4156_v42  ;;  %v4170_v55 = vmov %v4159_v30  ;;  %s3282_s11 = sld [smem:[#allocation2 + $0x8d]] }
 0x199   :  { %v878_v0 = vmul.f32 %v4166_v16, %v2943_v36  ;;  %v845_v33 = vmul.f32 %v4168_v53, %v2999_v15  ;;  %v851_v5 = vmul.f32 %v4170_v55, %v3001_v39  ;;  %v4171_v41 = vmov %v4161_v27 }
 0x19a   :  { %v857_v3 = vmul.f32 %v4171_v41, %v3009_v1  ;;  %v4172_v34 = vstv %s4155_s29  ;;  %v842_v29 = vadd.f32 %v840_v43, %v836_v12  ;;  %v835_v10 = vadd.f32 %v833_v25, %v829_v56  ;;  %s4210_s29 = sld [smem:[#allocation136_spill]] }
 0x19b   :  { %v882_v18 = vmul.f32 %v4172_v34, %v2945_v26  ;;  %v4173_v42 = vmov %v4162_v32  ;;  %v4174_v58 = vstv %s4160_s21  ;;  %v4175_v30 = vstv %s4163_s3  ;;  %s4193_s21 = smov 17  }
 0x19c   :  { %v863_v13 = vmul.f32 %v4173_v42, %v3011_v54  ;;  %v888_v37 = vmul.f32 %v4174_v58, %v2947_v8  ;;  %v894_v27 = vmul.f32 %v4175_v30, %v2949_v48  ;;  %v4176_v32 = vmov %v4166_v16 }
 0x19d   :  { %v884_v4 = vadd.f32 %v882_v18, %v878_v0  ;;  %v877_v2 = vmul.f32 %v4176_v32, %v2983_v63  ;;  %v4177_v17 = vmov %v4172_v34  ;;  %v848_v25 = vadd.f32 %v846_v23, %v842_v29 }
 0x19e   :  { %v881_v43 = vmul.f32 %v4177_v17, %v2985_v61  ;;  %v841_v12 = vadd.f32 %v839_v9, %v835_v10  ;;  %v4178_v56 = vstv %s4167_s6  ;;  %v4179_v53 = vstv %s4169_s16 }
 0x19f   :  { %v900_v16 = vmul.f32 %v4178_v56, %v2989_v40  ;;  %v906_v0 = vmul.f32 %v4179_v53, %v2993_v24  ;;  %v890_v55 = vadd.f32 %v888_v37, %v884_v4  ;;  %v4180_v41 = vstv %s2287_s14 }
 0x1a0   :  { %v912_v34 = vmul.f32 %v4180_v41, %v2995_v21  ;;  %v883_v18 = vadd.f32 %v881_v43, %v877_v2  ;;  %v4181_v42 = vmov %v4174_v58  ;;  %v854_v30 = vadd.f32 %v852_v6, %v848_v25 }
 0x1a1   :  { %v887_v58 = vmul.f32 %v4181_v42, %v2987_v19  ;;  %v847_v23 = vadd.f32 %v845_v33, %v841_v12  ;;  %v4182_v9 = vstv %s3909_s23  ;;  %v4183_v10 = vstv %s4163_s3  ;;  %s4191_s3 = sld [smem:[#allocation128_spill]] }
 0x1a2   :  { %v918_v29 = vmul.f32 %v4182_v9, %v2997_v51  ;;  %v893_v32 = vmul.f32 %v4183_v10, %v2991_v49  ;;  %v896_v17 = vadd.f32 %v894_v27, %v890_v55  ;;  %v4184_v4 = vstv %s3910_s2 }
 0x1a3   :  { %v889_v37 = vadd.f32 %v887_v58, %v883_v18  ;;  %v934_v56 = vmul.f32 %v4184_v4, %v2943_v36  ;;  %v4185_v2 = vstv %s3911_s30  ;;  %v860_v53 = vadd.f32 %v858_v52, %v854_v30 }
 0x1a4   :  { %v938_v43 = vmul.f32 %v4185_v2, %v2945_v26  ;;  %v853_v6 = vadd.f32 %v851_v5, %v847_v23  ;;  %v4186_v33 = vstv %s4167_s6  ;;  %v4187_v12 = vstv %s4169_s16  ;;  %s3291_s16 = sld [smem:[#allocation2 + $0x96]] }
 0x1a5   :  { %v899_v25 = vmul.f32 %v4186_v33, %v2999_v15  ;;  %v905_v41 = vmul.f32 %v4187_v12, %v3001_v39  ;;  %v902_v42 = vadd.f32 %v900_v16, %v896_v17  ;;  %v895_v27 = vadd.f32 %v893_v32, %v889_v37 }
 0x1a6   :  { %v940_v55 = vadd.f32 %v938_v43, %v934_v56  ;;  %v4188_v18 = vstv %s3913_s17  ;;  %v866_v9 = vadd.f32 %v864_v28, %v860_v53  ;;  %v859_v10 = vadd.f32 %v857_v3, %v853_v6 }
 0x1a7   :  { %v944_v58 = vmul.f32 %v4188_v18, %v2947_v8  ;;  %v4189_v52 = vstv %s2287_s14  ;;  %v4190_v30 = vstv %s3909_s23  ;;  %v908_v4 = vadd.f32 %v906_v0, %v902_v42  ;;  %s4197_s14 = sld [smem:[#allocation130_spill]] }
 0x1a8   :  { %v911_v5 = vmul.f32 %v4189_v52, %v3009_v1  ;;  %v917_v23 = vmul.f32 %v4190_v30, %v3011_v54  ;;  %v901_v2 = vadd.f32 %v899_v25, %v895_v27  ;;  %v4192_v32 = vstv %s3914_s26  ;;  %869 = vrot.lane.b32.xlu1 %v866_v9, %s4193_s21  ;;  %s4198_s23 = sld [smem:[#allocation131_spill]] }
 0x1a9   :  { %v946_v16 = vadd.f32 %v944_v58, %v940_v55  ;;  %v950_v17 = vmul.f32 %v4192_v32, %v2949_v48  ;;  %v865_v28 = vadd.f32 %v863_v13, %v859_v10  ;;  %v4194_v3 = vstv %s3915_s10  ;;  %s4214_s26 = sld [smem:[#allocation82_spill]] }
 0x1aa   :  { %v956_v37 = vmul.f32 %v4194_v3, %v2989_v40  ;;  %v4195_v56 = vstv %s3910_s2  ;;  %v4196_v53 = vstv %s3911_s30  ;;  %v914_v6 = vadd.f32 %v912_v34, %v908_v4  ;;  %s4203_s2 = sld [smem:[#allocation133_spill]] }
 0x1ab   :  { %v933_v43 = vmul.f32 %v4195_v56, %v2983_v63  ;;  %v937_v0 = vmul.f32 %v4196_v53, %v2985_v61  ;;  %v907_v33 = vadd.f32 %v905_v41, %v901_v2  ;;  %v952_v25 = vadd.f32 %v950_v17, %v946_v16  ;;  %867 = vrot.lane.b32.xlu0 %v865_v28, %s4193_s21  ;;  %s4205_s30 = sld [smem:[#allocation135_spill]] }
 0x1ac   :  { %v4199_v12 = vstv %s3916_s8  ;;  %v4200_v13 = vstv %s3917_s19  ;;  %v4201_v55 = vstv %s4191_s3  ;;  %v4202_v9 = vstv %s3913_s17  ;;  %s4209_s17 = smov 16   ;;  %s4226_s19 = smov 15  }
 0x1ad   :  { %v962_v42 = vmul.f32 %v4199_v12, %v2993_v24  ;;  %v968_v27 = vmul.f32 %v4200_v13, %v2995_v21  ;;  %v974_v18 = vmul.f32 %v4201_v55, %v2997_v51  ;;  %v939_v58 = vadd.f32 %v937_v0, %v933_v43  ;;  %s4230_s8 = sld [smem:[#allocation87_spill]] }
 0x1ae   :  { %v943_v34 = vmul.f32 %v4202_v9, %v2987_v19  ;;  %v920_v41 = vadd.f32 %v918_v29, %v914_v6  ;;  %v913_v10 = vadd.f32 %v911_v5, %v907_v33  ;;  %v958_v52 = vadd.f32 %v956_v37, %v952_v25  ;;  %s4233_s10 = sld [smem:[#allocation116_spill]] }
 0x1af   :  { %v4204_v30 = vmov %v4192_v32  ;;  %v4206_v16 = vmov %v4194_v3  ;;  %v4207_v17 = vstv %s4197_s14  ;;  %v4208_v3 = vstv %s4198_s23  ;;  %s3309_s3 = sld [smem:[#allocation2 + $0x58]] }
 0x1b0   :  { %v949_v4 = vmul.f32 %v4204_v30, %v2991_v49  ;;  %v945_v2 = vadd.f32 %v943_v34, %v939_v58  ;;  %v955_v32 = vmul.f32 %v4206_v16, %v2999_v15  ;;  %v990_v28 = vmul.f32 %v4207_v17, %v2943_v36  ;;  %923 = vrot.lane.b32.xlu1 %v920_v41, %s4209_s17  ;;  %s3323_s21 = sld [smem:[#allocation2 + $0x6a]] }
 0x1b1   :  { %v994_v56 = vmul.f32 %v4208_v3, %v2945_v26  ;;  %v919_v29 = vadd.f32 %v917_v23, %v913_v10  ;;  %v964_v5 = vadd.f32 %v962_v42, %v958_v52  ;;  %v4212_v37 = vmov %v4199_v12  ;;  %s3327_s14 = sld [smem:[#allocation2 + $0x73]] }
 0x1b2   :  { %v961_v43 = vmul.f32 %v4212_v37, %v3001_v39  ;;  %v4213_v53 = vmov %v4200_v13  ;;  %v951_v6 = vadd.f32 %v949_v4, %v945_v2  ;;  %v4215_v33 = vmov %v4201_v55  ;;  %s3344_s23 = sld [smem:[#allocation2 + $0x8e]] }
 0x1b3   :  { %v967_v0 = vmul.f32 %v4213_v53, %v3009_v1  ;;  %v973_v25 = vmul.f32 %v4215_v33, %v3011_v54  ;;  %v996_v12 = vadd.f32 %v994_v56, %v990_v28  ;;  %v4216_v13 = vstv %s4203_s2  ;;  %921 = vrot.lane.b32.xlu0 %v919_v29, %s4209_s17  ;;  %s3351_s2 = sld [smem:[#allocation2 + $0x97]] }
 0x1b4   :  { %v1000_v55 = vmul.f32 %v4216_v13, %v2947_v8  ;;  %v970_v23 = vadd.f32 %v968_v27, %v964_v5  ;;  %v4217_v42 = vstv %s4205_s30  ;;  %v4218_v9 = vmov %v4207_v17  ;;  %s4263_s30 = smov 113   ;;  %s3362_s17 = sld [smem:[#allocation2 + $0x54]] }
 0x1b5   :  { %v1006_v58 = vmul.f32 %v4217_v42, %v2949_v48  ;;  %v989_v34 = vmul.f32 %v4218_v9, %v2983_v63  ;;  %v4219_v41 = vmov %v4208_v3  ;;  %v957_v52 = vadd.f32 %v955_v32, %v951_v6 }
 0x1b6   :  { %v993_v10 = vmul.f32 %v4219_v41, %v2985_v61  ;;  %v1002_v30 = vadd.f32 %v1000_v55, %v996_v12  ;;  %v4220_v4 = vstv %s4210_s29  ;;  %v4221_v16 = vstv %s4211_s0  ;;  %s3366_s29 = sld [smem:[#allocation2 + $0x5d]] }
 0x1b7   :  { %v1012_v2 = vmul.f32 %v4220_v4, %v2989_v40  ;;  %v1018_v27 = vmul.f32 %v4221_v16, %v2993_v24  ;;  %v976_v17 = vadd.f32 %v974_v18, %v970_v23  ;;  %v4222_v28 = vstv %s4214_s26  ;;  %s3373_s0 = sld [smem:[#allocation2 + $0x66]] }
 0x1b8   :  { %v1024_v3 = vmul.f32 %v4222_v28, %v2995_v21  ;;  %v995_v56 = vadd.f32 %v993_v10, %v989_v34  ;;  %v4223_v29 = vmov %v4216_v13  ;;  %v963_v32 = vadd.f32 %v961_v43, %v957_v52  ;;  %s3380_s26 = sld [smem:[#allocation2 + $0x6f]] }
 0x1b9   :  { %v999_v5 = vmul.f32 %v4223_v29, %v2987_v19  ;;  %v1008_v37 = vadd.f32 %v1006_v58, %v1002_v30  ;;  %v4224_v53 = vstv %s3927_s15  ;;  %v4225_v33 = vmov %v4217_v42  ;;  %979 = vrot.lane.b32.xlu1 %v976_v17, %s4226_s19  ;;  %s4241_s15 = sld [smem:[#allocation120_spill]] }
 0x1ba   :  { %v1030_v6 = vmul.f32 %v4224_v53, %v2997_v51  ;;  %v1005_v12 = vmul.f32 %v4225_v33, %v2991_v49  ;;  %v4227_v13 = vmov %v4220_v4  ;;  %v4228_v23 = vstv %s3928_s20  ;;  %s3249_s20 = sld [smem:[#allocation2 + $0x69]] }
 0x1bb   :  { %v1001_v18 = vadd.f32 %v999_v5, %v995_v56  ;;  %v1011_v55 = vmul.f32 %v4227_v13, %v2999_v15  ;;  %v1096_v42 = vmul.f32 %v4228_v23, %v2943_v36  ;;  %v4229_v43 = vstv %s2442_s7  ;;  %s3238_s7 = sld [smem:[#allocation2 + $0x60]] }
 0x1bc   :  { %v1100_v58 = vmul.f32 %v4229_v43, %v2945_v26  ;;  %v969_v9 = vadd.f32 %v967_v0, %v963_v32  ;;  %v1014_v34 = vadd.f32 %v1012_v2, %v1008_v37  ;;  %v4231_v41 = vmov %v4221_v16 }
 0x1bd   :  { %v1017_v10 = vmul.f32 %v4231_v41, %v3001_v39  ;;  %v4232_v52 = vmov %v4222_v28  ;;  %v1007_v4 = vadd.f32 %v1005_v12, %v1001_v18  ;;  %v4234_v16 = vmov %v4224_v53 }
 0x1be   :  { %v1023_v30 = vmul.f32 %v4232_v52, %v3009_v1  ;;  %v1029_v17 = vmul.f32 %v4234_v16, %v3011_v54  ;;  %v1102_v28 = vadd.f32 %v1100_v58, %v1096_v42  ;;  %v4236_v56 = vstv %s2448_s9  ;;  %s3254_s9 = sld [smem:[#allocation2 + $0x72]] }
 0x1bf   :  { %v1106_v29 = vmul.f32 %v4236_v56, %v2947_v8  ;;  %v975_v5 = vadd.f32 %v973_v25, %v969_v9  ;;  %v1020_v0 = vadd.f32 %v1018_v27, %v1014_v34  ;;  %v4237_v2 = vstv %s2454_s13  ;;  %s4251_s13 = smov 1  }
 0x1c0   :  { %v1112_v32 = vmul.f32 %v4237_v2, %v2949_v48  ;;  %v4238_v37 = vmov %v4228_v23  ;;  %v1013_v33 = vadd.f32 %v1011_v55, %v1007_v4  ;;  %v4240_v18 = vstv %s4230_s8  ;;  %s4264_s8 = smov 112  }
 0x1c1   :  { %v1095_v53 = vmul.f32 %v4238_v37, %v2983_v63  ;;  %v1108_v12 = vadd.f32 %v1106_v29, %v1102_v28  ;;  %v1118_v13 = vmul.f32 %v4240_v18, %v2989_v40  ;;  %v4242_v23 = vmov %v4229_v43  ;;  %977 = vrot.lane.b32.xlu0 %v975_v5, %s4226_s19  ;;  %s3387_s19 = sld [smem:[#allocation2 + $0x78]] }
 0x1c2   :  { %v1099_v42 = vmul.f32 %v4242_v23, %v2985_v61  ;;  %v1026_v25 = vadd.f32 %v1024_v3, %v1020_v0  ;;  %v4243_v27 = vstv %s2466_s28  ;;  %v4244_v58 = vstv %s4233_s10  ;;  %s3271_s28 = sld [smem:[#allocation2 + $0x84]]  ;;  %s4265_s10 = smov 111  }
 0x1c3   :  { %v1124_v43 = vmul.f32 %v4243_v27, %v2993_v24  ;;  %v1130_v9 = vmul.f32 %v4244_v58, %v2995_v21  ;;  %v4245_v55 = vstv %s4235_s22  ;;  %v1019_v41 = vadd.f32 %v1017_v10, %v1013_v33 }
 0x1c4   :  { %v1136_v34 = vmul.f32 %v4245_v55, %v2997_v51  ;;  %v1114_v52 = vadd.f32 %v1112_v32, %v1108_v12  ;;  %v1101_v4 = vadd.f32 %v1099_v42, %v1095_v53  ;;  %v4246_v16 = vmov %v4236_v56 }
 0x1c5   :  { %v1105_v28 = vmul.f32 %v4246_v16, %v2987_v19  ;;  %v1032_v3 = vadd.f32 %v1030_v6, %v1026_v25  ;;  %v4247_v56 = vmov %v4237_v2  ;;  %v4248_v5 = vstv %s4239_s27  ;;  %s1714_s27 = sld [smem:[#allocation2 + $0x8a]] }
 0x1c6   :  { %v1111_v29 = vmul.f32 %v4247_v56, %v2991_v49  ;;  %v1152_v0 = vmul.f32 %v4248_v5, %v2943_v36  ;;  %v4249_v2 = vstv %s4241_s15  ;;  %v1025_v32 = vadd.f32 %v1023_v30, %v1019_v41  ;;  %s1715_s15 = sld [smem:[#allocation2 + $0x93]] }
 0x1c7   :  { %v1156_v10 = vmul.f32 %v4249_v2, %v2945_v26  ;;  %v1120_v37 = vadd.f32 %v1118_v13, %v1114_v52  ;;  %v1107_v53 = vadd.f32 %v1105_v28, %v1101_v4  ;;  %v4250_v33 = vmov %v4240_v18  ;;  %1035 = vrot.lane.b32.xlu1 %v1032_v3, %s4251_s13 }
 0x1c8   :  { %v1117_v6 = vmul.f32 %v4250_v33, %v2999_v15  ;;  %v4252_v12 = vmov %v4243_v27  ;;  %v4253_v23 = vmov %v4244_v58  ;;  %v4254_v30 = vstv %s2519_s5  ;;  %s4262_s5 = smov 127  }
 0x1c9   :  { %v1123_v18 = vmul.f32 %v4252_v12, %v3001_v39  ;;  %v1129_v42 = vmul.f32 %v4253_v23, %v3009_v1  ;;  %v1158_v25 = vadd.f32 %v1156_v10, %v1152_v0  ;;  %v1162_v13 = vmul.f32 %v4254_v30, %v2947_v8 }
 0x1ca   :  { %v1031_v27 = vadd.f32 %v1029_v17, %v1025_v32  ;;  %v1126_v58 = vadd.f32 %v1124_v43, %v1120_v37  ;;  %v1113_v55 = vadd.f32 %v1111_v29, %v1107_v53  ;;  %v4256_v41 = vstv %s4235_s22  ;;  %s1713_s22 = sld [smem:[#allocation2 + $0x81]] }
 0x1cb   :  { %v1135_v52 = vmul.f32 %v4256_v41, %v3011_v54  ;;  %v1164_v4 = vadd.f32 %v1162_v13, %v1158_v25  ;;  %v1168_v16 = vmul.f32 %v1166_v11, %v2949_v48  ;;  %v4257_v28 = vmov %v4248_v5 }
 0x1cc   :  { %v1151_v3 = vmul.f32 %v4257_v28, %v2983_v63  ;;  %v4259_v56 = vmov %v4249_v2  ;;  %1033 = vrot.lane.b32.xlu0 %v1031_v27, %s4251_s13  ;;  %v1132_v43 = vadd.f32 %v1130_v9, %v1126_v58  ;;  %v1119_v29 = vadd.f32 %v1117_v6, %v1113_v55 }
 0x1cd   :  { %v1155_v17 = vmul.f32 %v4259_v56, %v2985_v61  ;;  %v1174_v5 = vmul.f32 %v1172_v22, %v2989_v40  ;;  %v1180_v0 = vmul.f32 %v1178_v59, %v2993_v24  ;;  %v1170_v2 = vadd.f32 %v1168_v16, %v1164_v4 }
 0x1ce   :  { %v1186_v10 = vmul.f32 %v1184_v31, %v2995_v21  ;;  %v4261_v37 = vmov %v4254_v30  ;;  %v1138_v53 = vadd.f32 %v1136_v34, %v1132_v43  ;;  %v1125_v33 = vadd.f32 %v1123_v18, %v1119_v29 }
 0x1cf   :  { %v1157_v32 = vadd.f32 %v1155_v17, %v1151_v3  ;;  %v1161_v9 = vmul.f32 %v4261_v37, %v2987_v19  ;;  %v1192_v6 = vmul.f32 %v1190_v7, %v2997_v51  ;;  %v1167_v12 = vmul.f32 %v1166_v11, %v2991_v49 }
 0x1d0   :  { %v1176_v23 = vadd.f32 %v1174_v5, %v1170_v2  ;;  %v1208_v30 = vmul.f32 %v1206_v38, %v2943_v36  ;;  %v1210_v13 = vstv %s3238_s7  ;;  %1141 = vrot.lane.b32.xlu1 %v1138_v53, %s4262_s5  ;;  %v1131_v34 = vadd.f32 %v1129_v42, %v1125_v33  ;;  %s1748_s7 = sld [smem:[#allocation2 + $0x98]] }
 0x1d1   :  { %v1163_v25 = vadd.f32 %v1161_v9, %v1157_v32  ;;  %v1212_v18 = vmul.f32 %v1210_v13, %v2945_v26  ;;  %v1216_v27 = vstv %s3249_s20  ;;  %v1222_v58 = vstv %s3254_s9 }
 0x1d2   :  { %v1182_v11 = vadd.f32 %v1180_v0, %v1176_v23  ;;  %v1173_v41 = vmul.f32 %v1172_v22, %v2999_v15  ;;  %v1179_v4 = vmul.f32 %v1178_v59, %v3001_v39  ;;  %v1137_v42 = vadd.f32 %v1135_v52, %v1131_v34 }
 0x1d3   :  { %v1169_v55 = vadd.f32 %v1167_v12, %v1163_v25  ;;  %v1214_v16 = vadd.f32 %v1212_v18, %v1208_v30  ;;  %v1218_v28 = vmul.f32 %v1216_v27, %v2947_v8  ;;  %v1224_v3 = vmul.f32 %v1222_v58, %v2949_v48 }
 0x1d4   :  { %v1188_v56 = vadd.f32 %v1186_v10, %v1182_v11  ;;  %v1228_v22 = vstv %s3266_s25  ;;  %v1234_v43 = vstv %s3271_s28  ;;  %1139 = vrot.lane.b32.xlu0 %v1137_v42, %s4262_s5  ;;  %v1240_v29 = vstv %s3282_s11  ;;  %s1749_s28 = sld [smem:[#allocation2 + $0x99]] }
 0x1d5   :  { %v1175_v17 = vadd.f32 %v1173_v41, %v1169_v55  ;;  %v1220_v59 = vadd.f32 %v1218_v28, %v1214_v16  ;;  %v1246_v52 = vstv %s3291_s16  ;;  %v1207_v5 = vmul.f32 %v1206_v38, %v2983_v63 }
 0x1d6   :  { %v1194_v0 = vadd.f32 %v1192_v6, %v1188_v56  ;;  %v1185_v10 = vmul.f32 %v1184_v31, %v3009_v1  ;;  %v1191_v32 = vmul.f32 %v1190_v7, %v3011_v54  ;;  %v1230_v9 = vmul.f32 %v1228_v22, %v2989_v40 }
 0x1d7   :  { %v1181_v2 = vadd.f32 %v1179_v4, %v1175_v17  ;;  %v1226_v37 = vadd.f32 %v1224_v3, %v1220_v59  ;;  %v1211_v38 = vmul.f32 %v1210_v13, %v2985_v61  ;;  %v1236_v33 = vmul.f32 %v1234_v43, %v2993_v24 }
 0x1d8   :  { %1197 = vrot.lane.b32.xlu1 %v1194_v0, %s4263_s30  ;;  %v1242_v31 = vmul.f32 %v1240_v29, %v2995_v21  ;;  %v1248_v6 = vmul.f32 %v1246_v52, %v2997_v51  ;;  %v1217_v23 = vmul.f32 %v1216_v27, %v2987_v19  ;;  %v1262_v25 = vstv %s3309_s3  ;;  %s4274_s3 = sld [smem:[#allocation140_spill]] }
 0x1d9   :  { %v1187_v53 = vadd.f32 %v1185_v10, %v1181_v2  ;;  %v1232_v12 = vadd.f32 %v1230_v9, %v1226_v37  ;;  %v1213_v7 = vadd.f32 %v1211_v38, %v1207_v5  ;;  %v1264_v13 = vmul.f32 %v1262_v25, %v2943_v36 }
 0x1da   :  { %v1266_v34 = vstv %s3315_s18  ;;  %v1272_v18 = vstv %s3323_s21  ;;  %v1223_v41 = vmul.f32 %v1222_v58, %v2991_v49  ;;  %v1229_v27 = vmul.f32 %v1228_v22, %v2999_v15  ;;  %s1961_s21 = smov [#allocation9]  }
 0x1db   :  { %v1193_v30 = vadd.f32 %v1191_v32, %v1187_v53  ;;  %v1238_v11 = vadd.f32 %v1236_v33, %v1232_v12  ;;  %v1219_v55 = vadd.f32 %v1217_v23, %v1213_v7  ;;  %v1268_v4 = vmul.f32 %v1266_v34, %v2945_v26 }
 0x1dc   :  { %v1235_v42 = vmul.f32 %v1234_v43, %v3001_v39  ;;  %v1274_v16 = vmul.f32 %v1272_v18, %v2947_v8  ;;  %v1278_v28 = vstv %s3327_s14  ;;  %v1284_v58 = vstv %s3331_s12  ;;  %s1578_s14 = sshll.u32 %s1961_s21, 4  ;;  %s1579_s14 = int_to_ptr.vmem [resolvable:$true] %s1578_s14 }
 0x1dd   :  { %1195 = vrot.lane.b32.xlu0 %v1193_v30, %s4263_s30  ;;  %v1244_v3 = vadd.f32 %v1242_v31, %v1238_v11  ;;  %v1225_v56 = vadd.f32 %v1223_v41, %v1219_v55  ;;  %v1270_v17 = vadd.f32 %v1268_v4, %v1264_v13  ;;  %v1280_v59 = vmul.f32 %v1278_v28, %v2949_v48  ;;  %s1917_s12 = scalar_lea.vmem %s1579_s14, 32  ;;  %p1922_p2 = scmp.lt.s32.totalorder %s1579_s14, %s1579_s14 }
 0x1de   :  { %v1290_v5 = vstv %s3339_s1  ;;  %v1296_v0 = vstv %s3344_s23  ;;  %v1263_v2 = vmul.f32 %v1262_v25, %v2983_v63  ;;  %v1302_v32 = vstv %s3351_s2  ;;  %p1918_p1 = scmp.ne.s32.totalorder %s1579_s14, %s1917_s12  ;;  %p1923_p3 = scmp.lt.s32.totalorder %s1917_s12, %s1917_s12 }
 0x1df   :  { %v1250_v22 = vadd.f32 %v1248_v6, %v1244_v3  ;;  %v1231_v43 = vadd.f32 %v1229_v27, %v1225_v56  ;;  %v1276_v10 = vadd.f32 %v1274_v16, %v1270_v17  ;;  %v1241_v37 = vmul.f32 %v1240_v29, %v3009_v1 }
 0x1e0   :  { %v1247_v9 = vmul.f32 %v1246_v52, %v3011_v54  ;;  %v1286_v38 = vmul.f32 %v1284_v58, %v2989_v40  ;;  %v1267_v53 = vmul.f32 %v1266_v34, %v2985_v61  ;;  %v1292_v6 = vmul.f32 %v1290_v5, %v2993_v24  ;;  %p1924_p4 = por %p1923_p3, %p1922_p2 }
 0x1e1   :  { %1253 = vrot.lane.b32.xlu1 %v1250_v22, %s4264_s8  ;;  %v1237_v33 = vadd.f32 %v1235_v42, %v1231_v43  ;;  %v1282_v31 = vadd.f32 %v1280_v59, %v1276_v10  ;;  %v1298_v12 = vmul.f32 %v1296_v0, %v2995_v21  ;;  %v1304_v29 = vmul.f32 %v1302_v32, %v2997_v51 }
 0x1e2   :  { %v1269_v7 = vadd.f32 %v1267_v53, %v1263_v2  ;;  %v1273_v52 = vmul.f32 %v1272_v18, %v2987_v19  ;;  %v1044_v23 = vstv %s3362_s17  ;;  %v1279_v55 = vmul.f32 %v1278_v28, %v2991_v49  ;;  %p1925_p5 = pnand %p1924_p4, %p1918_p1 }
 0x1e3   :  { %v1243_v25 = vadd.f32 %v1241_v37, %v1237_v33  ;;  %v1288_v30 = vadd.f32 %v1286_v38, %v1282_v31  ;;  %v1045_v13 = vmul.f32 %v1044_v23, %v2983_v63  ;;  %v1046_v34 = vmul.f32 %v1044_v23, %v2943_v36 }
 0x1e4   :  { %v1275_v11 = vadd.f32 %v1273_v52, %v1269_v7  ;;  %v1048_v41 = vstv %s3366_s29  ;;  %v1054_v4 = vstv %s3373_s0  ;;  %v1285_v56 = vmul.f32 %v1284_v58, %v2999_v15 }
 0x1e5   :  { %v1249_v27 = vadd.f32 %v1247_v9, %v1243_v25  ;;  %v1294_v42 = vadd.f32 %v1292_v6, %v1288_v30  ;;  %v1049_v16 = vmul.f32 %v1048_v41, %v2985_v61  ;;  %v1050_v18 = vmul.f32 %v1048_v41, %v2945_v26 }
 0x1e6   :  { %v1281_v3 = vadd.f32 %v1279_v55, %v1275_v11  ;;  %v1055_v17 = vmul.f32 %v1054_v4, %v2987_v19  ;;  %v1060_v63 = vstv %s3380_s26  ;;  %v1056_v2 = vmul.f32 %v1054_v4, %v2947_v8 }
 0x1e7   :  { %1251 = vrot.lane.b32.xlu0 %v1249_v27, %s4264_s8  ;;  %v1300_v36 = vadd.f32 %v1298_v12, %v1294_v42  ;;  %v1051_v59 = vadd.f32 %v1049_v16, %v1045_v13  ;;  %v1052_v28 = vadd.f32 %v1050_v18, %v1046_v34  ;;  %v1291_v43 = vmul.f32 %v1290_v5, %v3001_v39 }
 0x1e8   :  { %v1287_v22 = vadd.f32 %v1285_v56, %v1281_v3  ;;  %v1066_v10 = vstv %s3387_s19  ;;  %v1061_v9 = vmul.f32 %v1060_v63, %v2991_v49  ;;  %v1297_v19 = vmul.f32 %v1296_v0, %v3009_v1 }
 0x1e9   :  { %v1306_v61 = vadd.f32 %v1304_v29, %v1300_v36  ;;  %v1057_v37 = vadd.f32 %v1055_v17, %v1051_v59  ;;  %v1058_v26 = vadd.f32 %v1056_v2, %v1052_v28  ;;  %v1067_v53 = vmul.f32 %v1066_v10, %v2999_v15  ;;  %v4266_v17 = vld [vmem:[#allocation108_spill] sm:$0xff]  ;;  %v4267_v36 = vld [vmem:[#allocation110_spill] sm:$0xff] }
 0x1ea   :  { %v1293_v58 = vadd.f32 %v1291_v43, %v1287_v22  ;;  %v1303_v8 = vmul.f32 %v1302_v32, %v3011_v54  ;;  %v1062_v0 = vmul.f32 %v1060_v63, %v2949_v48  ;;  %v1068_v15 = vmul.f32 %v1066_v10, %v2989_v40  ;;  %v4268_v43 = vld [vmem:[#allocation113_spill] sm:$0xff] }
 0x1eb   :  { %1309 = vrot.lane.b32.xlu1 %v1306_v61, %s4265_s10  ;;  %v1063_v38 = vadd.f32 %v1061_v9, %v1057_v37  ;;  %v1072_v32 = vstv %s1713_s22  ;;  %v1078_v55 = vstv %s1714_s27  ;;  %v4269_v61 = vld [vmem:[#allocation115_spill] sm:$0xff] }
 0x1ec   :  { %v1299_v33 = vadd.f32 %v1297_v19, %v1293_v58  ;;  %v1064_v23 = vadd.f32 %v1062_v0, %v1058_v26  ;;  %v1073_v34 = vmul.f32 %v1072_v32, %v3001_v39  ;;  %v1074_v11 = vmul.f32 %v1072_v32, %v2993_v24  ;;  %v4270_v26 = vld [vmem:[#allocation111_spill] sm:$0xff]  ;;  %v4271_v58 = vld [vmem:[#allocation112_spill] sm:$0xff] }
 0x1ed   :  { %v1069_v31 = vadd.f32 %v1067_v53, %v1063_v38  ;;  %v1079_v40 = vmul.f32 %v1078_v55, %v3009_v1  ;;  %v1080_v16 = vmul.f32 %v1078_v55, %v2995_v21  ;;  %v1084_v1 = vstv %s1715_s15 }
 0x1ee   :  { %v1305_v6 = vadd.f32 %v1303_v8, %v1299_v33  ;;  %v1070_v13 = vadd.f32 %v1068_v15, %v1064_v23  ;;  %v1085_v38 = vmul.f32 %v1084_v1, %v3011_v54  ;;  %v1086_v53 = vmul.f32 %v1084_v1, %v2997_v51  ;;  %v4272_v54 = vld [vmem:[#allocation16_spill] sm:$0xff] }
 0x1ef   :  { %v1075_v4 = vadd.f32 %v1073_v34, %v1069_v31  ;;  %v1318_v1 = vstv %s1748_s7 }
 0x1f0   :  { %1307 = vrot.lane.b32.xlu0 %v1305_v6, %s4265_s10  ;;  %v1076_v27 = vadd.f32 %v1074_v11, %v1070_v13 }
 0x1f1   :  { %v1081_v2 = vadd.f32 %v1079_v40, %v1075_v4 }
 0x1f2   :  { %v1082_v22 = vadd.f32 %v1080_v16, %v1076_v27 }
 0x21a   :  { %v870_v5 = vpop.permute.xlu1 %869 }
 0x21d   :  { %v868_v12 = vpop.permute.xlu0 %867 }
 0x21e   :  { %v871_v39 = vsel %vm83_vm2, %v868_v12, %v870_v5  ;;  %v872_v24 = vsel %vm83_vm2, %v870_v5, %v868_v12 }
 0x21f   :  { %v873_v10 = vmul.f32 %v872_v24, %v4268_v43  ;;  %v874_v37 = vmul.f32 %v871_v39, %v4269_v61 }
 0x222   :  { %v924_v29 = vpop.permute.xlu1 %923 }
 0x225   :  { %v922_v7 = vpop.permute.xlu0 %921 }
 0x226   :  { %v925_v41 = vsel %vm104_vm0, %v922_v7, %v924_v29  ;;  %v926_v48 = vsel %vm104_vm0, %v924_v29, %v922_v7 }
 0x227   :  { %v927_v63 = vmul.f32 %v926_v48, %v4266_v17  ;;  %v928_v59 = vmul.f32 %v925_v41, %v4267_v36 }
 0x229   :  { %v929_v33 = vadd.f32 %v927_v63, %v873_v10  ;;  %v930_v8 = vadd.f32 %v928_v59, %v874_v37 }
 0x22b   :  { %v980_v49 = vpop.permute.xlu1 %979 }
 0x233   :  { %v978_v52 = vpop.permute.xlu0 %977 }
 0x234   :  { %v981_v3 = vsel %vm126_vm1, %v978_v52, %v980_v49  ;;  %v982_v56 = vsel %vm126_vm1, %v980_v49, %v978_v52  ;;  %v1087_v49 = vadd.f32 %v1085_v38, %v1081_v2  ;;  %v1088_v52 = vadd.f32 %v1086_v53, %v1082_v22 }
 0x235   :  { %v983_v9 = vmul.f32 %v982_v56, %v4270_v26  ;;  %v984_v19 = vmul.f32 %v981_v3, %v4271_v58 }
 0x237   :  { %v985_v29 = vadd.f32 %v983_v9, %v929_v33  ;;  %v986_v7 = vadd.f32 %v984_v19, %v930_v8 }
 0x239   :  { %v1036_v25 = vpop.permute.xlu1 %1035 }
 0x23e   :  { %v1034_v30 = vpop.permute.xlu0 %1033 }
 0x23f   :  { %v1037_v21 = vsel %vm148_vm3, %v1034_v30, %v1036_v25  ;;  %v1038_v28 = vsel %vm148_vm3, %v1036_v25, %v1034_v30  ;;  %v1089_v25 = vmul.f32 %v1087_v49, %v4272_v54  ;;  %v4273_v30 = vld [vmem:[#allocation17_spill] sm:$0xff] }
 0x240   :  { %v1039_v31 = vmul.f32 %v1038_v28, %v2299_v62  ;;  %v1040_v6 = vmul.f32 %v1037_v21, %v3976_v35  ;;  %v1090_v62 = vmul.f32 %v1088_v52, %v4273_v30  ;;  %v1385_v49 = vld [vmem:[#allocation6 + $0x68] sm:$0xff]  ;;  %v1400_v52 = vld [vmem:[#allocation6 + $0xe0] sm:$0xff]  ;;  %v1382_v54 = vld [vmem:[#allocation6 + $0x50] sm:$0xff] }
 0x241   :  { %v1381_v30 = vld [vmem:[#allocation6 + $0x48] sm:$0xff] }
 0x242   :  { %v1142_v42 = vpop.permute.xlu1 %1141  ;;  %v1041_v0 = vadd.f32 %v1039_v31, %v985_v29  ;;  %v1042_v23 = vadd.f32 %v1040_v6, %v986_v7  ;;  %v1403_v6 = vld [vmem:[#allocation6 + $0xf8] sm:$0xff]  ;;  %v1386_v29 = vld [vmem:[#allocation6 + $0x70] sm:$0xff]  ;;  %v1401_v7 = vld [vmem:[#allocation6 + $0xe8] sm:$0xff] }
 0x243   :  { %1753 = vmatprep.subr.mxu0 %v1403_v6  ;;  %v1484_v6 = vld [vmem:[#allocation7 + $0x20] sm:$0xff] }
 0x244   :  { %v1091_v11 = vadd.f32 %v1089_v25, %v1041_v0  ;;  %v1092_v55 = vadd.f32 %v1090_v62, %v1042_v23  ;;  %v1384_v0 = vld [vmem:[#allocation6 + $0x60] sm:$0xff]  ;;  %v1399_v23 = vld [vmem:[#allocation6 + $0xd8] sm:$0xff]  ;;  %v1397_v25 = vld [vmem:[#allocation6 + $0xc8] sm:$0xff] }
 0x245   :  { %v1396_v62 = vld [vmem:[#allocation6 + $0xc0] sm:$0xff] }
 0x246   :  { %v1140_v18 = vpop.permute.xlu0 %1139 }
 0x247   :  { %v1143_v15 = vsel %vm193_vm4, %v1140_v18, %v1142_v42  ;;  %v1144_v51 = vsel %vm193_vm4, %v1142_v42, %v1140_v18 }
 0x248   :  { %v1145_v41 = vmul.f32 %v1143_v15, %v3985_v14  ;;  %v1146_v48 = vmul.f32 %v1144_v51, %v3986_v60  ;;  %v1383_v15 = vld [vmem:[#allocation6 + $0x58] sm:$0xff]  ;;  %v1398_v51 = vld [vmem:[#allocation6 + $0xd0] sm:$0xff] }
 0x24a   :  { %v1198_v5 = vpop.permute.xlu1 %1197  ;;  %v1147_v16 = vadd.f32 %v1145_v41, %v1091_v11  ;;  %v1148_v18 = vadd.f32 %v1146_v48, %v1092_v55  ;;  %v1378_v11 = vld [vmem:[#allocation6 + $0x30] sm:$0xff]  ;;  %v1393_v55 = vld [vmem:[#allocation6 + $0xa8] sm:$0xff]  ;;  %v1392_v48 = vld [vmem:[#allocation6 + $0xa0] sm:$0xff] }
 0x24b   :  { %v1377_v41 = vld [vmem:[#allocation6 + $0x28] sm:$0xff] }
 0x24f   :  { %v1196_v12 = vpop.permute.xlu0 %1195 }
 0x250   :  { %v1199_v13 = vsel %vm215_vm5, %v1196_v12, %v1198_v5  ;;  %v1200_v34 = vsel %vm215_vm5, %v1198_v5, %v1196_v12  ;;  %v1387_v5 = vld [vmem:[#allocation6 + $0x78] sm:$0xff]  ;;  %v1402_v12 = vld [vmem:[#allocation6 + $0xf0] sm:$0xff] }
 0x251   :  { %v1201_v42 = vmul.f32 %v1199_v13, %v4043_v20  ;;  %v1202_v40 = vmul.f32 %v1200_v34, %v4044_v57  ;;  %1754 = vmatpush3.msra.mxu0 %v1387_v5  ;;  %v1379_v13 = vld [vmem:[#allocation6 + $0x38] sm:$0xff]  ;;  %v1394_v34 = vld [vmem:[#allocation6 + $0xb0] sm:$0xff] }
 0x252   :  { %1755 = vmatprep.subr.mxu0 %v1402_v12  ;;  %v1483_v5 = vld [vmem:[#allocation7 + $0x18] sm:$0xff]  ;;  %v1482_v12 = vld [vmem:[#allocation7 + $0x10] sm:$0xff] }
 0x253   :  { %v1254_v32 = vpop.permute.xlu1 %1253  ;;  %v1203_v3 = vadd.f32 %v1201_v42, %v1147_v16  ;;  %v1204_v60 = vadd.f32 %v1202_v40, %v1148_v18  ;;  %1756 = vmatpush3.msra.mxu0 %v1386_v29  ;;  %v1376_v18 = vld [vmem:[#allocation6 + $0x20] sm:$0xff] }
 0x254   :  { %1757 = vmatprep.subr.mxu0 %v1401_v7  ;;  %v1751_v7 = vld [vmem:[%s4274_s3] ss:$0 sm:$0xff] }
 0x255   :  { %1758 = vmatpush3.msra.mxu0 %v1385_v49 }
 0x256   :  { %1759 = vmatprep.subr.mxu0 %v1400_v52 }
 0x257   :  { %1760 = vmatpush3.msra.mxu0 %v1384_v0 }
 0x258   :  { %1761 = vmatprep.subr.mxu0 %v1399_v23 }
 0x259   :  { %v1252_v35 = vpop.permute.xlu0 %1251  ;;  %1762 = vmatpush3.msra.mxu0 %v1383_v15  ;;  %v1752_v15 = vld [vmem:[%s4274_s3 + $0x1] ss:$0 sm:$0xff] }
 0x25a   :  { %v1255_v4 = vsel %vm237_vm6, %v1252_v35, %v1254_v32  ;;  %v1256_v27 = vsel %vm237_vm6, %v1254_v32, %v1252_v35  ;;  %1763 = vmatprep.subr.mxu0 %v1398_v51  ;;  %v1380_v32 = vld [vmem:[#allocation6 + $0x40] sm:$0xff]  ;;  %v1395_v35 = vld [vmem:[#allocation6 + $0xb8] sm:$0xff] }
 0x25b   :  { %v1257_v39 = vmul.f32 %v1255_v4, %v4053_v47  ;;  %v1258_v24 = vmul.f32 %v1256_v27, %v4054_v46  ;;  %1764 = vmatpush3.msra.mxu0 %v1382_v54 }
 0x25c   :  { %1765 = vmatprep.subr.mxu0 %v1397_v25 }
 0x25d   :  { %v1310_v14 = vpop.permute.xlu1 %1309  ;;  %v1259_v36 = vadd.f32 %v1257_v39, %v1203_v3  ;;  %v1260_v20 = vadd.f32 %v1258_v24, %v1204_v60  ;;  %1766 = vmatpush3.msra.mxu0 %v1381_v30  ;;  %v1391_v39 = vld [vmem:[#allocation6 + $0x98] sm:$0xff]  ;;  %v1374_v60 = vld [vmem:[#allocation6 + $0x10] sm:$0xff] }
 0x25e   :  { %1767 = vmatprep.subr.mxu0 %v1396_v62  ;;  %v1375_v24 = vld [vmem:[#allocation6 + $0x18] sm:$0xff] }
 0x25f   :  { %1768 = vmatpush3.msra.mxu0 %v1380_v32 }
 0x260   :  { %1769 = vmatprep.subr.mxu0 %v1395_v35 }
 0x261   :  { %1770 = vmatpush3.msra.mxu0 %v1379_v13 }
 0x262   :  { %v1308_v56 = vpop.permute.xlu0 %1307  ;;  %1771 = vmatprep.subr.mxu0 %v1394_v34 }
 0x263   :  { %v1311_v17 = vsel %vm259_vm7, %v1308_v56, %v1310_v14  ;;  %v1312_v63 = vsel %vm259_vm7, %v1310_v14, %v1308_v56  ;;  %1772 = vmatpush3.msra.mxu0 %v1378_v11  ;;  %v1390_v14 = vld [vmem:[#allocation6 + $0x90] sm:$0xff]  ;;  %v1389_v56 = vld [vmem:[#allocation6 + $0x88] sm:$0xff] }
 0x264   :  { %v1313_v57 = vmul.f32 %v1311_v17, %v4098_v45  ;;  %v1314_v59 = vmul.f32 %v1312_v63, %v4099_v50  ;;  %1773 = vmatprep.subr.mxu0 %v1393_v55  ;;  %v1373_v63 = vld [vmem:[#allocation6 + $0x8] sm:$0xff] }
 0x265   :  { %1774 = vmatpush3.msra.mxu0 %v1377_v41 }
 0x266   :  { %v1315_v47 = vadd.f32 %v1313_v57, %v1259_v36  ;;  %v1316_v21 = vadd.f32 %v1314_v59, %v1260_v20  ;;  %1775 = vmatprep.subr.mxu0 %v1392_v48  ;;  %v1388_v36 = vld [vmem:[#allocation6 + $0x80] sm:$0xff]  ;;  %v1495_v20 = vld [vmem:[#allocation7 + $0x78] sm:$0xff]  ;;  %v1959_v59 = vmov 0.0  }
 0x267   :  { %1776 = vmatpush3.msra.mxu0 %v1376_v18  ;;  %v1372_v57 = vld [vmem:[#allocation6] sm:$0xff]  ;;  %1805 = vmatprep.subr.mxu1 %v1959_v59 }
 0x268   :  { %v1319_v46 = vadd.f32 %v1318_v1, %v1315_v47  ;;  %v1320_v28 = vadd.f32 %v1318_v1, %v1316_v21  ;;  %1777 = vmatprep.subr.mxu0 %v1391_v39  ;;  %v1494_v1 = vld [vmem:[#allocation7 + $0x70] sm:$0xff]  ;;  %1806 = vmatpush3.msra.mxu1 %v1495_v20  ;;  %v1493_v47 = vld [vmem:[#allocation7 + $0x68] sm:$0xff]  ;;  %v1492_v21 = vld [vmem:[#allocation7 + $0x60] sm:$0xff] }
 0x269   :  { %1778 = vmatpush3.msra.mxu0 %v1375_v24  ;;  %1807 = vmatprep.subr.mxu1 %v1959_v59 }
 0x26a   :  { %v1322_v2 = vsel %vm1321_vm8, %v1319_v46, 0.0  ;;  %v1323_v22 = vsel %vm1321_vm8, %v1320_v28, 0.0  ;;  %1779 = vmatprep.subr.mxu0 %v1390_v14  ;;  %1808 = vmatpush3.msra.mxu1 %v1494_v1 }
 0x26b   :  { %v1324_v43 = vadd.f32 %v1323_v22, %v1322_v2  ;;  %1780 = vmatpush3.msra.mxu0 %v1374_v60  ;;  %1809 = vmatprep.subr.mxu1 %v1959_v59  ;;  %v1489_v2 = vld [vmem:[#allocation7 + $0x48] sm:$0xff]  ;;  %v1488_v22 = vld [vmem:[#allocation7 + $0x40] sm:$0xff] }
 0x26c   :  { %1781 = vmatprep.subr.mxu0 %v1389_v56  ;;  %1810 = vmatpush3.msra.mxu1 %v1493_v47 }
 0x26d   :  { %1325 = vadd.xlane.f32.xlu0 %v1324_v43  ;;  %1782 = vmatpush3.msra.mxu0 %v1373_v63  ;;  %v1487_v43 = vld [vmem:[#allocation7 + $0x38] sm:$0xff] }
 0x26e   :  { %1783 = vmatprep.subr.mxu0 %v1388_v36  ;;  %1811 = vmatprep.subr.mxu1 %v1959_v59 }
 0x26f   :  { %1784 = vmatpush3.msra.mxu0 %v1372_v57  ;;  %1812 = vmatpush3.msra.mxu1 %v1492_v21 }
 0x270   :  { %1813 = vmatprep.subr.mxu1 %v1959_v59  ;;  %1837 = vmatprep.mubr.msk.f32.mxu1 %vm1960_vm9, %v1959_v59 }
 0x2f6   :  { %v1326_v44 = vpop.xlane.xlu0 %1325 }
 0x2f7   :  { %v1327_v10 = vrot.slane %v1326_v44, 4 }
 0x2f9   :  { %v1328_v61 = vadd.f32 %v1327_v10, %v1326_v44  ;;  %v1486_v44 = vld [vmem:[#allocation7 + $0x30] sm:$0xff]  ;;  %v1485_v10 = vld [vmem:[#allocation7 + $0x28] sm:$0xff] }
 0x2fb   :  { %v1329_v37 = vrot.slane %v1328_v61, 2 }
 0x2fd   :  { %v1330_v26 = vadd.f32 %v1329_v37, %v1328_v61 }
 0x2ff   :  { %v1331_v45 = vrot.slane %v1330_v26, 1 }
 0x301   :  { %v1332_v9 = vadd.f32 %v1331_v45, %v1330_v26  ;;  %v1365_v45 = vstv %s1749_s28 }
 0x303   :  { %1840 = vpush %v1332_v9 }
 0x334   :  { %s1841_s20 = spop %1840 }
 0x335   :  { %s1336_s9 = smul.f32 0.001953125, %s1841_s20 }
 0x337   :  { %v1337_v50 = vstv %s1336_s9 }
 0x338   :  { %v3475_v58 = vsub.f32 %v1319_v46, %v1337_v50  ;;  %v3477_v19 = vsub.f32 %v1320_v28, %v1337_v50  ;;  %v1491_v46 = vld [vmem:[#allocation7 + $0x58] sm:$0xff]  ;;  %v1490_v28 = vld [vmem:[#allocation7 + $0x50] sm:$0xff] }
 0x339   :  { %1814 = vmatpush3.msra.mxu1 %v1491_v46 }
 0x33a   :  { %v1340_v38 = vmul.f32 %v3475_v58, %v3475_v58  ;;  %v1341_v53 = vmul.f32 %v3477_v19, %v3477_v19  ;;  %1815 = vmatprep.subr.mxu1 %v1959_v59 }
 0x33b   :  { %1816 = vmatpush3.msra.mxu1 %v1490_v28 }
 0x33c   :  { %v1342_v33 = vsel %vm1321_vm8, %v1340_v38, 0.0  ;;  %v1343_v8 = vsel %vm1321_vm8, %v1341_v53, 0.0  ;;  %1817 = vmatprep.subr.mxu1 %v1959_v59  ;;  %v1369_v38 = vstv %s1750_s24 }
 0x33d   :  { %v1344_v31 = vadd.f32 %v1343_v8, %v1342_v33  ;;  %1818 = vmatpush3.msra.mxu1 %v1489_v2 }
 0x33e   :  { %1819 = vmatprep.subr.mxu1 %v1959_v59 }
 0x33f   :  { %1345 = vadd.xlane.f32.xlu1 %v1344_v31  ;;  %1820 = vmatpush3.msra.mxu1 %v1488_v22 }
 0x340   :  { %1821 = vmatprep.subr.mxu1 %v1959_v59 }
 0x341   :  { %1822 = vmatpush3.msra.mxu1 %v1487_v43 }
 0x342   :  { %1823 = vmatprep.subr.mxu1 %v1959_v59 }
 0x343   :  { %1824 = vmatpush3.msra.mxu1 %v1486_v44 }
 0x344   :  { %1825 = vmatprep.subr.mxu1 %v1959_v59 }
 0x345   :  { %1826 = vmatpush3.msra.mxu1 %v1485_v10 }
 0x346   :  { %1827 = vmatprep.subr.mxu1 %v1959_v59 }
 0x347   :  { %1828 = vmatpush3.msra.mxu1 %v1484_v6 }
 0x348   :  { %1829 = vmatprep.subr.mxu1 %v1959_v59 }
 0x349   :  { %1830 = vmatpush3.msra.mxu1 %v1483_v5 }
 0x34a   :  { %1831 = vmatprep.subr.mxu1 %v1959_v59 }
 0x34b   :  { %1832 = vmatpush3.msra.mxu1 %v1482_v12 }
 0x34c   :  { %1833 = vmatprep.subr.mxu1 %v1959_v59 }
 0x3c8   :  { %v1346_v4 = vpop.xlane.xlu1 %1345 }
 0x3c9   :  { %v1347_v27 = vrot.slane %v1346_v4, 4 }
 0x3cb   :  { %v1348_v42 = vadd.f32 %v1347_v27, %v1346_v4 }
 0x3cd   :  { %v1349_v40 = vrot.slane %v1348_v42, 2 }
 0x3cf   :  { %v1350_v16 = vadd.f32 %v1349_v40, %v1348_v42 }
 0x3d1   :  { %v1351_v3 = vrot.slane %v1350_v16, 1 }
 0x3d3   :  { %v1352_v17 = vadd.f32 %v1351_v3, %v1350_v16 }
 0x3d5   :  { %1842 = vpush %v1352_v17 }
 0x406   :  { %s1843_s13 = spop %1842 }
 0x407   :  { %s1356_s25 = smul.f32 0.001953125, %s1843_s13 }
 0x409   :  { %s1357_s4 = sadd.f32 1e-05, %s1356_s25 }
 0x40b   :  { %v1358_v61 = vstv %s1357_s4 }
 0x40c   :  { %1863 = vrsqrt.f32 %v1358_v61 }
 0x419   :  { %v1864_v37 = vpop.eup %1863 }
 0x41a   :  { %1844 = vpush %v1864_v37 }
 0x44b   :  { %s1845_s11 = spop %1844 }
 0x44c   :  { %v1361_v26 = vstv %s1845_s11 }
 0x44d   :  { %v1362_v9 = vmul.f32 %v1361_v26, %v3475_v58  ;;  %v1363_v50 = vmul.f32 %v1361_v26, %v3477_v19  ;;  %v1481_v58 = vld [vmem:[#allocation7 + $0x8] sm:$0xff]  ;;  %v1480_v19 = vld [vmem:[#allocation7] sm:$0xff] }
 0x44e   :  { %1834 = vmatpush3.msra.mxu1 %v1481_v58 }
 0x44f   :  { %v1366_v53 = vmul.f32 %v1365_v45, %v1362_v9  ;;  %v1367_v33 = vmul.f32 %v1365_v45, %v1363_v50  ;;  %1835 = vmatprep.subr.mxu1 %v1959_v59 }
 0x450   :  { %1836 = vmatpush3.msra.mxu1 %v1480_v19 }
 0x451   :  { %v1370_v8 = vadd.f32 %v1369_v38, %v1366_v53  ;;  %v1371_v31 = vadd.f32 %v1369_v38, %v1367_v33 }
 0x453   :  { %1473 = vmatprep.mubr.f32.mxu0 %v1371_v31 }
 0x454   :  { %1474 = vmatmul.mubr.f32.vlgmr.msra.gmra.mxu0 %v1370_v8 }
 0x514   :  { %v1785_v29 = vpop.f32.mrf.mxu0 }
 0x516   :  { %v1786_v49 = vpop.f32.mrf.mxu0 }
 0x517   :  { %v1787_v52 = vadd.f32 %v1786_v49, %v1785_v29 }
 0x519   :  { %v1476_v0 = vadd.f32 %v1787_v52, %v1751_v7 }
 0x51b   :  { %v1479_v23 = vmax.f32 %v1476_v0, 0.0 }
 0x51d   :  { %1838 = vmatmul.mubr.f32.vlgmr.msra.gmra.mxu1 %v1479_v23 }
 0x5dd   :  { %v1567_v51 = vpop.f32.mrf.mxu1 }
 0x5de   :  { %v1568_v54 = vadd.f32 %v1752_v15, %v1567_v51 }
 0x5df   :  { %v1839_v25 = vpop.f32.mrf.mxu1 }
 0x5e0   :  { %1571 = vst [vmem:[#allocation9] sm:$0x3] %v1568_v54 }
 0x5e1   :  { %1928 = shalt.err (!%p1925_p5)
}
 0x5e2   :  { %s4275_s2 = sld [smem:[#allocation141_spill]] }
 0x5e8   :  { %1581 = dma.vmem_to_hbm [thread:$0]  %s1579_s14, 32, %s4275_s2, [#allocation4]  }
 0x5e9   :  { %1943 = dma.done.wait [#allocation4], 32  }
 0x5ea   :  { %1944 = vsyncadd [#allocation4], 4294967264 }
 0x5eb   :  { %1585 = vsyncpa [#allocation3], 1 }
 0x5ec   :  { %1586 = vsyncpa [#allocation8], 1 }
 0x5ed   :  { %1587 = vsyncpa [#allocation4], 1 }
 0x5ee   :  { %1588 = vsyncpa [#allocation5], 1 }

</bundles_post_ra>
